<compile_context>
chip_gen: v7x
topology: tpu7x:2x2x1
jax: 0.10.0
libtpu: 0.0.40
codegen_flags: <defaults>
</compile_context>

<pallas_src>
import functools

import jax
import jax.numpy as jnp
from jax.experimental import pallas as pl
from jax.experimental.pallas import tpu as pltpu


# ---------------------------------------------------------------------------
# Fused conv1x1 + BatchNorm(eval) + ReLU
#   x : (B, Cin, H*W)  ->  (B, Cout, H*W)
# Per grid step (one image):  relu(scale * (W @ x_b) + shift)
# ---------------------------------------------------------------------------
def _conv1x1_bn_relu_kernel(x_ref, w_ref, scale_ref, shift_ref, o_ref):
    x = x_ref[...].astype(jnp.bfloat16)                       # (Cin, HW)
    acc = jnp.dot(w_ref[...], x, preferred_element_type=jnp.float32)
    o_ref[...] = jnp.maximum(acc * scale_ref[...] + shift_ref[...], 0.0)


def conv1x1_bn_relu(x_nchw, w, bias, gamma, beta, rm, rv, eps=1e-5):
    B, Cin, H, W = x_nchw.shape
    Cout = w.shape[0]
    HW = H * W
    x3 = x_nchw.reshape(B, Cin, HW)                 # free reshape (contiguous)
    wm = w.reshape(Cout, Cin).astype(jnp.bfloat16)
    inv = gamma / jnp.sqrt(rv + eps)                # fold BN (eval) into affine
    scale = inv.reshape(Cout, 1).astype(jnp.float32)
    shift = (beta + (bias - rm) * inv).reshape(Cout, 1).astype(jnp.float32)
    return pl.pallas_call(
        _conv1x1_bn_relu_kernel,
        grid=(B,),
        in_specs=[
            pl.BlockSpec((None, Cin, HW), lambda b: (b, 0, 0)),
            pl.BlockSpec((Cout, Cin), lambda b: (0, 0)),
            pl.BlockSpec((Cout, 1), lambda b: (0, 0)),
            pl.BlockSpec((Cout, 1), lambda b: (0, 0)),
        ],
        out_specs=pl.BlockSpec((None, Cout, HW), lambda b: (b, 0, 0)),
        out_shape=jax.ShapeDtypeStruct((B, Cout, HW), jnp.float32),
        compiler_params=pltpu.CompilerParams(
            dimension_semantics=("parallel",)),
    )(x3, wm, scale, shift)


# ---------------------------------------------------------------------------
# Fused conv3x3(pad=1) + BatchNorm(eval) + ReLU
# The 9 taps are accumulated inside the kernel as shifted (Cout,Cin)@(Cin,HW)
# MXU products over a single zero-padded, spatially-flattened copy of the
# input (no 9x im2col materialization in HBM).
# ---------------------------------------------------------------------------
def _conv3x3_bn_relu_kernel(x_ref, w_ref, scale_ref, shift_ref, o_ref, *, H, W):
    # x_ref : (Cin, (H+3)*(W+2))  padded image, spatially flattened
    # o_ref : (Cout, H*(W+2))     each row carries 2 junk cols, stripped by caller
    Wp = W + 2
    Lp = H * Wp
    acc = jnp.zeros(o_ref.shape, jnp.float32)
    for ky in range(3):
        for kx in range(3):
            s0 = ky * Wp + kx
            xs = x_ref[:, s0:s0 + Lp].astype(jnp.bfloat16)     # shifted tap view
            acc = acc + jnp.dot(w_ref[ky * 3 + kx], xs,
                                preferred_element_type=jnp.float32)
    o_ref[...] = jnp.maximum(acc * scale_ref[...] + shift_ref[...], 0.0)


def conv3x3_bn_relu(x_bcs, H, W, w, bias, gamma, beta, rm, rv, eps=1e-5):
    # x_bcs: (B, Cin, H*W) channels-on-sublanes layout.  Returns (B, Cout, H, W).
    B, Cin, HW = x_bcs.shape
    Cout = w.shape[0]
    Wp = W + 2
    Lp = H * Wp
    # One small zero-pad (1 row top, 2 rows bottom so every tap slice stays in
    # bounds, 1 column left/right), then flatten the spatial dims.
    xp = jnp.pad(x_bcs.reshape(B, Cin, H, W), ((0, 0), (0, 0), (1, 2), (1, 1)))
    xpf = xp.reshape(B, Cin, (H + 3) * Wp)
    wt = w.transpose(2, 3, 0, 1).reshape(9, Cout, Cin).astype(jnp.bfloat16)
    inv = gamma / jnp.sqrt(rv + eps)
    scale = inv.reshape(Cout, 1).astype(jnp.float32)
    shift = (beta + (bias - rm) * inv).reshape(Cout, 1).astype(jnp.float32)
    outp = pl.pallas_call(
        functools.partial(_conv3x3_bn_relu_kernel, H=H, W=W),
        grid=(B,),
        in_specs=[
            pl.BlockSpec((None, Cin, (H + 3) * Wp), lambda b: (b, 0, 0)),
            pl.BlockSpec((9, Cout, Cin), lambda b: (0, 0, 0)),
            pl.BlockSpec((Cout, 1), lambda b: (0, 0)),
            pl.BlockSpec((Cout, 1), lambda b: (0, 0)),
        ],
        out_specs=pl.BlockSpec((None, Cout, Lp), lambda b: (b, 0, 0)),
        out_shape=jax.ShapeDtypeStruct((B, Cout, Lp), jnp.float32),
        compiler_params=pltpu.CompilerParams(
            dimension_semantics=("parallel",)),
    )(xpf, wt, scale, shift)
    return outp.reshape(B, Cout, H, Wp)[:, :, :, :W]


# ---------------------------------------------------------------------------
# Fused transformer encoder layer (post-norm, eval) -- single Pallas kernel.
# ---------------------------------------------------------------------------
def _layernorm(s, g, b, eps):
    mu = jnp.mean(s, axis=-1, keepdims=True)
    d = s - mu
    var = jnp.mean(d * d, axis=-1, keepdims=True)
    return d * jax.lax.rsqrt(var + eps) * g + b


def _encoder_layer_kernel(x_ref, wq_ref, wk_ref, wv_ref, bq_ref, bk_ref, bv_ref,
                          wo_ref, bo_ref, g1_ref, be1_ref,
                          w1_ref, c1_ref, w2_ref, c2_ref, g2_ref, be2_ref,
                          seg_ref, segt_ref,
                          o_ref, attn_scr, *, L, N, nhead, eps):
    E = x_ref.shape[1]
    Dh = E // nhead
    x = x_ref[...]                                          # (L*N, E) f32
    xb = x.astype(jnp.bfloat16)

    # --- self-attention ------------------------------------------------------
    q = jnp.dot(xb, wq_ref[...], preferred_element_type=jnp.float32) + bq_ref[...]
    k = jnp.dot(xb, wk_ref[...], preferred_element_type=jnp.float32) + bk_ref[...]
    v = jnp.dot(xb, wv_ref[...], preferred_element_type=jnp.float32) + bv_ref[...]
    q = q * (1.0 / (Dh ** 0.5))

    seg = seg_ref[...]              # (E, nhead) 0/1 head-segment matrix, bf16
    segt = segt_ref[...]            # (nhead, E)

    # Rows are ordered (l, n): l = sequence index (= image batch), n = "batch"
    # index (= channel).  Per-head dot products are obtained by summing the
    # elementwise q*k product over each head's contiguous Dh chunk with the
    # segment matrix on the MXU, so no head reshapes/transposes are needed.
    # Unrolled over the (small) sequence length L.
    # TODO(synk): for large sequence lengths replace this unrolled attention
    # with a flash-style tiled attention kernel.
    for l in range(L):
        ql = q[l * N:(l + 1) * N, :]                        # (N, E)
        s = []
        for m in range(L):
            km = k[m * N:(m + 1) * N, :]
            prod = (ql * km).astype(jnp.bfloat16)
            s.append(jnp.dot(prod, seg, preferred_element_type=jnp.float32))
        mx = s[0]
        for m in range(1, L):
            mx = jnp.maximum(mx, s[m])
        p = [jnp.exp(sm - mx) for sm in s]                  # (N, nhead) each
        den = p[0]
        for m in range(1, L):
            den = den + p[m]
        inv_den = pl.reciprocal(den, approx=True)           # EUP, ~free
        ol = jnp.zeros((N, E), jnp.float32)
        for m in range(L):
            pm = (p[m] * inv_den).astype(jnp.bfloat16)      # normalized probs
            pe = jnp.dot(pm, segt, preferred_element_type=jnp.float32)  # (N, E)
            ol = ol + pe * v[m * N:(m + 1) * N, :]
        attn_scr[l * N:(l + 1) * N, :] = ol

    # --- out-proj + residual + LayerNorm1 ------------------------------------
    ao = jnp.dot(attn_scr[...].astype(jnp.bfloat16), wo_ref[...],
                 preferred_element_type=jnp.float32) + bo_ref[...]
    h = _layernorm(x + ao, g1_ref[...], be1_ref[...], eps)

    # --- FFN + residual + LayerNorm2   (dropout = identity in eval) ----------
    ff = jnp.dot(h.astype(jnp.bfloat16), w1_ref[...],
                 preferred_element_type=jnp.float32) + c1_ref[...]
    ff = jnp.maximum(ff, 0.0)
    ff = jnp.dot(ff.astype(jnp.bfloat16), w2_ref[...],
                 preferred_element_type=jnp.float32) + c2_ref[...]
    o_ref[...] = _layernorm(h + ff, g2_ref[...], be2_ref[...], eps)


def _full_spec(a):
    return pl.BlockSpec(a.shape, lambda *_, nd=a.ndim: (0,) * nd)


def transformer_layer(x2d, p, L, N):
    """One post-norm nn.TransformerEncoderLayer (eval) as one pallas_call.

    x2d: (L*N, E) with rows ordered (l, n); returns the same shape/layout.
    """
    T, E = x2d.shape
    nhead = p["nhead"]
    Dh = E // nhead
    F = p["lin1_w"].shape[0]
    bf, f32 = jnp.bfloat16, jnp.float32

    ipw, ipb = p["in_proj_w"], p["in_proj_b"]
    wq = ipw[:E, :].T.astype(bf)
    wk = ipw[E:2 * E, :].T.astype(bf)
    wv = ipw[2 * E:, :].T.astype(bf)
    bq = ipb[:E].reshape(1, E).astype(f32)
    bk = ipb[E:2 * E].reshape(1, E).astype(f32)
    bv = ipb[2 * E:].reshape(1, E).astype(f32)
    wo = p["out_proj_w"].T.astype(bf)
    bo = p["out_proj_b"].reshape(1, E).astype(f32)
    g1 = p["ln1_g"].reshape(1, E).astype(f32)
    be1 = p["ln1_b"].reshape(1, E).astype(f32)
    w1 = p["lin1_w"].T.astype(bf)                        # (E, F)
    c1 = p["lin1_b"].reshape(1, F).astype(f32)
    w2 = p["lin2_w"].T.astype(bf)                        # (F, E)
    c2 = p["lin2_b"].reshape(1, E).astype(f32)
    g2 = p["ln2_g"].reshape(1, E).astype(f32)
    be2 = p["ln2_b"].reshape(1, E).astype(f32)
    seg = jnp.repeat(jnp.eye(nhead, dtype=f32), Dh, axis=0).astype(bf)  # (E, H)
    segt = seg.T                                                        # (H, E)

    args = (x2d.astype(f32), wq, wk, wv, bq, bk, bv, wo, bo, g1, be1,
            w1, c1, w2, c2, g2, be2, seg, segt)
    return pl.pallas_call(
        functools.partial(_encoder_layer_kernel, L=L, N=N, nhead=nhead, eps=1e-5),
        grid=(1,),
        in_specs=[_full_spec(a) for a in args],
        out_specs=pl.BlockSpec((T, E), lambda i: (0, 0)),
        out_shape=jax.ShapeDtypeStruct((T, E), jnp.float32),
        scratch_shapes=[pltpu.VMEM((T, E), jnp.float32)],
        compiler_params=pltpu.CompilerParams(
            dimension_semantics=("arbitrary",),
            vmem_limit_bytes=32 * 1024 * 1024),
    )(*args)


# ---------------------------------------------------------------------------
# Full Bottleneck forward
# ---------------------------------------------------------------------------
def bottleneck_forward(x, p):
    B, _, H, W = x.shape
    x1 = conv1x1_bn_relu(x, p["conv1_w"], p["conv1_b"],
                         p["bn1_g"], p["bn1_b"], p["bn1_rm"], p["bn1_rv"])
    _, C, HW = x1.shape
    assert HW == p["dim"], "TransformerEncoder d_model must equal H*W"
    # (B, C, H*W) -> (seq*batch, d_model): rows are already ordered (b, c) =
    # (l, n), so this is a free reshape (no transposes anywhere).
    xt = x1.reshape(B * C, HW)
    for lp in p["layers"]:
        xt = transformer_layer(xt, lp, L=B, N=C)
    x2 = xt.reshape(B, C, HW)
    return conv3x3_bn_relu(x2, H, W, p["conv2_w"], p["conv2_b"],
                           p["bn2_g"], p["bn2_b"], p["bn2_rm"], p["bn2_rv"])


# ---------------------------------------------------------------------------
# Deterministic parameter initialization (shapes from the PyTorch __init__)
# ---------------------------------------------------------------------------
def init_params(key, in_c, out_c, dim, num_layers=2, dim_ff=2048, nhead=8):
    keys = iter(jax.random.split(key, 64))

    def rn(shape, s=0.05):
        return jax.random.normal(next(keys), shape, jnp.float32) * s

    p = {"dim": dim}
    p["conv1_w"] = rn((out_c, in_c, 1, 1), 0.2)
    p["conv1_b"] = rn((out_c,), 0.1)
    p["bn1_g"] = 1.0 + rn((out_c,), 0.05)
    p["bn1_b"] = rn((out_c,), 0.05)
    p["bn1_rm"] = rn((out_c,), 0.05)
    p["bn1_rv"] = 1.0 + jnp.abs(rn((out_c,), 0.05))

    layers = []
    for _ in range(num_layers):
        layers.append(dict(
            nhead=nhead,
            in_proj_w=rn((3 * dim, dim), 0.05),
            in_proj_b=rn((3 * dim,), 0.02),
            out_proj_w=rn((dim, dim), 0.05),
            out_proj_b=rn((dim,), 0.02),
            ln1_g=1.0 + rn((dim,), 0.02),
            ln1_b=rn((dim,), 0.02),
            lin1_w=rn((dim_ff, dim), 0.05),
            lin1_b=rn((dim_ff,), 0.02),
            lin2_w=rn((dim, dim_ff), 0.05),
            lin2_b=rn((dim,), 0.02),
            ln2_g=1.0 + rn((dim,), 0.02),
            ln2_b=rn((dim,), 0.02),
        ))
    p["layers"] = layers

    p["conv2_w"] = rn((out_c, out_c, 3, 3), 0.1)
    p["conv2_b"] = rn((out_c,), 0.05)
    p["bn2_g"] = 1.0 + rn((out_c,), 0.05)
    p["bn2_b"] = rn((out_c,), 0.05)
    p["bn2_rm"] = rn((out_c,), 0.05)
    p["bn2_rv"] = 1.0 + jnp.abs(rn((out_c,), 0.05))
    return p


# ---------------------------------------------------------------------------

if __name__ == "__main__":
    key = jax.random.PRNGKey(0)
    kx, kp = jax.random.split(key)

    B, IN_C, OUT_C, H, W = 2, 4, 8, 16, 16
    DIM = H * W                       # d_model of the transformer = H*W

    x = jax.random.normal(kx, (B, IN_C, H, W), jnp.float32)
    params = init_params(kp, IN_C, OUT_C, DIM, num_layers=2)

    y = jax.jit(lambda xx: bottleneck_forward(xx, params))(x)
    y = jax.block_until_ready(y)

    assert y.shape == (B, OUT_C, H, W)
    assert bool(jnp.all(jnp.isfinite(y)))
    print("KERNEL_OK")
</pallas_src>

<mosaic_0001>
module attributes {stable_mosaic.version = 11 : i64} {
  func.func @_encoder_layer_kernel(%arg0: i32, %arg1: memref<16x256xf32, #tpu.memory_space<vmem>>, %arg2: memref<256x256xbf16, #tpu.memory_space<vmem>>, %arg3: memref<256x256xbf16, #tpu.memory_space<vmem>>, %arg4: memref<256x256xbf16, #tpu.memory_space<vmem>>, %arg5: memref<1x256xf32, #tpu.memory_space<vmem>>, %arg6: memref<1x256xf32, #tpu.memory_space<vmem>>, %arg7: memref<1x256xf32, #tpu.memory_space<vmem>>, %arg8: memref<256x256xbf16, #tpu.memory_space<vmem>>, %arg9: memref<1x256xf32, #tpu.memory_space<vmem>>, %arg10: memref<1x256xf32, #tpu.memory_space<vmem>>, %arg11: memref<1x256xf32, #tpu.memory_space<vmem>>, %arg12: memref<256x2048xbf16, #tpu.memory_space<vmem>>, %arg13: memref<1x2048xf32, #tpu.memory_space<vmem>>, %arg14: memref<2048x256xbf16, #tpu.memory_space<vmem>>, %arg15: memref<1x256xf32, #tpu.memory_space<vmem>>, %arg16: memref<1x256xf32, #tpu.memory_space<vmem>>, %arg17: memref<1x256xf32, #tpu.memory_space<vmem>>, %arg18: memref<256x8xbf16, #tpu.memory_space<vmem>>, %arg19: memref<8x256xbf16, #tpu.memory_space<vmem>>, %arg20: memref<16x256xf32, #tpu.memory_space<vmem>>, %arg21: memref<16x256xf32, #tpu.memory_space<vmem>>) attributes {dimension_semantics = [#tpu.dimension_semantics<arbitrary>], iteration_bounds = array<i64: 1>, scalar_prefetch = 0 : i64, scratch_operands = 1 : i64, tpu.core_type = #tpu.core_type<tc>, window_params = [{pipeline_mode = #tpu.pipeline_mode<synchronous>, transform_indices = @transform_0, window_bounds = array<i64: 16, 256>}, {pipeline_mode = #tpu.pipeline_mode<synchronous>, transform_indices = @transform_1, window_bounds = array<i64: 256, 256>}, {pipeline_mode = #tpu.pipeline_mode<synchronous>, transform_indices = @transform_2, window_bounds = array<i64: 256, 256>}, {pipeline_mode = #tpu.pipeline_mode<synchronous>, transform_indices = @transform_3, window_bounds = array<i64: 256, 256>}, {pipeline_mode = #tpu.pipeline_mode<synchronous>, transform_indices = @transform_4, window_bounds = array<i64: 1, 256>}, {pipeline_mode = #tpu.pipeline_mode<synchronous>, transform_indices = @transform_5, window_bounds = array<i64: 1, 256>}, {pipeline_mode = #tpu.pipeline_mode<synchronous>, transform_indices = @transform_6, window_bounds = array<i64: 1, 256>}, {pipeline_mode = #tpu.pipeline_mode<synchronous>, transform_indices = @transform_7, window_bounds = array<i64: 256, 256>}, {pipeline_mode = #tpu.pipeline_mode<synchronous>, transform_indices = @transform_8, window_bounds = array<i64: 1, 256>}, {pipeline_mode = #tpu.pipeline_mode<synchronous>, transform_indices = @transform_9, window_bounds = array<i64: 1, 256>}, {pipeline_mode = #tpu.pipeline_mode<synchronous>, transform_indices = @transform_10, window_bounds = array<i64: 1, 256>}, {pipeline_mode = #tpu.pipeline_mode<synchronous>, transform_indices = @transform_11, window_bounds = array<i64: 256, 2048>}, {pipeline_mode = #tpu.pipeline_mode<synchronous>, transform_indices = @transform_12, window_bounds = array<i64: 1, 2048>}, {pipeline_mode = #tpu.pipeline_mode<synchronous>, transform_indices = @transform_13, window_bounds = array<i64: 2048, 256>}, {pipeline_mode = #tpu.pipeline_mode<synchronous>, transform_indices = @transform_14, window_bounds = array<i64: 1, 256>}, {pipeline_mode = #tpu.pipeline_mode<synchronous>, transform_indices = @transform_15, window_bounds = array<i64: 1, 256>}, {pipeline_mode = #tpu.pipeline_mode<synchronous>, transform_indices = @transform_16, window_bounds = array<i64: 1, 256>}, {pipeline_mode = #tpu.pipeline_mode<synchronous>, transform_indices = @transform_17, window_bounds = array<i64: 256, 8>}, {pipeline_mode = #tpu.pipeline_mode<synchronous>, transform_indices = @transform_18, window_bounds = array<i64: 8, 256>}, {pipeline_mode = #tpu.pipeline_mode<synchronous>, transform_indices = @transform_19, window_bounds = array<i64: 16, 256>}]} {
    %c0 = arith.constant 0 : index
    %c0_0 = arith.constant 0 : index
    %0 = vector.load %arg1[%c0, %c0_0] : memref<16x256xf32, #tpu.memory_space<vmem>>, vector<16x256xf32>
    %1 = arith.truncf %0 : vector<16x256xf32> to vector<16x256xbf16>
    %c0_1 = arith.constant 0 : index
    %c0_2 = arith.constant 0 : index
    %2 = vector.load %arg2[%c0_1, %c0_2] : memref<256x256xbf16, #tpu.memory_space<vmem>>, vector<256x256xbf16>
    %cst = arith.constant dense<0.000000e+00> : vector<16x256xf32>
    %3 = tpu.matmul %1, %2, %cst {dimension_numbers = #tpu.dot_dimension_numbers<[1], [0], [0], [1], [0, 0, 1, 1], [], []>} : vector<16x256xbf16>, vector<256x256xbf16>, vector<16x256xf32> -> vector<16x256xf32>
    %c0_3 = arith.constant 0 : index
    %c0_4 = arith.constant 0 : index
    %4 = vector.load %arg5[%c0_3, %c0_4] : memref<1x256xf32, #tpu.memory_space<vmem>>, vector<1x256xf32>
    %5 = vector.broadcast %4 : vector<1x256xf32> to vector<16x256xf32>
    %6 = arith.addf %3, %5 : vector<16x256xf32>
    %c0_5 = arith.constant 0 : index
    %c0_6 = arith.constant 0 : index
    %7 = vector.load %arg3[%c0_5, %c0_6] : memref<256x256xbf16, #tpu.memory_space<vmem>>, vector<256x256xbf16>
    %cst_7 = arith.constant dense<0.000000e+00> : vector<16x256xf32>
    %8 = tpu.matmul %1, %7, %cst_7 {dimension_numbers = #tpu.dot_dimension_numbers<[1], [0], [0], [1], [0, 0, 1, 1], [], []>} : vector<16x256xbf16>, vector<256x256xbf16>, vector<16x256xf32> -> vector<16x256xf32>
    %c0_8 = arith.constant 0 : index
    %c0_9 = arith.constant 0 : index
    %9 = vector.load %arg6[%c0_8, %c0_9] : memref<1x256xf32, #tpu.memory_space<vmem>>, vector<1x256xf32>
    %10 = vector.broadcast %9 : vector<1x256xf32> to vector<16x256xf32>
    %11 = arith.addf %8, %10 : vector<16x256xf32>
    %c0_10 = arith.constant 0 : index
    %c0_11 = arith.constant 0 : index
    %12 = vector.load %arg4[%c0_10, %c0_11] : memref<256x256xbf16, #tpu.memory_space<vmem>>, vector<256x256xbf16>
    %cst_12 = arith.constant dense<0.000000e+00> : vector<16x256xf32>
    %13 = tpu.matmul %1, %12, %cst_12 {dimension_numbers = #tpu.dot_dimension_numbers<[1], [0], [0], [1], [0, 0, 1, 1], [], []>} : vector<16x256xbf16>, vector<256x256xbf16>, vector<16x256xf32> -> vector<16x256xf32>
    %c0_13 = arith.constant 0 : index
    %c0_14 = arith.constant 0 : index
    %14 = vector.load %arg7[%c0_13, %c0_14] : memref<1x256xf32, #tpu.memory_space<vmem>>, vector<1x256xf32>
    %15 = vector.broadcast %14 : vector<1x256xf32> to vector<16x256xf32>
    %16 = arith.addf %13, %15 : vector<16x256xf32>
    %cst_15 = arith.constant 0.176776692 : f32
    %17 = vector.broadcast %cst_15 : f32 to vector<16x256xf32>
    %18 = arith.mulf %6, %17 : vector<16x256xf32>
    %c0_16 = arith.constant 0 : index
    %c0_17 = arith.constant 0 : index
    %19 = vector.load %arg18[%c0_16, %c0_17] : memref<256x8xbf16, #tpu.memory_space<vmem>>, vector<256x8xbf16>
    %c0_18 = arith.constant 0 : index
    %c0_19 = arith.constant 0 : index
    %20 = vector.load %arg19[%c0_18, %c0_19] : memref<8x256xbf16, #tpu.memory_space<vmem>>, vector<8x256xbf16>
    %21 = vector.extract_strided_slice %18 {offsets = [0, 0], sizes = [8, 256], strides = [1, 1]} : vector<16x256xf32> to vector<8x256xf32>
    %22 = vector.extract_strided_slice %11 {offsets = [0, 0], sizes = [8, 256], strides = [1, 1]} : vector<16x256xf32> to vector<8x256xf32>
    %23 = arith.mulf %21, %22 : vector<8x256xf32>
    %24 = arith.truncf %23 : vector<8x256xf32> to vector<8x256xbf16>
    %cst_20 = arith.constant dense<0.000000e+00> : vector<8x8xf32>
    %25 = tpu.matmul %24, %19, %cst_20 {dimension_numbers = #tpu.dot_dimension_numbers<[1], [0], [0], [1], [0, 0, 1, 1], [], []>} : vector<8x256xbf16>, vector<256x8xbf16>, vector<8x8xf32> -> vector<8x8xf32>
    %26 = vector.extract_strided_slice %11 {offsets = [8, 0], sizes = [8, 256], strides = [1, 1]} : vector<16x256xf32> to vector<8x256xf32>
    %27 = arith.mulf %21, %26 : vector<8x256xf32>
    %28 = arith.truncf %27 : vector<8x256xf32> to vector<8x256xbf16>
    %cst_21 = arith.constant dense<0.000000e+00> : vector<8x8xf32>
    %29 = tpu.matmul %28, %19, %cst_21 {dimension_numbers = #tpu.dot_dimension_numbers<[1], [0], [0], [1], [0, 0, 1, 1], [], []>} : vector<8x256xbf16>, vector<256x8xbf16>, vector<8x8xf32> -> vector<8x8xf32>
    %30 = arith.maximumf %25, %29 : vector<8x8xf32>
    %31 = arith.subf %25, %30 : vector<8x8xf32>
    %32 = math.exp %31 : vector<8x8xf32>
    %33 = arith.subf %29, %30 : vector<8x8xf32>
    %34 = math.exp %33 : vector<8x8xf32>
    %35 = arith.addf %32, %34 : vector<8x8xf32>
    %36 = tpu.reciprocal %35 {approx = true} : vector<8x8xf32> -> vector<8x8xf32>
    %cst_22 = arith.constant 0.000000e+00 : f32
    %37 = vector.broadcast %cst_22 : f32 to vector<8x256xf32>
    %38 = arith.mulf %32, %36 : vector<8x8xf32>
    %39 = arith.truncf %38 : vector<8x8xf32> to vector<8x8xbf16>
    %cst_23 = arith.constant dense<0.000000e+00> : vector<8x256xf32>
    %40 = tpu.matmul %39, %20, %cst_23 {dimension_numbers = #tpu.dot_dimension_numbers<[1], [0], [0], [1], [0, 0, 1, 1], [], []>} : vector<8x8xbf16>, vector<8x256xbf16>, vector<8x256xf32> -> vector<8x256xf32>
    %41 = vector.extract_strided_slice %16 {offsets = [0, 0], sizes = [8, 256], strides = [1, 1]} : vector<16x256xf32> to vector<8x256xf32>
    %42 = arith.mulf %40, %41 : vector<8x256xf32>
    %43 = arith.addf %37, %42 : vector<8x256xf32>
    %44 = arith.mulf %34, %36 : vector<8x8xf32>
    %45 = arith.truncf %44 : vector<8x8xf32> to vector<8x8xbf16>
    %cst_24 = arith.constant dense<0.000000e+00> : vector<8x256xf32>
    %46 = tpu.matmul %45, %20, %cst_24 {dimension_numbers = #tpu.dot_dimension_numbers<[1], [0], [0], [1], [0, 0, 1, 1], [], []>} : vector<8x8xbf16>, vector<8x256xbf16>, vector<8x256xf32> -> vector<8x256xf32>
    %47 = vector.extract_strided_slice %16 {offsets = [8, 0], sizes = [8, 256], strides = [1, 1]} : vector<16x256xf32> to vector<8x256xf32>
    %48 = arith.mulf %46, %47 : vector<8x256xf32>
    %49 = arith.addf %43, %48 : vector<8x256xf32>
    %c0_25 = arith.constant 0 : index
    %c0_26 = arith.constant 0 : index
    %50 = vector.load %arg21[%c0_25, %c0_26] : memref<16x256xf32, #tpu.memory_space<vmem>>, vector<8x256xf32>
    tpu.vector_store %arg21[%c0_25, %c0_26], %49 {strides = array<i32>} : memref<16x256xf32, #tpu.memory_space<vmem>>, vector<8x256xf32>,
    %51 = vector.extract_strided_slice %18 {offsets = [8, 0], sizes = [8, 256], strides = [1, 1]} : vector<16x256xf32> to vector<8x256xf32>
    %52 = vector.extract_strided_slice %11 {offsets = [0, 0], sizes = [8, 256], strides = [1, 1]} : vector<16x256xf32> to vector<8x256xf32>
    %53 = arith.mulf %51, %52 : vector<8x256xf32>
    %54 = arith.truncf %53 : vector<8x256xf32> to vector<8x256xbf16>
    %cst_27 = arith.constant dense<0.000000e+00> : vector<8x8xf32>
    %55 = tpu.matmul %54, %19, %cst_27 {dimension_numbers = #tpu.dot_dimension_numbers<[1], [0], [0], [1], [0, 0, 1, 1], [], []>} : vector<8x256xbf16>, vector<256x8xbf16>, vector<8x8xf32> -> vector<8x8xf32>
    %56 = vector.extract_strided_slice %11 {offsets = [8, 0], sizes = [8, 256], strides = [1, 1]} : vector<16x256xf32> to vector<8x256xf32>
    %57 = arith.mulf %51, %56 : vector<8x256xf32>
    %58 = arith.truncf %57 : vector<8x256xf32> to vector<8x256xbf16>
    %cst_28 = arith.constant dense<0.000000e+00> : vector<8x8xf32>
    %59 = tpu.matmul %58, %19, %cst_28 {dimension_numbers = #tpu.dot_dimension_numbers<[1], [0], [0], [1], [0, 0, 1, 1], [], []>} : vector<8x256xbf16>, vector<256x8xbf16>, vector<8x8xf32> -> vector<8x8xf32>
    %60 = arith.maximumf %55, %59 : vector<8x8xf32>
    %61 = arith.subf %55, %60 : vector<8x8xf32>
    %62 = math.exp %61 : vector<8x8xf32>
    %63 = arith.subf %59, %60 : vector<8x8xf32>
    %64 = math.exp %63 : vector<8x8xf32>
    %65 = arith.addf %62, %64 : vector<8x8xf32>
    %66 = tpu.reciprocal %65 {approx = true} : vector<8x8xf32> -> vector<8x8xf32>
    %cst_29 = arith.constant 0.000000e+00 : f32
    %67 = vector.broadcast %cst_29 : f32 to vector<8x256xf32>
    %68 = arith.mulf %62, %66 : vector<8x8xf32>
    %69 = arith.truncf %68 : vector<8x8xf32> to vector<8x8xbf16>
    %cst_30 = arith.constant dense<0.000000e+00> : vector<8x256xf32>
    %70 = tpu.matmul %69, %20, %cst_30 {dimension_numbers = #tpu.dot_dimension_numbers<[1], [0], [0], [1], [0, 0, 1, 1], [], []>} : vector<8x8xbf16>, vector<8x256xbf16>, vector<8x256xf32> -> vector<8x256xf32>
    %71 = vector.extract_strided_slice %16 {offsets = [0, 0], sizes = [8, 256], strides = [1, 1]} : vector<16x256xf32> to vector<8x256xf32>
    %72 = arith.mulf %70, %71 : vector<8x256xf32>
    %73 = arith.addf %67, %72 : vector<8x256xf32>
    %74 = arith.mulf %64, %66 : vector<8x8xf32>
    %75 = arith.truncf %74 : vector<8x8xf32> to vector<8x8xbf16>
    %cst_31 = arith.constant dense<0.000000e+00> : vector<8x256xf32>
    %76 = tpu.matmul %75, %20, %cst_31 {dimension_numbers = #tpu.dot_dimension_numbers<[1], [0], [0], [1], [0, 0, 1, 1], [], []>} : vector<8x8xbf16>, vector<8x256xbf16>, vector<8x256xf32> -> vector<8x256xf32>
    %77 = vector.extract_strided_slice %16 {offsets = [8, 0], sizes = [8, 256], strides = [1, 1]} : vector<16x256xf32> to vector<8x256xf32>
    %78 = arith.mulf %76, %77 : vector<8x256xf32>
    %79 = arith.addf %73, %78 : vector<8x256xf32>
    %c8 = arith.constant 8 : index
    %c0_32 = arith.constant 0 : index
    %80 = vector.load %arg21[%c8, %c0_32] : memref<16x256xf32, #tpu.memory_space<vmem>>, vector<8x256xf32>
    tpu.vector_store %arg21[%c8, %c0_32], %79 {strides = array<i32>} : memref<16x256xf32, #tpu.memory_space<vmem>>, vector<8x256xf32>,
    %c0_33 = arith.constant 0 : index
    %c0_34 = arith.constant 0 : index
    %81 = vector.load %arg21[%c0_33, %c0_34] : memref<16x256xf32, #tpu.memory_space<vmem>>, vector<16x256xf32>
    %82 = arith.truncf %81 : vector<16x256xf32> to vector<16x256xbf16>
    %c0_35 = arith.constant 0 : index
    %c0_36 = arith.constant 0 : index
    %83 = vector.load %arg8[%c0_35, %c0_36] : memref<256x256xbf16, #tpu.memory_space<vmem>>, vector<256x256xbf16>
    %cst_37 = arith.constant dense<0.000000e+00> : vector<16x256xf32>
    %84 = tpu.matmul %82, %83, %cst_37 {dimension_numbers = #tpu.dot_dimension_numbers<[1], [0], [0], [1], [0, 0, 1, 1], [], []>} : vector<16x256xbf16>, vector<256x256xbf16>, vector<16x256xf32> -> vector<16x256xf32>
    %c0_38 = arith.constant 0 : index
    %c0_39 = arith.constant 0 : index
    %85 = vector.load %arg9[%c0_38, %c0_39] : memref<1x256xf32, #tpu.memory_space<vmem>>, vector<1x256xf32>
    %86 = vector.broadcast %85 : vector<1x256xf32> to vector<16x256xf32>
    %87 = arith.addf %84, %86 : vector<16x256xf32>
    %88 = arith.addf %0, %87 : vector<16x256xf32>
    %c0_40 = arith.constant 0 : index
    %c0_41 = arith.constant 0 : index
    %89 = vector.load %arg10[%c0_40, %c0_41] : memref<1x256xf32, #tpu.memory_space<vmem>>, vector<1x256xf32>
    %c0_42 = arith.constant 0 : index
    %c0_43 = arith.constant 0 : index
    %90 = vector.load %arg11[%c0_42, %c0_43] : memref<1x256xf32, #tpu.memory_space<vmem>>, vector<1x256xf32>
    %cst_44 = arith.constant dense<0.000000e+00> : vector<16xf32>
    %91 = vector.multi_reduction <add>, %88, %cst_44 [1] : vector<16x256xf32> to vector<16xf32>
    %92 = vector.shape_cast %91 : vector<16xf32> to vector<16x1xf32>
    %cst_45 = arith.constant 2.560000e+02 : f32
    %93 = vector.broadcast %cst_45 : f32 to vector<16x1xf32>
    %94 = arith.divf %92, %93 : vector<16x1xf32>
    %95 = vector.broadcast %94 : vector<16x1xf32> to vector<16x256xf32>
    %96 = arith.subf %88, %95 : vector<16x256xf32>
    %97 = arith.mulf %96, %96 : vector<16x256xf32>
    %cst_46 = arith.constant dense<0.000000e+00> : vector<16xf32>
    %98 = vector.multi_reduction <add>, %97, %cst_46 [1] : vector<16x256xf32> to vector<16xf32>
    %99 = vector.shape_cast %98 : vector<16xf32> to vector<16x1xf32>
    %cst_47 = arith.constant 2.560000e+02 : f32
    %100 = vector.broadcast %cst_47 : f32 to vector<16x1xf32>
    %101 = arith.divf %99, %100 : vector<16x1xf32>
    %cst_48 = arith.constant 9.99999974E-6 : f32
    %102 = vector.broadcast %cst_48 : f32 to vector<16x1xf32>
    %103 = arith.addf %101, %102 : vector<16x1xf32>
    %104 = math.rsqrt %103 : vector<16x1xf32>
    %105 = vector.broadcast %104 : vector<16x1xf32> to vector<16x256xf32>
    %106 = arith.mulf %96, %105 : vector<16x256xf32>
    %107 = vector.broadcast %89 : vector<1x256xf32> to vector<16x256xf32>
    %108 = arith.mulf %106, %107 : vector<16x256xf32>
    %109 = vector.broadcast %90 : vector<1x256xf32> to vector<16x256xf32>
    %110 = arith.addf %108, %109 : vector<16x256xf32>
    %111 = arith.truncf %110 : vector<16x256xf32> to vector<16x256xbf16>
    %c0_49 = arith.constant 0 : index
    %c0_50 = arith.constant 0 : index
    %112 = vector.load %arg12[%c0_49, %c0_50] : memref<256x2048xbf16, #tpu.memory_space<vmem>>, vector<256x2048xbf16>
    %cst_51 = arith.constant dense<0.000000e+00> : vector<16x2048xf32>
    %113 = tpu.matmul %111, %112, %cst_51 {dimension_numbers = #tpu.dot_dimension_numbers<[1], [0], [0], [1], [0, 0, 1, 1], [], []>} : vector<16x256xbf16>, vector<256x2048xbf16>, vector<16x2048xf32> -> vector<16x2048xf32>
    %c0_52 = arith.constant 0 : index
    %c0_53 = arith.constant 0 : index
    %114 = vector.load %arg13[%c0_52, %c0_53] : memref<1x2048xf32, #tpu.memory_space<vmem>>, vector<1x2048xf32>
    %115 = vector.broadcast %114 : vector<1x2048xf32> to vector<16x2048xf32>
    %116 = arith.addf %113, %115 : vector<16x2048xf32>
    %cst_54 = arith.constant 0.000000e+00 : f32
    %117 = vector.broadcast %cst_54 : f32 to vector<16x2048xf32>
    %118 = arith.maximumf %116, %117 : vector<16x2048xf32>
    %119 = arith.truncf %118 : vector<16x2048xf32> to vector<16x2048xbf16>
    %c0_55 = arith.constant 0 : index
    %c0_56 = arith.constant 0 : index
    %120 = vector.load %arg14[%c0_55, %c0_56] : memref<2048x256xbf16, #tpu.memory_space<vmem>>, vector<2048x256xbf16>
    %cst_57 = arith.constant dense<0.000000e+00> : vector<16x256xf32>
    %121 = tpu.matmul %119, %120, %cst_57 {dimension_numbers = #tpu.dot_dimension_numbers<[1], [0], [0], [1], [0, 0, 1, 1], [], []>} : vector<16x2048xbf16>, vector<2048x256xbf16>, vector<16x256xf32> -> vector<16x256xf32>
    %c0_58 = arith.constant 0 : index
    %c0_59 = arith.constant 0 : index
    %122 = vector.load %arg15[%c0_58, %c0_59] : memref<1x256xf32, #tpu.memory_space<vmem>>, vector<1x256xf32>
    %123 = vector.broadcast %122 : vector<1x256xf32> to vector<16x256xf32>
    %124 = arith.addf %121, %123 : vector<16x256xf32>
    %125 = arith.addf %110, %124 : vector<16x256xf32>
    %c0_60 = arith.constant 0 : index
    %c0_61 = arith.constant 0 : index
    %126 = vector.load %arg16[%c0_60, %c0_61] : memref<1x256xf32, #tpu.memory_space<vmem>>, vector<1x256xf32>
    %c0_62 = arith.constant 0 : index
    %c0_63 = arith.constant 0 : index
    %127 = vector.load %arg17[%c0_62, %c0_63] : memref<1x256xf32, #tpu.memory_space<vmem>>, vector<1x256xf32>
    %cst_64 = arith.constant dense<0.000000e+00> : vector<16xf32>
    %128 = vector.multi_reduction <add>, %125, %cst_64 [1] : vector<16x256xf32> to vector<16xf32>
    %129 = vector.shape_cast %128 : vector<16xf32> to vector<16x1xf32>
    %cst_65 = arith.constant 2.560000e+02 : f32
    %130 = vector.broadcast %cst_65 : f32 to vector<16x1xf32>
    %131 = arith.divf %129, %130 : vector<16x1xf32>
    %132 = vector.broadcast %131 : vector<16x1xf32> to vector<16x256xf32>
    %133 = arith.subf %125, %132 : vector<16x256xf32>
    %134 = arith.mulf %133, %133 : vector<16x256xf32>
    %cst_66 = arith.constant dense<0.000000e+00> : vector<16xf32>
    %135 = vector.multi_reduction <add>, %134, %cst_66 [1] : vector<16x256xf32> to vector<16xf32>
    %136 = vector.shape_cast %135 : vector<16xf32> to vector<16x1xf32>
    %cst_67 = arith.constant 2.560000e+02 : f32
    %137 = vector.broadcast %cst_67 : f32 to vector<16x1xf32>
    %138 = arith.divf %136, %137 : vector<16x1xf32>
    %cst_68 = arith.constant 9.99999974E-6 : f32
    %139 = vector.broadcast %cst_68 : f32 to vector<16x1xf32>
    %140 = arith.addf %138, %139 : vector<16x1xf32>
    %141 = math.rsqrt %140 : vector<16x1xf32>
    %142 = vector.broadcast %141 : vector<16x1xf32> to vector<16x256xf32>
    %143 = arith.mulf %133, %142 : vector<16x256xf32>
    %144 = vector.broadcast %126 : vector<1x256xf32> to vector<16x256xf32>
    %145 = arith.mulf %143, %144 : vector<16x256xf32>
    %146 = vector.broadcast %127 : vector<1x256xf32> to vector<16x256xf32>
    %147 = arith.addf %145, %146 : vector<16x256xf32>
    %c0_69 = arith.constant 0 : index
    %c0_70 = arith.constant 0 : index
    %148 = vector.load %arg20[%c0_69, %c0_70] : memref<16x256xf32, #tpu.memory_space<vmem>>, vector<16x256xf32>
    tpu.vector_store %arg20[%c0_69, %c0_70], %147 {strides = array<i32>} : memref<16x256xf32, #tpu.memory_space<vmem>>, vector<16x256xf32>,
    return
  }
  func.func @transform_0(%arg0: i32) -> (i32, i32) {
    %c0_i32 = arith.constant 0 : i32
    %c0_i32_0 = arith.constant 0 : i32
    %c0_i32_1 = arith.constant 0 : i32
    return %c0_i32, %c0_i32_0 : i32, i32
  }
  func.func @transform_1(%arg0: i32) -> (i32, i32) {
    %c0_i32 = arith.constant 0 : i32
    %c0_i32_0 = arith.constant 0 : i32
    %c0_i32_1 = arith.constant 0 : i32
    return %c0_i32, %c0_i32_0 : i32, i32
  }
  func.func @transform_2(%arg0: i32) -> (i32, i32) {
    %c0_i32 = arith.constant 0 : i32
    %c0_i32_0 = arith.constant 0 : i32
    %c0_i32_1 = arith.constant 0 : i32
    return %c0_i32, %c0_i32_0 : i32, i32
  }
  func.func @transform_3(%arg0: i32) -> (i32, i32) {
    %c0_i32 = arith.constant 0 : i32
    %c0_i32_0 = arith.constant 0 : i32
    %c0_i32_1 = arith.constant 0 : i32
    return %c0_i32, %c0_i32_0 : i32, i32
  }
  func.func @transform_4(%arg0: i32) -> (i32, i32) {
    %c0_i32 = arith.constant 0 : i32
    %c0_i32_0 = arith.constant 0 : i32
    %c0_i32_1 = arith.constant 0 : i32
    return %c0_i32, %c0_i32_0 : i32, i32
  }
  func.func @transform_5(%arg0: i32) -> (i32, i32) {
    %c0_i32 = arith.constant 0 : i32
    %c0_i32_0 = arith.constant 0 : i32
    %c0_i32_1 = arith.constant 0 : i32
    return %c0_i32, %c0_i32_0 : i32, i32
  }
  func.func @transform_6(%arg0: i32) -> (i32, i32) {
    %c0_i32 = arith.constant 0 : i32
    %c0_i32_0 = arith.constant 0 : i32
    %c0_i32_1 = arith.constant 0 : i32
    return %c0_i32, %c0_i32_0 : i32, i32
  }
  func.func @transform_7(%arg0: i32) -> (i32, i32) {
    %c0_i32 = arith.constant 0 : i32
    %c0_i32_0 = arith.constant 0 : i32
    %c0_i32_1 = arith.constant 0 : i32
    return %c0_i32, %c0_i32_0 : i32, i32
  }
  func.func @transform_8(%arg0: i32) -> (i32, i32) {
    %c0_i32 = arith.constant 0 : i32
    %c0_i32_0 = arith.constant 0 : i32
    %c0_i32_1 = arith.constant 0 : i32
    return %c0_i32, %c0_i32_0 : i32, i32
  }
  func.func @transform_9(%arg0: i32) -> (i32, i32) {
    %c0_i32 = arith.constant 0 : i32
    %c0_i32_0 = arith.constant 0 : i32
    %c0_i32_1 = arith.constant 0 : i32
    return %c0_i32, %c0_i32_0 : i32, i32
  }
  func.func @transform_10(%arg0: i32) -> (i32, i32) {
    %c0_i32 = arith.constant 0 : i32
    %c0_i32_0 = arith.constant 0 : i32
    %c0_i32_1 = arith.constant 0 : i32
    return %c0_i32, %c0_i32_0 : i32, i32
  }
  func.func @transform_11(%arg0: i32) -> (i32, i32) {
    %c0_i32 = arith.constant 0 : i32
    %c0_i32_0 = arith.constant 0 : i32
    %c0_i32_1 = arith.constant 0 : i32
    return %c0_i32, %c0_i32_0 : i32, i32
  }
  func.func @transform_12(%arg0: i32) -> (i32, i32) {
    %c0_i32 = arith.constant 0 : i32
    %c0_i32_0 = arith.constant 0 : i32
    %c0_i32_1 = arith.constant 0 : i32
    return %c0_i32, %c0_i32_0 : i32, i32
  }
  func.func @transform_13(%arg0: i32) -> (i32, i32) {
    %c0_i32 = arith.constant 0 : i32
    %c0_i32_0 = arith.constant 0 : i32
    %c0_i32_1 = arith.constant 0 : i32
    return %c0_i32, %c0_i32_0 : i32, i32
  }
  func.func @transform_14(%arg0: i32) -> (i32, i32) {
    %c0_i32 = arith.constant 0 : i32
    %c0_i32_0 = arith.constant 0 : i32
    %c0_i32_1 = arith.constant 0 : i32
    return %c0_i32, %c0_i32_0 : i32, i32
  }
  func.func @transform_15(%arg0: i32) -> (i32, i32) {
    %c0_i32 = arith.constant 0 : i32
    %c0_i32_0 = arith.constant 0 : i32
    %c0_i32_1 = arith.constant 0 : i32
    return %c0_i32, %c0_i32_0 : i32, i32
  }
  func.func @transform_16(%arg0: i32) -> (i32, i32) {
    %c0_i32 = arith.constant 0 : i32
    %c0_i32_0 = arith.constant 0 : i32
    %c0_i32_1 = arith.constant 0 : i32
    return %c0_i32, %c0_i32_0 : i32, i32
  }
  func.func @transform_17(%arg0: i32) -> (i32, i32) {
    %c0_i32 = arith.constant 0 : i32
    %c0_i32_0 = arith.constant 0 : i32
    %c0_i32_1 = arith.constant 0 : i32
    return %c0_i32, %c0_i32_0 : i32, i32
  }
  func.func @transform_18(%arg0: i32) -> (i32, i32) {
    %c0_i32 = arith.constant 0 : i32
    %c0_i32_0 = arith.constant 0 : i32
    %c0_i32_1 = arith.constant 0 : i32
    return %c0_i32, %c0_i32_0 : i32, i32
  }
  func.func @transform_19(%arg0: i32) -> (i32, i32) {
    %c0_i32 = arith.constant 0 : i32
    %c0_i32_0 = arith.constant 0 : i32
    %c0_i32_1 = arith.constant 0 : i32
    return %c0_i32, %c0_i32_0 : i32, i32
  }
}

module attributes {stable_mosaic.version = 11 : i64} {
  func.func @_conv1x1_bn_relu_kernel(%arg0: i32, %arg1: memref<1x4x256xf32, #tpu.memory_space<vmem>>, %arg2: memref<8x4xbf16, #tpu.memory_space<vmem>>, %arg3: memref<8x1xf32, #tpu.memory_space<vmem>>, %arg4: memref<8x1xf32, #tpu.memory_space<vmem>>, %arg5: memref<1x8x256xf32, #tpu.memory_space<vmem>>) attributes {dimension_semantics = [#tpu.dimension_semantics<parallel>], iteration_bounds = array<i64: 2>, scalar_prefetch = 0 : i64, scratch_operands = 0 : i64, tpu.core_type = #tpu.core_type<tc>, window_params = [{transform_indices = @transform_0, window_bounds = array<i64: 1, 4, 256>}, {pipeline_mode = #tpu.pipeline_mode<synchronous>, transform_indices = @transform_1, window_bounds = array<i64: 8, 4>}, {pipeline_mode = #tpu.pipeline_mode<synchronous>, transform_indices = @transform_2, window_bounds = array<i64: 8, 1>}, {pipeline_mode = #tpu.pipeline_mode<synchronous>, transform_indices = @transform_3, window_bounds = array<i64: 8, 1>}, {transform_indices = @transform_4, window_bounds = array<i64: 1, 8, 256>}]} {
    %c0 = arith.constant 0 : index
    %c0_0 = arith.constant 0 : index
    %c0_1 = arith.constant 0 : index
    %0 = vector.load %arg1[%c0, %c0_0, %c0_1] : memref<1x4x256xf32, #tpu.memory_space<vmem>>, vector<1x4x256xf32>
    %1 = vector.shape_cast %0 : vector<1x4x256xf32> to vector<4x256xf32>
    %2 = arith.truncf %1 : vector<4x256xf32> to vector<4x256xbf16>
    %c0_2 = arith.constant 0 : index
    %c0_3 = arith.constant 0 : index
    %3 = vector.load %arg2[%c0_2, %c0_3] : memref<8x4xbf16, #tpu.memory_space<vmem>>, vector<8x4xbf16>
    %cst = arith.constant dense<0.000000e+00> : vector<8x256xf32>
    %4 = tpu.matmul %3, %2, %cst {dimension_numbers = #tpu.dot_dimension_numbers<[1], [0], [0], [1], [0, 0, 1, 1], [], []>} : vector<8x4xbf16>, vector<4x256xbf16>, vector<8x256xf32> -> vector<8x256xf32>
    %c0_4 = arith.constant 0 : index
    %c0_5 = arith.constant 0 : index
    %5 = vector.load %arg3[%c0_4, %c0_5] : memref<8x1xf32, #tpu.memory_space<vmem>>, vector<8x1xf32>
    %6 = vector.broadcast %5 : vector<8x1xf32> to vector<8x256xf32>
    %7 = arith.mulf %4, %6 : vector<8x256xf32>
    %c0_6 = arith.constant 0 : index
    %c0_7 = arith.constant 0 : index
    %8 = vector.load %arg4[%c0_6, %c0_7] : memref<8x1xf32, #tpu.memory_space<vmem>>, vector<8x1xf32>
    %9 = vector.broadcast %8 : vector<8x1xf32> to vector<8x256xf32>
    %10 = arith.addf %7, %9 : vector<8x256xf32>
    %cst_8 = arith.constant 0.000000e+00 : f32
    %11 = vector.broadcast %cst_8 : f32 to vector<8x256xf32>
    %12 = arith.maximumf %10, %11 : vector<8x256xf32>
    %c0_9 = arith.constant 0 : index
    %c0_10 = arith.constant 0 : index
    %c0_11 = arith.constant 0 : index
    %13 = vector.load %arg5[%c0_9, %c0_10, %c0_11] : memref<1x8x256xf32, #tpu.memory_space<vmem>>, vector<1x8x256xf32>
    %14 = vector.shape_cast %13 : vector<1x8x256xf32> to vector<8x256xf32>
    %15 = vector.shape_cast %12 : vector<8x256xf32> to vector<1x8x256xf32>
    tpu.vector_store %arg5[%c0_9, %c0_10, %c0_11], %15 {strides = array<i32>} : memref<1x8x256xf32, #tpu.memory_space<vmem>>, vector<1x8x256xf32>,
    return
  }
  func.func @transform_0(%arg0: i32) -> (i32, i32, i32) {
    %c0_i32 = arith.constant 0 : i32
    %c0_i32_0 = arith.constant 0 : i32
    %c0_i32_1 = arith.constant 0 : i32
    return %arg0, %c0_i32, %c0_i32_0 : i32, i32, i32
  }
  func.func @transform_1(%arg0: i32) -> (i32, i32) {
    %c0_i32 = arith.constant 0 : i32
    %c0_i32_0 = arith.constant 0 : i32
    %c0_i32_1 = arith.constant 0 : i32
    return %c0_i32, %c0_i32_0 : i32, i32
  }
  func.func @transform_2(%arg0: i32) -> (i32, i32) {
    %c0_i32 = arith.constant 0 : i32
    %c0_i32_0 = arith.constant 0 : i32
    %c0_i32_1 = arith.constant 0 : i32
    return %c0_i32, %c0_i32_0 : i32, i32
  }
  func.func @transform_3(%arg0: i32) -> (i32, i32) {
    %c0_i32 = arith.constant 0 : i32
    %c0_i32_0 = arith.constant 0 : i32
    %c0_i32_1 = arith.constant 0 : i32
    return %c0_i32, %c0_i32_0 : i32, i32
  }
  func.func @transform_4(%arg0: i32) -> (i32, i32, i32) {
    %c0_i32 = arith.constant 0 : i32
    %c0_i32_0 = arith.constant 0 : i32
    %c0_i32_1 = arith.constant 0 : i32
    return %arg0, %c0_i32, %c0_i32_0 : i32, i32, i32
  }
}

module attributes {stable_mosaic.version = 11 : i64} {
  func.func @_conv3x3_bn_relu_kernel(%arg0: i32, %arg1: memref<1x8x342xf32, #tpu.memory_space<vmem>>, %arg2: memref<9x8x8xbf16, #tpu.memory_space<vmem>>, %arg3: memref<8x1xf32, #tpu.memory_space<vmem>>, %arg4: memref<8x1xf32, #tpu.memory_space<vmem>>, %arg5: memref<1x8x288xf32, #tpu.memory_space<vmem>>) attributes {dimension_semantics = [#tpu.dimension_semantics<parallel>], iteration_bounds = array<i64: 2>, scalar_prefetch = 0 : i64, scratch_operands = 0 : i64, tpu.core_type = #tpu.core_type<tc>, window_params = [{transform_indices = @transform_0, window_bounds = array<i64: 1, 8, 342>}, {pipeline_mode = #tpu.pipeline_mode<synchronous>, transform_indices = @transform_1, window_bounds = array<i64: 9, 8, 8>}, {pipeline_mode = #tpu.pipeline_mode<synchronous>, transform_indices = @transform_2, window_bounds = array<i64: 8, 1>}, {pipeline_mode = #tpu.pipeline_mode<synchronous>, transform_indices = @transform_3, window_bounds = array<i64: 8, 1>}, {transform_indices = @transform_4, window_bounds = array<i64: 1, 8, 288>}]} {
    %cst = arith.constant 0.000000e+00 : f32
    %0 = vector.broadcast %cst : f32 to vector<8x288xf32>
    %c0 = arith.constant 0 : index
    %c0_0 = arith.constant 0 : index
    %c0_1 = arith.constant 0 : index
    %1 = vector.load %arg1[%c0, %c0_0, %c0_1] : memref<1x8x342xf32, #tpu.memory_space<vmem>>, vector<1x8x288xf32>
    %2 = vector.shape_cast %1 : vector<1x8x288xf32> to vector<8x288xf32>
    %3 = arith.truncf %2 : vector<8x288xf32> to vector<8x288xbf16>
    %c0_2 = arith.constant 0 : index
    %c0_3 = arith.constant 0 : index
    %c0_4 = arith.constant 0 : index
    %4 = vector.load %arg2[%c0_2, %c0_3, %c0_4] : memref<9x8x8xbf16, #tpu.memory_space<vmem>>, vector<1x8x8xbf16>
    %5 = vector.shape_cast %4 : vector<1x8x8xbf16> to vector<8x8xbf16>
    %cst_5 = arith.constant dense<0.000000e+00> : vector<8x288xf32>
    %6 = tpu.matmul %5, %3, %cst_5 {dimension_numbers = #tpu.dot_dimension_numbers<[1], [0], [0], [1], [0, 0, 1, 1], [], []>} : vector<8x8xbf16>, vector<8x288xbf16>, vector<8x288xf32> -> vector<8x288xf32>
    %7 = arith.addf %0, %6 : vector<8x288xf32>
    %c0_6 = arith.constant 0 : index
    %c0_7 = arith.constant 0 : index
    %c1 = arith.constant 1 : index
    %8 = vector.load %arg1[%c0_6, %c0_7, %c1] : memref<1x8x342xf32, #tpu.memory_space<vmem>>, vector<1x8x288xf32>
    %9 = vector.shape_cast %8 : vector<1x8x288xf32> to vector<8x288xf32>
    %10 = arith.truncf %9 : vector<8x288xf32> to vector<8x288xbf16>
    %c1_8 = arith.constant 1 : index
    %c0_9 = arith.constant 0 : index
    %c0_10 = arith.constant 0 : index
    %11 = vector.load %arg2[%c1_8, %c0_9, %c0_10] : memref<9x8x8xbf16, #tpu.memory_space<vmem>>, vector<1x8x8xbf16>
    %12 = vector.shape_cast %11 : vector<1x8x8xbf16> to vector<8x8xbf16>
    %cst_11 = arith.constant dense<0.000000e+00> : vector<8x288xf32>
    %13 = tpu.matmul %12, %10, %cst_11 {dimension_numbers = #tpu.dot_dimension_numbers<[1], [0], [0], [1], [0, 0, 1, 1], [], []>} : vector<8x8xbf16>, vector<8x288xbf16>, vector<8x288xf32> -> vector<8x288xf32>
    %14 = arith.addf %7, %13 : vector<8x288xf32>
    %c0_12 = arith.constant 0 : index
    %c0_13 = arith.constant 0 : index
    %c2 = arith.constant 2 : index
    %15 = vector.load %arg1[%c0_12, %c0_13, %c2] : memref<1x8x342xf32, #tpu.memory_space<vmem>>, vector<1x8x288xf32>
    %16 = vector.shape_cast %15 : vector<1x8x288xf32> to vector<8x288xf32>
    %17 = arith.truncf %16 : vector<8x288xf32> to vector<8x288xbf16>
    %c2_14 = arith.constant 2 : index
    %c0_15 = arith.constant 0 : index
    %c0_16 = arith.constant 0 : index
    %18 = vector.load %arg2[%c2_14, %c0_15, %c0_16] : memref<9x8x8xbf16, #tpu.memory_space<vmem>>, vector<1x8x8xbf16>
    %19 = vector.shape_cast %18 : vector<1x8x8xbf16> to vector<8x8xbf16>
    %cst_17 = arith.constant dense<0.000000e+00> : vector<8x288xf32>
    %20 = tpu.matmul %19, %17, %cst_17 {dimension_numbers = #tpu.dot_dimension_numbers<[1], [0], [0], [1], [0, 0, 1, 1], [], []>} : vector<8x8xbf16>, vector<8x288xbf16>, vector<8x288xf32> -> vector<8x288xf32>
    %21 = arith.addf %14, %20 : vector<8x288xf32>
    %c0_18 = arith.constant 0 : index
    %c0_19 = arith.constant 0 : index
    %c18 = arith.constant 18 : index
    %22 = vector.load %arg1[%c0_18, %c0_19, %c18] : memref<1x8x342xf32, #tpu.memory_space<vmem>>, vector<1x8x288xf32>
    %23 = vector.shape_cast %22 : vector<1x8x288xf32> to vector<8x288xf32>
    %24 = arith.truncf %23 : vector<8x288xf32> to vector<8x288xbf16>
    %c3 = arith.constant 3 : index
    %c0_20 = arith.constant 0 : index
    %c0_21 = arith.constant 0 : index
    %25 = vector.load %arg2[%c3, %c0_20, %c0_21] : memref<9x8x8xbf16, #tpu.memory_space<vmem>>, vector<1x8x8xbf16>
    %26 = vector.shape_cast %25 : vector<1x8x8xbf16> to vector<8x8xbf16>
    %cst_22 = arith.constant dense<0.000000e+00> : vector<8x288xf32>
    %27 = tpu.matmul %26, %24, %cst_22 {dimension_numbers = #tpu.dot_dimension_numbers<[1], [0], [0], [1], [0, 0, 1, 1], [], []>} : vector<8x8xbf16>, vector<8x288xbf16>, vector<8x288xf32> -> vector<8x288xf32>
    %28 = arith.addf %21, %27 : vector<8x288xf32>
    %c0_23 = arith.constant 0 : index
    %c0_24 = arith.constant 0 : index
    %c19 = arith.constant 19 : index
    %29 = vector.load %arg1[%c0_23, %c0_24, %c19] : memref<1x8x342xf32, #tpu.memory_space<vmem>>, vector<1x8x288xf32>
    %30 = vector.shape_cast %29 : vector<1x8x288xf32> to vector<8x288xf32>
    %31 = arith.truncf %30 : vector<8x288xf32> to vector<8x288xbf16>
    %c4 = arith.constant 4 : index
    %c0_25 = arith.constant 0 : index
    %c0_26 = arith.constant 0 : index
    %32 = vector.load %arg2[%c4, %c0_25, %c0_26] : memref<9x8x8xbf16, #tpu.memory_space<vmem>>, vector<1x8x8xbf16>
    %33 = vector.shape_cast %32 : vector<1x8x8xbf16> to vector<8x8xbf16>
    %cst_27 = arith.constant dense<0.000000e+00> : vector<8x288xf32>
    %34 = tpu.matmul %33, %31, %cst_27 {dimension_numbers = #tpu.dot_dimension_numbers<[1], [0], [0], [1], [0, 0, 1, 1], [], []>} : vector<8x8xbf16>, vector<8x288xbf16>, vector<8x288xf32> -> vector<8x288xf32>
    %35 = arith.addf %28, %34 : vector<8x288xf32>
    %c0_28 = arith.constant 0 : index
    %c0_29 = arith.constant 0 : index
    %c20 = arith.constant 20 : index
    %36 = vector.load %arg1[%c0_28, %c0_29, %c20] : memref<1x8x342xf32, #tpu.memory_space<vmem>>, vector<1x8x288xf32>
    %37 = vector.shape_cast %36 : vector<1x8x288xf32> to vector<8x288xf32>
    %38 = arith.truncf %37 : vector<8x288xf32> to vector<8x288xbf16>
    %c5 = arith.constant 5 : index
    %c0_30 = arith.constant 0 : index
    %c0_31 = arith.constant 0 : index
    %39 = vector.load %arg2[%c5, %c0_30, %c0_31] : memref<9x8x8xbf16, #tpu.memory_space<vmem>>, vector<1x8x8xbf16>
    %40 = vector.shape_cast %39 : vector<1x8x8xbf16> to vector<8x8xbf16>
    %cst_32 = arith.constant dense<0.000000e+00> : vector<8x288xf32>
    %41 = tpu.matmul %40, %38, %cst_32 {dimension_numbers = #tpu.dot_dimension_numbers<[1], [0], [0], [1], [0, 0, 1, 1], [], []>} : vector<8x8xbf16>, vector<8x288xbf16>, vector<8x288xf32> -> vector<8x288xf32>
    %42 = arith.addf %35, %41 : vector<8x288xf32>
    %c0_33 = arith.constant 0 : index
    %c0_34 = arith.constant 0 : index
    %c36 = arith.constant 36 : index
    %43 = vector.load %arg1[%c0_33, %c0_34, %c36] : memref<1x8x342xf32, #tpu.memory_space<vmem>>, vector<1x8x288xf32>
    %44 = vector.shape_cast %43 : vector<1x8x288xf32> to vector<8x288xf32>
    %45 = arith.truncf %44 : vector<8x288xf32> to vector<8x288xbf16>
    %c6 = arith.constant 6 : index
    %c0_35 = arith.constant 0 : index
    %c0_36 = arith.constant 0 : index
    %46 = vector.load %arg2[%c6, %c0_35, %c0_36] : memref<9x8x8xbf16, #tpu.memory_space<vmem>>, vector<1x8x8xbf16>
    %47 = vector.shape_cast %46 : vector<1x8x8xbf16> to vector<8x8xbf16>
    %cst_37 = arith.constant dense<0.000000e+00> : vector<8x288xf32>
    %48 = tpu.matmul %47, %45, %cst_37 {dimension_numbers = #tpu.dot_dimension_numbers<[1], [0], [0], [1], [0, 0, 1, 1], [], []>} : vector<8x8xbf16>, vector<8x288xbf16>, vector<8x288xf32> -> vector<8x288xf32>
    %49 = arith.addf %42, %48 : vector<8x288xf32>
    %c0_38 = arith.constant 0 : index
    %c0_39 = arith.constant 0 : index
    %c37 = arith.constant 37 : index
    %50 = vector.load %arg1[%c0_38, %c0_39, %c37] : memref<1x8x342xf32, #tpu.memory_space<vmem>>, vector<1x8x288xf32>
    %51 = vector.shape_cast %50 : vector<1x8x288xf32> to vector<8x288xf32>
    %52 = arith.truncf %51 : vector<8x288xf32> to vector<8x288xbf16>
    %c7 = arith.constant 7 : index
    %c0_40 = arith.constant 0 : index
    %c0_41 = arith.constant 0 : index
    %53 = vector.load %arg2[%c7, %c0_40, %c0_41] : memref<9x8x8xbf16, #tpu.memory_space<vmem>>, vector<1x8x8xbf16>
    %54 = vector.shape_cast %53 : vector<1x8x8xbf16> to vector<8x8xbf16>
    %cst_42 = arith.constant dense<0.000000e+00> : vector<8x288xf32>
    %55 = tpu.matmul %54, %52, %cst_42 {dimension_numbers = #tpu.dot_dimension_numbers<[1], [0], [0], [1], [0, 0, 1, 1], [], []>} : vector<8x8xbf16>, vector<8x288xbf16>, vector<8x288xf32> -> vector<8x288xf32>
    %56 = arith.addf %49, %55 : vector<8x288xf32>
    %c0_43 = arith.constant 0 : index
    %c0_44 = arith.constant 0 : index
    %c38 = arith.constant 38 : index
    %57 = vector.load %arg1[%c0_43, %c0_44, %c38] : memref<1x8x342xf32, #tpu.memory_space<vmem>>, vector<1x8x288xf32>
    %58 = vector.shape_cast %57 : vector<1x8x288xf32> to vector<8x288xf32>
    %59 = arith.truncf %58 : vector<8x288xf32> to vector<8x288xbf16>
    %c8 = arith.constant 8 : index
    %c0_45 = arith.constant 0 : index
    %c0_46 = arith.constant 0 : index
    %60 = vector.load %arg2[%c8, %c0_45, %c0_46] : memref<9x8x8xbf16, #tpu.memory_space<vmem>>, vector<1x8x8xbf16>
    %61 = vector.shape_cast %60 : vector<1x8x8xbf16> to vector<8x8xbf16>
    %cst_47 = arith.constant dense<0.000000e+00> : vector<8x288xf32>
    %62 = tpu.matmul %61, %59, %cst_47 {dimension_numbers = #tpu.dot_dimension_numbers<[1], [0], [0], [1], [0, 0, 1, 1], [], []>} : vector<8x8xbf16>, vector<8x288xbf16>, vector<8x288xf32> -> vector<8x288xf32>
    %63 = arith.addf %56, %62 : vector<8x288xf32>
    %c0_48 = arith.constant 0 : index
    %c0_49 = arith.constant 0 : index
    %64 = vector.load %arg3[%c0_48, %c0_49] : memref<8x1xf32, #tpu.memory_space<vmem>>, vector<8x1xf32>
    %65 = vector.broadcast %64 : vector<8x1xf32> to vector<8x288xf32>
    %66 = arith.mulf %63, %65 : vector<8x288xf32>
    %c0_50 = arith.constant 0 : index
    %c0_51 = arith.constant 0 : index
    %67 = vector.load %arg4[%c0_50, %c0_51] : memref<8x1xf32, #tpu.memory_space<vmem>>, vector<8x1xf32>
    %68 = vector.broadcast %67 : vector<8x1xf32> to vector<8x288xf32>
    %69 = arith.addf %66, %68 : vector<8x288xf32>
    %cst_52 = arith.constant 0.000000e+00 : f32
    %70 = vector.broadcast %cst_52 : f32 to vector<8x288xf32>
    %71 = arith.maximumf %69, %70 : vector<8x288xf32>
    %c0_53 = arith.constant 0 : index
    %c0_54 = arith.constant 0 : index
    %c0_55 = arith.constant 0 : index
    %72 = vector.load %arg5[%c0_53, %c0_54, %c0_55] : memref<1x8x288xf32, #tpu.memory_space<vmem>>, vector<1x8x288xf32>
    %73 = vector.shape_cast %72 : vector<1x8x288xf32> to vector<8x288xf32>
    %74 = vector.shape_cast %71 : vector<8x288xf32> to vector<1x8x288xf32>
    tpu.vector_store %arg5[%c0_53, %c0_54, %c0_55], %74 {strides = array<i32>} : memref<1x8x288xf32, #tpu.memory_space<vmem>>, vector<1x8x288xf32>,
    return
  }
  func.func @transform_0(%arg0: i32) -> (i32, i32, i32) {
    %c0_i32 = arith.constant 0 : i32
    %c0_i32_0 = arith.constant 0 : i32
    %c0_i32_1 = arith.constant 0 : i32
    return %arg0, %c0_i32, %c0_i32_0 : i32, i32, i32
  }
  func.func @transform_1(%arg0: i32) -> (i32, i32, i32) {
    %c0_i32 = arith.constant 0 : i32
    %c0_i32_0 = arith.constant 0 : i32
    %c0_i32_1 = arith.constant 0 : i32
    %c0_i32_2 = arith.constant 0 : i32
    return %c0_i32, %c0_i32_0, %c0_i32_1 : i32, i32, i32
  }
  func.func @transform_2(%arg0: i32) -> (i32, i32) {
    %c0_i32 = arith.constant 0 : i32
    %c0_i32_0 = arith.constant 0 : i32
    %c0_i32_1 = arith.constant 0 : i32
    return %c0_i32, %c0_i32_0 : i32, i32
  }
  func.func @transform_3(%arg0: i32) -> (i32, i32) {
    %c0_i32 = arith.constant 0 : i32
    %c0_i32_0 = arith.constant 0 : i32
    %c0_i32_1 = arith.constant 0 : i32
    return %c0_i32, %c0_i32_0 : i32, i32
  }
  func.func @transform_4(%arg0: i32) -> (i32, i32, i32) {
    %c0_i32 = arith.constant 0 : i32
    %c0_i32_0 = arith.constant 0 : i32
    %c0_i32_1 = arith.constant 0 : i32
    return %arg0, %c0_i32, %c0_i32_0 : i32, i32, i32
  }
}

</mosaic_0001>

<bundles_post_ra>
// kernel: _lambda_.4
= control target key start
LH: loop header
LB: loop body
LE: loop exit
PB: predicated region body
PF: predicated region fallthrough
CT: control target
= control target key end

     0   :  { %s393_s15 = smov 0   ;;  %s419_s0 = inlined_call_operand.vmem [shape: f32[2,4,256], index: 0, kind: input, shape index: {}]   ;;  %s420_s1 = inlined_call_operand.vmem [shape: bf16[8,4], index: 1, kind: input, shape index: {}]   ;;  %s421_s2 = inlined_call_operand.vmem [shape: f32[8,1], index: 2, kind: input, shape index: {}]   ;;  %s422_s3 = inlined_call_operand.vmem [shape: f32[8,1], index: 3, kind: input, shape index: {}]   ;;  %s423_s4 = inlined_call_operand.vmem [shape: f32[2,8,256], index: 4, kind: output, shape index: {}]  }
   0x1 LB: > { %s333_s16 = sadd.s32 4294967295, %s365_s15   ;;  %p337_p0 = scmp.ge.s32.totalorder %s365_s15, 1  ;;  %s365_s15 = sphi %s393_s15, %s14_s15  }
   0x2   : > { %p162_p1 = scmp.lt.s32.totalorder %s365_s15, 3 }
   0x4   : > { %p163_p2 = pnand %p337_p0, %p162_p1 }
   0x5   : > { %p188_p3 = scmp.lt.s32.totalorder (!%p163_p2), %s333_s16, 1  ;;  %v367_v0 = vmov (!%p163_p2), 0   ;;  %v258_v1 = vld [vmem:[%s421_s2] sm:$0xff] (!%p163_p2)  ;;  %vm210_vm0 = vcmask (!%p163_p2), 1041408   ;;  %vm206_vm1 = vcmask (!%p163_p2), 31744  }
   0x6   : > { %166 = sbr.rel (%p163_p2) target bundleno = 245 (0xf5), region = 36  ;;  %249 = vmatprep.mubr.bf16.mxu0 (!%p163_p2), %v367_v0  ;;  %357 = vset.pattern.permute.xlu0 (!%p163_p2), %v367_v0  ;;  %v266_v2 = vld [vmem:[%s422_s3] sm:$0xff] (!%p163_p2) }
   0x7   : > { %261 = vperm.xlu0 (!%p163_p2), %357, %v258_v1   ;;  %v205_v8 = vld [vmem:[%s420_s1] sm:$0xf] (!%p163_p2) }
   0xb   : > { %269 = vperm.xlu0 (!%p163_p2), %357, %v266_v2  }
   0xd   : > { %s425_s16 = smov (!%p188_p3, %s333_s16), 1 }
   0xe   : > { %s346_s21 = sshll.u32 %s425_s16, 3  ;;  %s347_s27 = sshll.u32 %s425_s16, 4 }
   0xf   : > { %s192_s24 = scalar_lea.vmem %s419_s0, %s346_s21  ;;  %s197_s30 = scalar_lea.vmem %s423_s4, %s347_s27 }
  0x10   : > { %v199_v3 = vld [vmem:[%s192_s24] sm:$0xff] }
  0x11   : > { %v201_v4 = vcombine.high %v199_v3, %v199_v3  ;;  %v203_v5 = vpack.c.bf16 %v199_v3, %v199_v3 }
  0x13   : > { %v204_v6 = vpack.c.bf16 %v201_v4, %v201_v4  ;;  %v212_v7 = vsel %vm210_vm0, %v203_v5, 0 }
  0x15   : > { %342 = vmatprep.subr.msk.bf16.mxu0 %vm210_vm0, %v204_v6 }
  0x16   : > { %218 = vmatpush1.bf16.msra.mxu0 %v212_v7 }
  0x19   : > { %343 = vmatmul.mubr.msk.bf16.vlgmr.msra.gmra.mrb[0].mxu0 %vm206_vm1, %v205_v8 }
  0x86   : > { %v262_v9 = vpop.permute.xlu0 %261 }
  0x8a   : > { %v270_v13 = vpop.permute.xlu0 %269 }
  0xec   : > { %v251_v10 = vpop.f32.mrb[0].mxu0 }
  0xed   : > { %v264_v11 = vmul.f32 %v262_v9, %v251_v10  ;;  %v253_v12 = vpop.f32.mrb[1].mxu0 }
  0xee   : > { %v265_v14 = vmul.f32 %v262_v9, %v253_v12  ;;  %v255_v15 = vpop.f32.mrb[2].mxu0 }
  0xef   : > { %v272_v16 = vadd.f32 %v270_v13, %v264_v11  ;;  %v256_v17 = vpop.f32.mrb[3].mxu0 }
  0xf0   : > { %v273_v18 = vadd.f32 %v270_v13, %v265_v14 }
  0xf1   : > { %v274_v19 = vmax.f32 %v272_v16, 0.0 }
  0xf2   : > { %v275_v20 = vmax.f32 %v273_v18, 0.0 }
  0xf3   : > { %276 = vst [vmem:[%s197_s30] sm:$0xff] %v274_v19 }
  0xf4   : > { %277 = vst [vmem:[%s197_s30 + $0x8] sm:$0xff] %v275_v20 }
  0xf5 PF: > { %s14_s15 = sadd.s32 1, %s365_s15  }
  0xf6   : > { %p11_p4 = scmp.ge.s32.totalorder %s14_s15, 4  }
  0xf8   :  { %13 = sbr.rel (!%p11_p4) target bundleno = 1 (0x1), region = 66 }

// kernel: _lambda_.7
= control target key start
LH: loop header
LB: loop body
LE: loop exit
PB: predicated region body
PF: predicated region fallthrough
CT: control target
= control target key end

     0   :  { %s1483_s15 = smov 0   ;;  %s1625_s0 = inlined_call_operand.vmem [shape: f32[2,8,342], index: 0, kind: input, shape index: {}]   ;;  %s1626_s1 = inlined_call_operand.vmem [shape: bf16[9,8,8], index: 1, kind: input, shape index: {}]   ;;  %s1627_s2 = inlined_call_operand.vmem [shape: f32[8,1], index: 2, kind: input, shape index: {}]   ;;  %s1628_s3 = inlined_call_operand.vmem [shape: f32[8,1], index: 3, kind: input, shape index: {}]   ;;  %s1629_s4 = inlined_call_operand.vmem [shape: f32[2,8,288], index: 4, kind: output, shape index: {}]  }
   0x1 LB: > { %s1237_s16 = sadd.s32 4294967295, %s1445_s15   ;;  %p1241_p0 = scmp.ge.s32.totalorder %s1445_s15, 1  ;;  %s1445_s15 = sphi %s1483_s15, %s14_s15  }
   0x2   : > { %p162_p1 = scmp.lt.s32.totalorder %s1445_s15, 3 }
   0x4   : > { %p163_p2 = pnand %p1241_p0, %p162_p1 }
   0x5   : > { %p188_p3 = scmp.lt.s32.totalorder (!%p163_p2), %s1237_s16, 1  ;;  %v1447_v0 = vmov (!%p163_p2), 0.0   ;;  %vm1448_vm0 = vmmov (!%p163_p2), 0   ;;  %v1449_v1 = vmov (!%p163_p2), 0   ;;  %s1450_s21 = smov (!%p163_p2), 127   ;;  %v1157_v8 = vld [vmem:[%s1627_s2] sm:$0xff] (!%p163_p2) }
   0x6   : > { %166 = sbr.rel (%p163_p2) target bundleno = 460 (0x1cc), region = 36  ;;  %1299 = vmatprep.subr.bf16.mxu1 (!%p163_p2), %v1447_v0  ;;  %1301 = vmatprep.mubr.msk.bf16.mxu1 (!%p163_p2), %vm1448_vm0, %v1447_v0  ;;  %s1451_s22 = smov (!%p163_p2), 126   ;;  %v1166_v9 = vld [vmem:[%s1628_s3] sm:$0xff] (!%p163_p2)  ;;  %vm224_vm1 = vcmask (!%p163_p2), 1043456   ;;  %vm220_vm2 = vcmask (!%p163_p2), 64512   ;;  %vm217_vm3 = vcmask (!%p163_p2), 1039360  }
   0x7   : > { %266 = vmatprep.mubr.bf16.mxu0 (!%p163_p2), %v1449_v1  ;;  %1437 = vset.pattern.permute.xlu0 (!%p163_p2), %v1449_v1  ;;  %s1452_s23 = smov (!%p163_p2), 110   ;;  %s1453_s24 = smov (!%p163_p2), 109   ;;  %v1244_v13 = vld [vmem:[%s1626_s1 + $0x4] sm:$0xf] (!%p163_p2)  ;;  %vm416_vm4 = vcmask (!%p163_p2), 1031168   ;;  %vm523_vm5 = vcmask (!%p163_p2), 900096  }
   0x8   : > { %1438 = vset.pattern.permute.xlu1 (!%p163_p2), %v1449_v1  ;;  %s1454_s25 = smov (!%p163_p2), 108   ;;  %s1455_s26 = smov (!%p163_p2), 92   ;;  %v205_v25 = vld [vmem:[%s1626_s1] sm:$0xf] (!%p163_p2)  ;;  %v1251_v33 = vld [vmem:[%s1626_s1 + $0x8] sm:$0xf] (!%p163_p2) }
   0x9   : > { %s1456_s27 = smov (!%p163_p2), 91   ;;  %s1457_s28 = smov (!%p163_p2), 90   ;;  %vm630_vm6 = vcmask (!%p163_p2), 891904   ;;  %v1255_v41 = vld [vmem:[%s1626_s1 + $0xc] sm:$0xf] (!%p163_p2)  ;;  %vm737_vm7 = vcmask (!%p163_p2), 883712  }
   0xa   : > { %v1259_v49 = vld [vmem:[%s1626_s1 + $0x10] sm:$0xf] (!%p163_p2)  ;;  %vm844_vm8 = vcmask (!%p163_p2), 752640   ;;  %v1263_v57 = vld [vmem:[%s1626_s1 + $0x14] sm:$0xf] (!%p163_p2)  ;;  %vm951_vm9 = vcmask (!%p163_p2), 744448  }
   0xb   : > { %vm1058_vm10 = vcmask (!%p163_p2), 736256   ;;  %vm1180_vm11 = vcmask (!%p163_p2), 261120  }
   0xd   : > { %s1631_s16 = smov (!%p188_p3, %s1237_s16), 1 }
   0xe   : > { %s1417_s17 = smul.u32 24, %s1631_s16 }
  0x10   : > { %s192_s20 = scalar_lea.vmem %s1625_s0, %s1417_s17  ;;  %s197_s30 = scalar_lea.vmem %s1629_s4, %s1417_s17 }
  0x11   : > { %v201_v2 = vld [vmem:[%s192_s20 + $0x10] sm:$0xff]  ;;  %v199_v3 = vld [vmem:[%s192_s20] sm:$0xff]  ;;  %v200_v4 = vld [vmem:[%s192_s20 + $0x8] sm:$0xff] }
  0x12   : > { %v204_v5 = vpack.c.bf16 %v201_v2, %v201_v2  ;;  %v202_v6 = vpack.c.bf16 %v199_v3, %v199_v3  ;;  %v203_v7 = vpack.c.bf16 %v200_v4, %v200_v4  ;;  %v1267_v3 = vld [vmem:[%s1626_s1 + $0x18] sm:$0xf] }
  0x14   : > { %215 = vrot.lane.b32.xlu1 %v204_v5, %s1450_s21  ;;  %211 = vrot.lane.b32.xlu0 %v202_v6, %s1450_s21  ;;  %v325_v14 = vsel %vm224_vm1, %v204_v5, 0  ;;  %v319_v20 = vsel %vm224_vm1, %v202_v6, 0 }
  0x18   : > { %213 = vrot.lane.b32.xlu0 %v203_v7, %s1450_s21  ;;  %410 = vrot.lane.b32.xlu1 %v202_v6, %s1451_s22 }
  0x1c   : > { %412 = vrot.lane.b32.xlu0 %v203_v7, %s1451_s22  ;;  %414 = vrot.lane.b32.xlu1 %v204_v5, %s1451_s22 }
  0x20   : > { %517 = vrot.lane.b32.xlu0 %v202_v6, %s1452_s23  ;;  %519 = vrot.lane.b32.xlu1 %v203_v7, %s1452_s23 }
  0x24   : > { %521 = vrot.lane.b32.xlu0 %v204_v5, %s1452_s23  ;;  %624 = vrot.lane.b32.xlu1 %v202_v6, %s1453_s24 }
  0x28   : > { %626 = vrot.lane.b32.xlu0 %v203_v7, %s1453_s24  ;;  %628 = vrot.lane.b32.xlu1 %v204_v5, %s1453_s24 }
  0x2c   : > { %731 = vrot.lane.b32.xlu0 %v202_v6, %s1454_s25  ;;  %733 = vrot.lane.b32.xlu1 %v203_v7, %s1454_s25 }
  0x30   : > { %735 = vrot.lane.b32.xlu0 %v204_v5, %s1454_s25  ;;  %838 = vrot.lane.b32.xlu1 %v202_v6, %s1455_s26 }
  0x34   : > { %840 = vrot.lane.b32.xlu0 %v203_v7, %s1455_s26  ;;  %842 = vrot.lane.b32.xlu1 %v204_v5, %s1455_s26 }
  0x38   : > { %945 = vrot.lane.b32.xlu0 %v202_v6, %s1456_s27  ;;  %947 = vrot.lane.b32.xlu1 %v203_v7, %s1456_s27 }
  0x3c   : > { %949 = vrot.lane.b32.xlu0 %v204_v5, %s1456_s27  ;;  %1052 = vrot.lane.b32.xlu1 %v202_v6, %s1457_s28 }
  0x40   : > { %1054 = vrot.lane.b32.xlu0 %v203_v7, %s1457_s28  ;;  %1056 = vrot.lane.b32.xlu1 %v204_v5, %s1457_s28 }
  0x44   : > { %1160 = vperm.xlu0 %1437, %v1157_v8   ;;  %1169 = vperm.xlu1 %1438, %v1166_v9  }
  0x86   : > { %v216_v10 = vpop.permute.xlu1 %215  ;;  %v212_v11 = vpop.permute.xlu0 %211 }
  0x87   : > { %v232_v12 = vsel %vm224_vm1, %v216_v10, 0 }
  0x88   : > { %1300 = vmatpush3.bf16.msra.mxu1 %v232_v12 }
  0x89   : > { %1305 = vmatprep.subr.bf16.mxu1 %v1447_v0 }
  0x8a   : > { %v214_v15 = vpop.permute.xlu0 %213  ;;  %v411_v16 = vpop.permute.xlu1 %410 }
  0x8b   : > { %1302 = vmatmul.mubr.msk.bf16.vlgmr.msra.gmra.mrb[0].mxu1 %vm220_vm2, %v1244_v13  ;;  %v219_v17 = vsel %vm217_vm3, %v214_v15, %v216_v10  ;;  %v218_v18 = vsel %vm217_vm3, %v212_v11, %v214_v15  ;;  %v1271_v10 = vld [vmem:[%s1626_s1 + $0x1c] sm:$0xf] }
  0x8c   : > { %1245 = vmatprep.subr.msk.bf16.mxu0 %vm224_vm1, %v219_v17  ;;  %v226_v19 = vsel %vm224_vm1, %v218_v18, 0  ;;  %1306 = vmatpush3.bf16.msra.mxu1 %v325_v14  ;;  %v1275_v14 = vld [vmem:[%s1626_s1 + $0x20] sm:$0xf] }
  0x8d   : > { %235 = vmatpush1.bf16.msra.mxu0 %v226_v19  ;;  %1307 = vmatprep.mubr.msk.bf16.mxu1 %vm1448_vm0, %v1447_v0 }
  0x8e   : > { %1248 = vmatprep.subr.msk.bf16.mxu0 %vm224_vm1, %v203_v7  ;;  %v413_v21 = vpop.permute.xlu0 %412  ;;  %v415_v22 = vpop.permute.xlu1 %414  ;;  %1311 = vmatprep.subr.bf16.mxu1 %v1447_v0 }
  0x8f   : > { %v418_v23 = vsel %vm416_vm4, %v413_v21, %v415_v22  ;;  %v429_v26 = vsel %vm224_vm1, %v415_v22, 0  ;;  %v417_v27 = vsel %vm416_vm4, %v411_v16, %v413_v21 }
  0x90   : > { %1246 = vmatmul.mubr.msk.bf16.vlgmr.msra.gmra.mrb[0].mxu0 %vm220_vm2, %v1244_v13  ;;  %v423_v30 = vsel %vm224_vm1, %v417_v27, 0 }
  0x91   : > { %328 = vmatpush1.bf16.msra.mxu0 %v319_v20  ;;  %359 = vmatprep.mubr.bf16.mxu0 %v1449_v1 }
  0x92   : > { %1252 = vmatprep.subr.msk.bf16.mxu0 %vm224_vm1, %v418_v23  ;;  %v518_v24 = vpop.permute.xlu0 %517  ;;  %v520_v28 = vpop.permute.xlu1 %519 }
  0x93   : > { %v524_v35 = vsel %vm523_vm5, %v518_v24, %v520_v28 }
  0x94   : > { %v530_v38 = vsel %vm224_vm1, %v524_v35, 0 }
  0x96   : > { %v522_v29 = vpop.permute.xlu0 %521  ;;  %v625_v32 = vpop.permute.xlu1 %624 }
  0x97   : > { %1308 = vmatmul.mubr.msk.bf16.vlgmr.msra.gmra.mrb[0].mxu1 %vm220_vm2, %v205_v25  ;;  %v525_v31 = vsel %vm523_vm5, %v520_v28, %v522_v29  ;;  %v536_v34 = vsel %vm224_vm1, %v522_v29, 0 }
  0x98   : > { %1312 = vmatpush3.bf16.msra.mxu1 %v429_v26  ;;  %1313 = vmatprep.mubr.msk.bf16.mxu1 %vm1448_vm0, %v1447_v0 }
  0x99   : > { %1317 = vmatprep.subr.bf16.mxu1 %v1447_v0 }
  0x9a   : > { %v627_v36 = vpop.permute.xlu0 %626  ;;  %v629_v37 = vpop.permute.xlu1 %628 }
  0x9b   : > { %v632_v39 = vsel %vm630_vm6, %v627_v36, %v629_v37  ;;  %v643_v42 = vsel %vm224_vm1, %v629_v37, 0  ;;  %v631_v43 = vsel %vm630_vm6, %v625_v32, %v627_v36 }
  0x9c   : > { %1249 = vmatmul.mubr.msk.bf16.vlgmr.msra.gmra.mrb[0].mxu0 %vm220_vm2, %v205_v25  ;;  %v637_v46 = vsel %vm224_vm1, %v631_v43, 0 }
  0x9d   : > { %432 = vmatpush1.bf16.msra.mxu0 %v423_v30  ;;  %463 = vmatprep.mubr.bf16.mxu0 %v1449_v1 }
  0x9e   : > { %1256 = vmatprep.subr.msk.bf16.mxu0 %vm224_vm1, %v525_v31  ;;  %v732_v40 = vpop.permute.xlu0 %731  ;;  %v734_v44 = vpop.permute.xlu1 %733 }
  0x9f   : > { %v738_v51 = vsel %vm737_vm7, %v732_v40, %v734_v44 }
  0xa0   : > { %v744_v54 = vsel %vm224_vm1, %v738_v51, 0 }
  0xa2   : > { %v736_v45 = vpop.permute.xlu0 %735  ;;  %v839_v48 = vpop.permute.xlu1 %838 }
  0xa3   : > { %1314 = vmatmul.mubr.msk.bf16.vlgmr.msra.gmra.mrb[0].mxu1 %vm220_vm2, %v1251_v33  ;;  %v739_v47 = vsel %vm737_vm7, %v734_v44, %v736_v45  ;;  %v750_v50 = vsel %vm224_vm1, %v736_v45, 0 }
  0xa4   : > { %1318 = vmatpush3.bf16.msra.mxu1 %v536_v34  ;;  %1319 = vmatprep.mubr.msk.bf16.mxu1 %vm1448_vm0, %v1447_v0 }
  0xa5   : > { %1323 = vmatprep.subr.bf16.mxu1 %v1447_v0 }
  0xa6   : > { %v841_v52 = vpop.permute.xlu0 %840  ;;  %v843_v53 = vpop.permute.xlu1 %842 }
  0xa7   : > { %v846_v55 = vsel %vm844_vm8, %v841_v52, %v843_v53  ;;  %v857_v58 = vsel %vm224_vm1, %v843_v53, 0  ;;  %v845_v59 = vsel %vm844_vm8, %v839_v48, %v841_v52 }
  0xa8   : > { %1253 = vmatmul.mubr.msk.bf16.vlgmr.msra.gmra.mrb[0].mxu0 %vm220_vm2, %v1251_v33  ;;  %v851_v62 = vsel %vm224_vm1, %v845_v59, 0 }
  0xa9   : > { %539 = vmatpush1.bf16.msra.mxu0 %v530_v38  ;;  %570 = vmatprep.mubr.bf16.mxu0 %v1449_v1 }
  0xaa   : > { %1260 = vmatprep.subr.msk.bf16.mxu0 %vm224_vm1, %v632_v39  ;;  %v946_v56 = vpop.permute.xlu0 %945  ;;  %v948_v60 = vpop.permute.xlu1 %947 }
  0xab   : > { %v952_v5 = vsel %vm951_vm9, %v946_v56, %v948_v60 }
  0xac   : > { %v958_v8 = vsel %vm224_vm1, %v952_v5, 0 }
  0xae   : > { %v950_v61 = vpop.permute.xlu0 %949  ;;  %v1053_v2 = vpop.permute.xlu1 %1052 }
  0xaf   : > { %1320 = vmatmul.mubr.msk.bf16.vlgmr.msra.gmra.mrb[0].mxu1 %vm220_vm2, %v1255_v41  ;;  %v953_v63 = vsel %vm951_vm9, %v948_v60, %v950_v61  ;;  %v964_v4 = vsel %vm224_vm1, %v950_v61, 0 }
  0xb0   : > { %1324 = vmatpush3.bf16.msra.mxu1 %v643_v42  ;;  %1325 = vmatprep.mubr.msk.bf16.mxu1 %vm1448_vm0, %v1447_v0 }
  0xb1   : > { %1329 = vmatprep.subr.bf16.mxu1 %v1447_v0 }
  0xb2   : > { %v1055_v6 = vpop.permute.xlu0 %1054  ;;  %v1057_v7 = vpop.permute.xlu1 %1056 }
  0xb3   : > { %v1060_v9 = vsel %vm1058_vm10, %v1055_v6, %v1057_v7  ;;  %v1071_v11 = vsel %vm224_vm1, %v1057_v7, 0  ;;  %v1059_v12 = vsel %vm1058_vm10, %v1053_v2, %v1055_v6 }
  0xb4   : > { %1257 = vmatmul.mubr.msk.bf16.vlgmr.msra.gmra.mrb[0].mxu0 %vm220_vm2, %v1255_v41  ;;  %v1065_v13 = vsel %vm224_vm1, %v1059_v12, 0 }
  0xb5   : > { %646 = vmatpush1.bf16.msra.mxu0 %v637_v46  ;;  %677 = vmatprep.mubr.bf16.mxu0 %v1449_v1 }
  0xb6   : > { %1264 = vmatprep.subr.msk.bf16.mxu0 %vm224_vm1, %v739_v47 }
  0xbb   : > { %1326 = vmatmul.mubr.msk.bf16.vlgmr.msra.gmra.mrb[0].mxu1 %vm220_vm2, %v1259_v49 }
  0xbc   : > { %1330 = vmatpush3.bf16.msra.mxu1 %v750_v50  ;;  %1331 = vmatprep.mubr.msk.bf16.mxu1 %vm1448_vm0, %v1447_v0 }
  0xbd   : > { %1335 = vmatprep.subr.bf16.mxu1 %v1447_v0 }
  0xc0   : > { %1261 = vmatmul.mubr.msk.bf16.vlgmr.msra.gmra.mrb[0].mxu0 %vm220_vm2, %v1259_v49 }
  0xc1   : > { %753 = vmatpush1.bf16.msra.mxu0 %v744_v54  ;;  %784 = vmatprep.mubr.bf16.mxu0 %v1449_v1 }
  0xc2   : > { %1268 = vmatprep.subr.msk.bf16.mxu0 %vm224_vm1, %v846_v55 }
  0xc3   : > { %v1161_v15 = vpop.permute.xlu0 %1160  ;;  %v1170_v17 = vpop.permute.xlu1 %1169 }
  0xc7   : > { %1332 = vmatmul.mubr.msk.bf16.vlgmr.msra.gmra.mrb[0].mxu1 %vm220_vm2, %v1263_v57 }
  0xc8   : > { %1336 = vmatpush3.bf16.msra.mxu1 %v857_v58  ;;  %1337 = vmatprep.mubr.msk.bf16.mxu1 %vm1448_vm0, %v1447_v0 }
  0xc9   : > { %1341 = vmatprep.subr.bf16.mxu1 %v1447_v0 }
  0xcc   : > { %1265 = vmatmul.mubr.msk.bf16.vlgmr.msra.gmra.mrb[0].mxu0 %vm220_vm2, %v1263_v57 }
  0xcd   : > { %860 = vmatpush1.bf16.msra.mxu0 %v851_v62  ;;  %891 = vmatprep.mubr.bf16.mxu0 %v1449_v1 }
  0xce   : > { %1272 = vmatprep.subr.msk.bf16.mxu0 %vm224_vm1, %v953_v63 }
  0xd3   : > { %1338 = vmatmul.mubr.msk.bf16.vlgmr.msra.gmra.mrb[0].mxu1 %vm220_vm2, %v1267_v3 }
  0xd4   : > { %1342 = vmatpush3.bf16.msra.mxu1 %v964_v4  ;;  %1343 = vmatprep.mubr.msk.bf16.mxu1 %vm1448_vm0, %v1447_v0 }
  0xd5   : > { %1347 = vmatprep.subr.bf16.mxu1 %v1447_v0 }
  0xd8   : > { %1269 = vmatmul.mubr.msk.bf16.vlgmr.msra.gmra.mrb[0].mxu0 %vm220_vm2, %v1267_v3 }
  0xd9   : > { %967 = vmatpush1.bf16.msra.mxu0 %v958_v8  ;;  %998 = vmatprep.mubr.bf16.mxu0 %v1449_v1 }
  0xda   : > { %1276 = vmatprep.subr.msk.bf16.mxu0 %vm224_vm1, %v1060_v9 }
  0xdf   : > { %1344 = vmatmul.mubr.msk.bf16.vlgmr.msra.gmra.mrb[0].mxu1 %vm220_vm2, %v1271_v10 }
  0xe0   : > { %1348 = vmatpush3.bf16.msra.mxu1 %v1071_v11  ;;  %1349 = vmatprep.mubr.msk.bf16.mxu1 %vm1448_vm0, %v1447_v0 }
  0xe4   : > { %1273 = vmatmul.mubr.msk.bf16.vlgmr.msra.gmra.mrb[0].mxu0 %vm220_vm2, %v1271_v10 }
  0xe5   : > { %1074 = vmatpush1.bf16.msra.mxu0 %v1065_v13  ;;  %1105 = vmatprep.mubr.bf16.mxu0 %v1449_v1 }
  0xeb   : > { %1350 = vmatmul.mubr.msk.bf16.vlgmr.msra.gmra.mrb[0].mxu1 %vm220_vm2, %v1275_v14 }
  0xf0   : > { %1277 = vmatmul.mubr.msk.bf16.vlgmr.msra.gmra.mrb[0].mxu0 %vm220_vm2, %v1275_v14 }
 0x1be   : > { %v1148_v16 = vpop.f32.mrb[0].mxu1 }
 0x1bf   : > { %v1165_v0 = vmul.f32 %v1161_v15, %v1148_v16  ;;  %v1351_v18 = vpop.f32.mrb[1].mxu1 }
 0x1c0   : > { %v1151_v19 = vpop.f32.mrb[2].mxu1 }
 0x1c1   : > { %v1174_v20 = vadd.f32 %v1170_v17, %v1165_v0  ;;  %v1352_v21 = vpop.f32.mrb[3].mxu1 }
 0x1c3   : > { %v1177_v1 = vmax.f32 %v1174_v20, 0.0  ;;  %v1107_v22 = vpop.f32.mrb[0].mxu0 }
 0x1c4   : > { %v1163_v23 = vmul.f32 %v1161_v15, %v1107_v22  ;;  %v1109_v24 = vpop.f32.mrb[1].mxu0 }
 0x1c5   : > { %1181 = vst.msk [vmem:[%s197_s30 + $0x10] sm:$0xff] %vm1180_vm11, %v1177_v1  ;;  %v1164_v25 = vmul.f32 %v1161_v15, %v1109_v24  ;;  %v1111_v26 = vpop.f32.mrb[2].mxu0 }
 0x1c6   : > { %v1172_v27 = vadd.f32 %v1170_v17, %v1163_v23  ;;  %v1112_v28 = vpop.f32.mrb[3].mxu0 }
 0x1c7   : > { %v1173_v29 = vadd.f32 %v1170_v17, %v1164_v25 }
 0x1c8   : > { %v1175_v30 = vmax.f32 %v1172_v27, 0.0 }
 0x1c9   : > { %v1176_v31 = vmax.f32 %v1173_v29, 0.0 }
 0x1ca   : > { %1178 = vst [vmem:[%s197_s30] sm:$0xff] %v1175_v30 }
 0x1cb   : > { %1179 = vst [vmem:[%s197_s30 + $0x8] sm:$0xff] %v1176_v31 }
 0x1cc PF: > { %s14_s15 = sadd.s32 1, %s1445_s15  }
 0x1cd   : > { %p11_p4 = scmp.ge.s32.totalorder %s14_s15, 4  }
 0x1cf   :  { %13 = sbr.rel (!%p11_p4) target bundleno = 1 (0x1), region = 74 }

// kernel: _lambda_.5
= control target key start
LH: loop header
LB: loop body
LE: loop exit
PB: predicated region body
PF: predicated region fallthrough
CT: control target
= control target key end

     0   :  { %vm1051_vm0 = vcmask 1043456   ;;  %vm1047_vm1 = vcmask 64512   ;;  %s9560_s1 = inlined_call_operand.vmem [shape: bf16[256,256], index: 1, kind: input, shape index: {}]   ;;  %s9561_s0 = inlined_call_operand.vmem [shape: f32[16,256], index: 0, kind: input, shape index: {}]   ;;  %s9562_s2 = inlined_call_operand.vmem [shape: bf16[256,256], index: 2, kind: input, shape index: {}]   ;;  %s9563_s3 = inlined_call_operand.vmem [shape: bf16[256,256], index: 3, kind: input, shape index: {}]   ;;  %s9564_s17 = inlined_call_operand.vmem [shape: bf16[256,8], index: 17, kind: input, shape index: {}]   ;;  %s9565_s4 = inlined_call_operand.vmem [shape: f32[1,256], index: 4, kind: input, shape index: {}]   ;;  %s9566_s5 = inlined_call_operand.vmem [shape: f32[1,256], index: 5, kind: input, shape index: {}]   ;;  %s9567_s18 = inlined_call_operand.vmem [shape: bf16[8,256], index: 18, kind: input, shape index: {}]   ;;  %s9568_s7 = inlined_call_operand.vmem [shape: bf16[256,256], index: 7, kind: input, shape index: {}]   ;;  %s9569_s6 = inlined_call_operand.vmem [shape: f32[1,256], index: 6, kind: input, shape index: {}]   ;;  %s9570_s8 = inlined_call_operand.vmem [shape: f32[1,256], index: 8, kind: input, shape index: {}]   ;;  %s9571_s11 = inlined_call_operand.vmem [shape: bf16[256,2048], index: 11, kind: input, shape index: {}]   ;;  %s9572_s9 = inlined_call_operand.vmem [shape: f32[1,256], index: 9, kind: input, shape index: {}]   ;;  %s9573_s10 = inlined_call_operand.vmem [shape: f32[1,256], index: 10, kind: input, shape index: {}]   ;;  %s9574_s13 = inlined_call_operand.vmem [shape: bf16[2048,256], index: 13, kind: input, shape index: {}]   ;;  %s9575_s12 = inlined_call_operand.vmem [shape: f32[1,2048], index: 12, kind: input, shape index: {}]   ;;  %s9576_s14 = inlined_call_operand.vmem [shape: f32[1,256], index: 14, kind: input, shape index: {}]   ;;  %s9577_s15 = inlined_call_operand.vmem [shape: f32[1,256], index: 15, kind: input, shape index: {}]   ;;  %s9578_s16 = inlined_call_operand.vmem [shape: f32[1,256], index: 16, kind: input, shape index: {}]   ;;  %s9579_s19 = inlined_call_operand.vmem [shape: f32[16,256], index: 19, kind: output, shape index: {}]  }
   0x1   :  { %9584 = sst [smem:[#allocation3_spill]] %s9560_s1 }
   0x2   :  { %9585 = sst [smem:[#allocation4_spill]] %s9561_s0  ;;  %s9588_s20 = sld [smem:[#allocation3_spill]] }
   0x3   :  { %9586 = sst [smem:[#allocation5_spill]] %s9562_s2  ;;  %s9589_s1 = sld [smem:[#allocation4_spill]] }
   0x4   :  { %9587 = sst [smem:[#allocation6_spill]] %s9563_s3  ;;  %s9590_s25 = sld [smem:[#allocation5_spill]] }
   0x5   :  { %s9591_s24 = sld [smem:[#allocation6_spill]] }
   0x8   :  { %v6445_v0 = vld [vmem:[%s9588_s20 + $0x4] ss:$8 sps:$4 sm:$0xff]   ;;  %v6447_v1 = vld [vmem:[%s9588_s20] ss:$8 sps:$4 sm:$0xff]   ;;  %v6448_v2 = vld [vmem:[%s9588_s20 + $0x14] ss:$8 sps:$4 sm:$0xff]  }
   0x9   :  { %273 = vmatprep.subr.bf16.mxu0 %v6445_v0  ;;  %v6450_v3 = vld [vmem:[%s9588_s20 + $0x10] ss:$8 sps:$4 sm:$0xff]   ;;  %v6451_v4 = vld [vmem:[%s9588_s20 + $0x24] ss:$8 sps:$4 sm:$0xff]   ;;  %v6453_v5 = vld [vmem:[%s9588_s20 + $0x20] ss:$8 sps:$4 sm:$0xff]  }
   0xa   :  { %274 = vmatpush1.bf16.msra.mxu0 %v6447_v1  ;;  %v6454_v6 = vld [vmem:[%s9588_s20 + $0x34] ss:$8 sps:$4 sm:$0xff]   ;;  %v6456_v7 = vld [vmem:[%s9588_s20 + $0x30] ss:$8 sps:$4 sm:$0xff]   ;;  %v6457_v8 = vld [vmem:[%s9588_s20 + $0x44] ss:$8 sps:$4 sm:$0xff]  }
   0xb   :  { %275 = vmatprep.subr.bf16.mxu0 %v6448_v2  ;;  %v6459_v9 = vld [vmem:[%s9588_s20 + $0x40] ss:$8 sps:$4 sm:$0xff]   ;;  %v6460_v10 = vld [vmem:[%s9588_s20 + $0x54] ss:$8 sps:$4 sm:$0xff]   ;;  %v6462_v11 = vld [vmem:[%s9588_s20 + $0x50] ss:$8 sps:$4 sm:$0xff]  }
   0xc   :  { %v6463_v12 = vld [vmem:[%s9588_s20 + $0x64] ss:$8 sps:$4 sm:$0xff]   ;;  %v66_v14 = vld [vmem:[%s9589_s1 + $0x18] sm:$0xff]  ;;  %v6465_v16 = vld [vmem:[%s9588_s20 + $0x60] ss:$8 sps:$4 sm:$0xff]  }
   0xd   :  { %v64_v13 = vld [vmem:[%s9589_s1 + $0x8] sm:$0xff]  ;;  %v6466_v17 = vld [vmem:[%s9588_s20 + $0x74] ss:$8 sps:$4 sm:$0xff]   ;;  %v6468_v18 = vld [vmem:[%s9588_s20 + $0x70] ss:$8 sps:$4 sm:$0xff]  }
   0xe   :  { %276 = vmatpush1.bf16.msra.mxu0 %v6450_v3  ;;  %v7210_v15 = vpack.c.bf16 %v66_v14, %v64_v13  ;;  %v6469_v19 = vld [vmem:[%s9588_s20 + $0x84] ss:$8 sps:$4 sm:$0xff]   ;;  %v6471_v20 = vld [vmem:[%s9588_s20 + $0x80] ss:$8 sps:$4 sm:$0xff]   ;;  %v6472_v21 = vld [vmem:[%s9588_s20 + $0x94] ss:$8 sps:$4 sm:$0xff]  }
   0xf   :  { %277 = vmatprep.subr.bf16.mxu0 %v6451_v4  ;;  %v6474_v22 = vld [vmem:[%s9588_s20 + $0x90] ss:$8 sps:$4 sm:$0xff]   ;;  %v6475_v23 = vld [vmem:[%s9588_s20 + $0xa4] ss:$8 sps:$4 sm:$0xff]   ;;  %v6477_v24 = vld [vmem:[%s9588_s20 + $0xa0] ss:$8 sps:$4 sm:$0xff]  }
  0x10   :  { %305 = vmatprep.mubr.bf16.mxu0 %v7210_v15  ;;  %v6478_v25 = vld [vmem:[%s9588_s20 + $0xb4] ss:$8 sps:$4 sm:$0xff]   ;;  %v6480_v26 = vld [vmem:[%s9588_s20 + $0xb0] ss:$8 sps:$4 sm:$0xff]   ;;  %v6481_v27 = vld [vmem:[%s9588_s20 + $0xc4] ss:$8 sps:$4 sm:$0xff]  }
  0x11   :  { %v6483_v28 = vld [vmem:[%s9588_s20 + $0xc0] ss:$8 sps:$4 sm:$0xff]   ;;  %v6484_v29 = vld [vmem:[%s9588_s20 + $0xd4] ss:$8 sps:$4 sm:$0xff]   ;;  %v6486_v30 = vld [vmem:[%s9588_s20 + $0xd0] ss:$8 sps:$4 sm:$0xff]  }
  0x12   :  { %278 = vmatpush1.bf16.msra.mxu0 %v6453_v5  ;;  %v6487_v31 = vld [vmem:[%s9588_s20 + $0xe4] ss:$8 sps:$4 sm:$0xff]   ;;  %v6489_v32 = vld [vmem:[%s9588_s20 + $0xe0] ss:$8 sps:$4 sm:$0xff]   ;;  %v6490_v33 = vld [vmem:[%s9588_s20 + $0xf4] ss:$8 sps:$4 sm:$0xff]  }
  0x13   :  { %279 = vmatprep.subr.bf16.mxu0 %v6454_v6  ;;  %v6492_v34 = vld [vmem:[%s9588_s20 + $0xf0] ss:$8 sps:$4 sm:$0xff]   ;;  %v63_v35 = vld [vmem:[%s9589_s1] sm:$0xff]  ;;  %v6498_v40 = vld [vmem:[%s9590_s25 + $0x14] ss:$8 sps:$4 sm:$0xff]  }
  0x14   :  { %v65_v36 = vld [vmem:[%s9589_s1 + $0x10] sm:$0xff]  ;;  %v6495_v37 = vld [vmem:[%s9590_s25 + $0x4] ss:$8 sps:$4 sm:$0xff]   ;;  %v6493_v39 = vld [vmem:[%s9590_s25] ss:$8 sps:$4 sm:$0xff]  }
  0x15   :  { %v7279_v38 = vpack.c.bf16 %v65_v36, %v63_v35  ;;  %v6496_v41 = vld [vmem:[%s9590_s25 + $0x10] ss:$8 sps:$4 sm:$0xff]   ;;  %v6501_v42 = vld [vmem:[%s9590_s25 + $0x24] ss:$8 sps:$4 sm:$0xff]   ;;  %v6499_v43 = vld [vmem:[%s9590_s25 + $0x20] ss:$8 sps:$4 sm:$0xff]  }
  0x16   :  { %280 = vmatpush1.bf16.msra.mxu0 %v6456_v7  ;;  %v6504_v44 = vld [vmem:[%s9590_s25 + $0x34] ss:$8 sps:$4 sm:$0xff]   ;;  %v6502_v45 = vld [vmem:[%s9590_s25 + $0x30] ss:$8 sps:$4 sm:$0xff]   ;;  %v6507_v46 = vld [vmem:[%s9590_s25 + $0x44] ss:$8 sps:$4 sm:$0xff]  }
  0x17   :  { %281 = vmatprep.subr.bf16.mxu0 %v6457_v8  ;;  %v6505_v47 = vld [vmem:[%s9590_s25 + $0x40] ss:$8 sps:$4 sm:$0xff]   ;;  %v6510_v48 = vld [vmem:[%s9590_s25 + $0x54] ss:$8 sps:$4 sm:$0xff]   ;;  %v6508_v49 = vld [vmem:[%s9590_s25 + $0x50] ss:$8 sps:$4 sm:$0xff]  }
  0x18   :  { %v6513_v50 = vld [vmem:[%s9590_s25 + $0x64] ss:$8 sps:$4 sm:$0xff]   ;;  %v6511_v51 = vld [vmem:[%s9590_s25 + $0x60] ss:$8 sps:$4 sm:$0xff]   ;;  %v6516_v52 = vld [vmem:[%s9590_s25 + $0x74] ss:$8 sps:$4 sm:$0xff]  }
  0x19   :  { %v6514_v53 = vld [vmem:[%s9590_s25 + $0x70] ss:$8 sps:$4 sm:$0xff]   ;;  %v6519_v54 = vld [vmem:[%s9590_s25 + $0x84] ss:$8 sps:$4 sm:$0xff]   ;;  %v6517_v55 = vld [vmem:[%s9590_s25 + $0x80] ss:$8 sps:$4 sm:$0xff]  }
  0x1a   :  { %282 = vmatpush1.bf16.msra.mxu0 %v6459_v9  ;;  %v6522_v56 = vld [vmem:[%s9590_s25 + $0x94] ss:$8 sps:$4 sm:$0xff]   ;;  %v6520_v57 = vld [vmem:[%s9590_s25 + $0x90] ss:$8 sps:$4 sm:$0xff]   ;;  %v6525_v58 = vld [vmem:[%s9590_s25 + $0xa4] ss:$8 sps:$4 sm:$0xff]  }
  0x1b   :  { %283 = vmatprep.subr.bf16.mxu0 %v6460_v10  ;;  %v6523_v59 = vld [vmem:[%s9590_s25 + $0xa0] ss:$8 sps:$4 sm:$0xff]   ;;  %v6528_v60 = vld [vmem:[%s9590_s25 + $0xb4] ss:$8 sps:$4 sm:$0xff]   ;;  %v6526_v61 = vld [vmem:[%s9590_s25 + $0xb0] ss:$8 sps:$4 sm:$0xff]  }
  0x1c   :  { %v6531_v62 = vld [vmem:[%s9590_s25 + $0xc4] ss:$8 sps:$4 sm:$0xff]   ;;  %v6529_v63 = vld [vmem:[%s9590_s25 + $0xc0] ss:$8 sps:$4 sm:$0xff]   ;;  %v6534_v0 = vld [vmem:[%s9590_s25 + $0xd4] ss:$8 sps:$4 sm:$0xff]  }
  0x1d   :  { %v6532_v1 = vld [vmem:[%s9590_s25 + $0xd0] ss:$8 sps:$4 sm:$0xff]   ;;  %v6537_v2 = vld [vmem:[%s9590_s25 + $0xe4] ss:$8 sps:$4 sm:$0xff]   ;;  %v6535_v3 = vld [vmem:[%s9590_s25 + $0xe0] ss:$8 sps:$4 sm:$0xff]  }
  0x1e   :  { %284 = vmatpush1.bf16.msra.mxu0 %v6462_v11  ;;  %v6540_v4 = vld [vmem:[%s9590_s25 + $0xf4] ss:$8 sps:$4 sm:$0xff]   ;;  %v6538_v5 = vld [vmem:[%s9590_s25 + $0xf0] ss:$8 sps:$4 sm:$0xff]   ;;  %v6543_v6 = vld [vmem:[%s9591_s24 + $0x4] ss:$8 sps:$4 sm:$0xff]  }
  0x1f   :  { %285 = vmatprep.subr.bf16.mxu0 %v6463_v12  ;;  %v6541_v7 = vld [vmem:[%s9591_s24] ss:$8 sps:$4 sm:$0xff]   ;;  %v6546_v8 = vld [vmem:[%s9591_s24 + $0x14] ss:$8 sps:$4 sm:$0xff]   ;;  %v6544_v9 = vld [vmem:[%s9591_s24 + $0x10] ss:$8 sps:$4 sm:$0xff]  }
  0x20   :  { %v6549_v10 = vld [vmem:[%s9591_s24 + $0x24] ss:$8 sps:$4 sm:$0xff]   ;;  %v6547_v11 = vld [vmem:[%s9591_s24 + $0x20] ss:$8 sps:$4 sm:$0xff]   ;;  %v6552_v12 = vld [vmem:[%s9591_s24 + $0x34] ss:$8 sps:$4 sm:$0xff]  }
  0x21   :  { %v6550_v13 = vld [vmem:[%s9591_s24 + $0x30] ss:$8 sps:$4 sm:$0xff]   ;;  %v6555_v14 = vld [vmem:[%s9591_s24 + $0x44] ss:$8 sps:$4 sm:$0xff]  }
  0x22   :  { %286 = vmatpush1.bf16.msra.mxu0 %v6465_v16  ;;  %v6558_v16 = vld [vmem:[%s9591_s24 + $0x54] ss:$8 sps:$4 sm:$0xff]  }
  0x23   :  { %287 = vmatprep.subr.bf16.mxu0 %v6466_v17  ;;  %v6556_v17 = vld [vmem:[%s9591_s24 + $0x50] ss:$8 sps:$4 sm:$0xff]  }
  0x24   :  { %v7483_v35 = vld [vmem:[%s9564_s17 + $0x10] sm:$0xff]   ;;  %v7488_v36 = vld [vmem:[%s9564_s17 + $0x58] sm:$0xff]  }
  0x26   :  { %288 = vmatpush1.bf16.msra.mxu0 %v6468_v18  ;;  %v6561_v18 = vld [vmem:[%s9591_s24 + $0x64] ss:$8 sps:$4 sm:$0xff]  }
  0x27   :  { %289 = vmatprep.subr.bf16.mxu0 %v6469_v19  ;;  %v6559_v19 = vld [vmem:[%s9591_s24 + $0x60] ss:$8 sps:$4 sm:$0xff]  }
  0x2a   :  { %290 = vmatpush1.bf16.msra.mxu0 %v6471_v20  ;;  %v6564_v20 = vld [vmem:[%s9591_s24 + $0x74] ss:$8 sps:$4 sm:$0xff]  }
  0x2b   :  { %291 = vmatprep.subr.bf16.mxu0 %v6472_v21  ;;  %v6562_v21 = vld [vmem:[%s9591_s24 + $0x70] ss:$8 sps:$4 sm:$0xff]  }
  0x2e   :  { %292 = vmatpush1.bf16.msra.mxu0 %v6474_v22  ;;  %v6567_v22 = vld [vmem:[%s9591_s24 + $0x84] ss:$8 sps:$4 sm:$0xff]  }
  0x2f   :  { %293 = vmatprep.subr.bf16.mxu0 %v6475_v23  ;;  %v6565_v23 = vld [vmem:[%s9591_s24 + $0x80] ss:$8 sps:$4 sm:$0xff]  }
  0x32   :  { %294 = vmatpush1.bf16.msra.mxu0 %v6477_v24  ;;  %v6570_v24 = vld [vmem:[%s9591_s24 + $0x94] ss:$8 sps:$4 sm:$0xff]  }
  0x33   :  { %295 = vmatprep.subr.bf16.mxu0 %v6478_v25  ;;  %v6568_v25 = vld [vmem:[%s9591_s24 + $0x90] ss:$8 sps:$4 sm:$0xff]  }
  0x36   :  { %296 = vmatpush1.bf16.msra.mxu0 %v6480_v26  ;;  %v7441_v26 = vld [vmem:[%s9564_s17 + $0x40] sm:$0xff]  }
  0x37   :  { %297 = vmatprep.subr.bf16.mxu0 %v6481_v27  ;;  %v7446_v27 = vld [vmem:[%s9564_s17] sm:$0xff]   ;;  %6346 = vmatprep.subr.bf16.mxu1 %v7441_v26 }
  0x38   :  { %6347 = vmatpush3.bf16.msra.mxu1 %v7446_v27 }
  0x3a   :  { %298 = vmatpush1.bf16.msra.mxu0 %v6483_v28  ;;  %v7452_v28 = vld [vmem:[%s9564_s17 + $0x48] sm:$0xff]  }
  0x3b   :  { %299 = vmatprep.subr.bf16.mxu0 %v6484_v29  ;;  %v6573_v29 = vld [vmem:[%s9591_s24 + $0xa4] ss:$8 sps:$4 sm:$0xff]   ;;  %6348 = vmatprep.subr.bf16.mxu1 %v7452_v28 }
  0x3e   :  { %300 = vmatpush1.bf16.msra.mxu0 %v6486_v30  ;;  %v6571_v30 = vld [vmem:[%s9591_s24 + $0xa0] ss:$8 sps:$4 sm:$0xff]  }
  0x3f   :  { %301 = vmatprep.subr.bf16.mxu0 %v6487_v31  ;;  %v7465_v31 = vld [vmem:[%s9564_s17 + $0x8] sm:$0xff]  }
  0x40   :  { %6349 = vmatpush3.bf16.msra.mxu1 %v7465_v31 }
  0x42   :  { %302 = vmatpush1.bf16.msra.mxu0 %v6489_v32  ;;  %v7470_v32 = vld [vmem:[%s9564_s17 + $0x50] sm:$0xff]  }
  0x43   :  { %303 = vmatprep.subr.bf16.mxu0 %v6490_v33  ;;  %v6576_v33 = vld [vmem:[%s9591_s24 + $0xb4] ss:$8 sps:$4 sm:$0xff]   ;;  %6350 = vmatprep.subr.bf16.mxu1 %v7470_v32 }
  0x44   :  { %6351 = vmatpush3.bf16.msra.mxu1 %v7483_v35 }
  0x45   :  { %6352 = vmatprep.subr.bf16.mxu1 %v7488_v36 }
  0x46   :  { %304 = vmatpush1.bf16.msra.mxu0 %v6492_v34  ;;  %v6574_v34 = vld [vmem:[%s9591_s24 + $0xb0] ss:$8 sps:$4 sm:$0xff]  }
  0x47   :  { %520 = vmatprep.subr.bf16.mxu0 %v6495_v37  ;;  %v6579_v37 = vld [vmem:[%s9591_s24 + $0xc4] ss:$8 sps:$4 sm:$0xff]  }
  0x49   :  { %306 = vmatmul.mubr.bf16.vlgmr.msra.gmra.mrb[0].mxu0 %v7279_v38 }
  0x4a   :  { %521 = vmatpush1.bf16.msra.mxu0 %v6493_v39  ;;  %552 = vmatprep.mubr.bf16.mxu0 %v7210_v15  ;;  %v7497_v39 = vld [vmem:[%s9564_s17 + $0x18] sm:$0xff]  }
  0x4b   :  { %522 = vmatprep.subr.bf16.mxu0 %v6498_v40  ;;  %v6577_v40 = vld [vmem:[%s9591_s24 + $0xc0] ss:$8 sps:$4 sm:$0xff]   ;;  %6353 = vmatpush3.bf16.msra.mxu1 %v7497_v39 }
  0x4e   :  { %523 = vmatpush1.bf16.msra.mxu0 %v6496_v41  ;;  %v7506_v41 = vld [vmem:[%s9564_s17 + $0x60] sm:$0xff]  }
  0x4f   :  { %524 = vmatprep.subr.bf16.mxu0 %v6501_v42  ;;  %v6582_v42 = vld [vmem:[%s9591_s24 + $0xd4] ss:$8 sps:$4 sm:$0xff]   ;;  %6354 = vmatprep.subr.bf16.mxu1 %v7506_v41 }
  0x52   :  { %525 = vmatpush1.bf16.msra.mxu0 %v6499_v43  ;;  %v7516_v43 = vld [vmem:[%s9564_s17 + $0x20] sm:$0xff]  }
  0x53   :  { %526 = vmatprep.subr.bf16.mxu0 %v6504_v44  ;;  %v6580_v44 = vld [vmem:[%s9591_s24 + $0xd0] ss:$8 sps:$4 sm:$0xff]   ;;  %6355 = vmatpush3.bf16.msra.mxu1 %v7516_v43 }
  0x56   :  { %527 = vmatpush1.bf16.msra.mxu0 %v6502_v45  ;;  %v7524_v45 = vld [vmem:[%s9564_s17 + $0x68] sm:$0xff]  }
  0x57   :  { %528 = vmatprep.subr.bf16.mxu0 %v6507_v46  ;;  %v6585_v46 = vld [vmem:[%s9591_s24 + $0xe4] ss:$8 sps:$4 sm:$0xff]   ;;  %6356 = vmatprep.subr.bf16.mxu1 %v7524_v45 }
  0x5a   :  { %529 = vmatpush1.bf16.msra.mxu0 %v6505_v47  ;;  %v7534_v47 = vld [vmem:[%s9564_s17 + $0x28] sm:$0xff]  }
  0x5b   :  { %530 = vmatprep.subr.bf16.mxu0 %v6510_v48  ;;  %v6583_v48 = vld [vmem:[%s9591_s24 + $0xe0] ss:$8 sps:$4 sm:$0xff]   ;;  %6357 = vmatpush3.bf16.msra.mxu1 %v7534_v47 }
  0x5e   :  { %531 = vmatpush1.bf16.msra.mxu0 %v6508_v49  ;;  %v6588_v49 = vld [vmem:[%s9591_s24 + $0xf4] ss:$8 sps:$4 sm:$0xff]  }
  0x5f   :  { %532 = vmatprep.subr.bf16.mxu0 %v6513_v50  ;;  %v6586_v50 = vld [vmem:[%s9591_s24 + $0xf0] ss:$8 sps:$4 sm:$0xff]  }
  0x62   :  { %533 = vmatpush1.bf16.msra.mxu0 %v6511_v51  ;;  %v7566_v51 = vld [vmem:[%s9564_s17 + $0x30] sm:$0xff]  }
  0x63   :  { %534 = vmatprep.subr.bf16.mxu0 %v6516_v52  ;;  %v7575_v52 = vld [vmem:[%s9564_s17 + $0x78] sm:$0xff]  }
  0x66   :  { %535 = vmatpush1.bf16.msra.mxu0 %v6514_v53  ;;  %v7580_v53 = vld [vmem:[%s9564_s17 + $0x38] sm:$0xff]  }
  0x67   :  { %536 = vmatprep.subr.bf16.mxu0 %v6519_v54  ;;  %v103_v54 = vlaneseq }
  0x6a   :  { %537 = vmatpush1.bf16.msra.mxu0 %v6517_v55  ;;  %v7587_v55 = vshrl.u32 %v103_v54, 7 }
  0x6b   :  { %538 = vmatprep.subr.bf16.mxu0 %v6522_v56 }
  0x6c   :  { %v7590_v56 = vsub.s32 0, %v7587_v55 }
  0x6e   :  { %539 = vmatpush1.bf16.msra.mxu0 %v6520_v57  ;;  %v101_v57 = vld [vmem:[%s9565_s4] sm:$0x3] }
  0x6f   :  { %540 = vmatprep.subr.bf16.mxu0 %v6525_v58  ;;  %v7596_v58 = vsub.s32 1, %v7587_v55 }
  0x72   :  { %541 = vmatpush1.bf16.msra.mxu0 %v6523_v59  ;;  %v106_v59 = vrot.slane %v101_v57, %v7590_v56 }
  0x73   :  { %542 = vmatprep.subr.bf16.mxu0 %v6528_v60 }
  0x76   :  { %543 = vmatpush1.bf16.msra.mxu0 %v6526_v61 }
  0x77   :  { %544 = vmatprep.subr.bf16.mxu0 %v6531_v62  ;;  %v110_v62 = vrot.slane %v101_v57, %v7596_v58 }
  0x7a   :  { %545 = vmatpush1.bf16.msra.mxu0 %v6529_v63 }
  0x7b   :  { %546 = vmatprep.subr.bf16.mxu0 %v6534_v0 }
  0x7e   :  { %547 = vmatpush1.bf16.msra.mxu0 %v6532_v1 }
  0x7f   :  { %548 = vmatprep.subr.bf16.mxu0 %v6537_v2 }
  0x82   :  { %549 = vmatpush1.bf16.msra.mxu0 %v6535_v3  ;;  %v348_v3 = vld [vmem:[%s9566_s5] sm:$0x3] }
  0x83   :  { %550 = vmatprep.subr.bf16.mxu0 %v6540_v4 }
  0x86   :  { %551 = vmatpush1.bf16.msra.mxu0 %v6538_v5  ;;  %v353_v5 = vrot.slane %v348_v3, %v7590_v56 }
  0x87   :  { %767 = vmatprep.subr.bf16.mxu0 %v6543_v6 }
  0x89   :  { %553 = vmatmul.mubr.bf16.vlgmr.msra.gmra.mrb[4].mxu0 %v7279_v38 }
  0x8a   :  { %768 = vmatpush1.bf16.msra.mxu0 %v6541_v7  ;;  %799 = vmatprep.mubr.bf16.mxu0 %v7210_v15  ;;  %v6553_v15 = vld [vmem:[%s9591_s24 + $0x40] ss:$8 sps:$4 sm:$0xff]   ;;  %v357_v7 = vrot.slane %v348_v3, %v7596_v58 }
  0x8b   :  { %769 = vmatprep.subr.bf16.mxu0 %v6546_v8 }
  0x8e   :  { %770 = vmatpush1.bf16.msra.mxu0 %v6544_v9 }
  0x8f   :  { %771 = vmatprep.subr.bf16.mxu0 %v6549_v10 }
  0x92   :  { %772 = vmatpush1.bf16.msra.mxu0 %v6547_v11 }
  0x93   :  { %773 = vmatprep.subr.bf16.mxu0 %v6552_v12 }
  0x96   :  { %774 = vmatpush1.bf16.msra.mxu0 %v6550_v13 }
  0x97   :  { %775 = vmatprep.subr.bf16.mxu0 %v6555_v14 }
  0x9a   :  { %776 = vmatpush1.bf16.msra.mxu0 %v6553_v15 }
  0x9b   :  { %777 = vmatprep.subr.bf16.mxu0 %v6558_v16 }
  0x9e   :  { %778 = vmatpush1.bf16.msra.mxu0 %v6556_v17 }
  0x9f   :  { %779 = vmatprep.subr.bf16.mxu0 %v6561_v18 }
  0xa2   :  { %780 = vmatpush1.bf16.msra.mxu0 %v6559_v19 }
  0xa3   :  { %781 = vmatprep.subr.bf16.mxu0 %v6564_v20 }
  0xa6   :  { %782 = vmatpush1.bf16.msra.mxu0 %v6562_v21 }
  0xa7   :  { %783 = vmatprep.subr.bf16.mxu0 %v6567_v22 }
  0xaa   :  { %784 = vmatpush1.bf16.msra.mxu0 %v6565_v23 }
  0xab   :  { %785 = vmatprep.subr.bf16.mxu0 %v6570_v24 }
  0xae   :  { %786 = vmatpush1.bf16.msra.mxu0 %v6568_v25 }
  0xaf   :  { %787 = vmatprep.subr.bf16.mxu0 %v6573_v29 }
  0xb2   :  { %788 = vmatpush1.bf16.msra.mxu0 %v6571_v30 }
  0xb3   :  { %789 = vmatprep.subr.bf16.mxu0 %v6576_v33 }
  0xb6   :  { %790 = vmatpush1.bf16.msra.mxu0 %v6574_v34 }
  0xb7   :  { %791 = vmatprep.subr.bf16.mxu0 %v6579_v37 }
  0xba   :  { %792 = vmatpush1.bf16.msra.mxu0 %v6577_v40 }
  0xbb   :  { %793 = vmatprep.subr.bf16.mxu0 %v6582_v42 }
  0xbe   :  { %794 = vmatpush1.bf16.msra.mxu0 %v6580_v44 }
  0xbf   :  { %795 = vmatprep.subr.bf16.mxu0 %v6585_v46 }
  0xc2   :  { %796 = vmatpush1.bf16.msra.mxu0 %v6583_v48 }
  0xc3   :  { %797 = vmatprep.subr.bf16.mxu0 %v6588_v49  ;;  %v846_v49 = vld [vmem:[%s9567_s18] sm:$0xff] }
  0xc4   :  { %v7624_v54 = vcombine.high %v846_v49, %v846_v49  ;;  %v5770_v57 = vcombine.low %v846_v49, %v846_v49 }
  0xc6   :  { %798 = vmatpush1.bf16.msra.mxu0 %v6586_v50  ;;  %v7064_v50 = vmov 0  }
  0xc7   :  { %6324 = vmatprep.subr.bf16.mxu0 %v7441_v26 }
  0xc9   :  { %800 = vmatmul.mubr.bf16.vlgmr.msra.gmra.mrb[8].mxu0 %v7279_v38  ;;  %v7561_v38 = vld [vmem:[%s9564_s17 + $0x70] sm:$0xff]  }
  0xca   :  { %6325 = vmatpush3.bf16.msra.mxu0 %v7446_v27  ;;  %6358 = vmatprep.subr.bf16.mxu1 %v7561_v38 }
  0xcb   :  { %6326 = vmatprep.subr.bf16.mxu0 %v7452_v28  ;;  %6359 = vmatpush3.bf16.msra.mxu1 %v7566_v51 }
  0xcc   :  { %6360 = vmatprep.subr.bf16.mxu1 %v7575_v52 }
  0xce   :  { %6327 = vmatpush3.bf16.msra.mxu0 %v7465_v31 }
  0xcf   :  { %6328 = vmatprep.subr.bf16.mxu0 %v7470_v32  ;;  %6361 = vmatpush3.bf16.msra.mxu1 %v7580_v53 }
  0xd0   :  { %5774 = vmatprep.subr.msk.bf16.mxu1 %vm1051_vm0, %v7624_v54 }
  0xd2   :  { %6329 = vmatpush3.bf16.msra.mxu0 %v7483_v35 }
  0xd3   :  { %6330 = vmatprep.subr.bf16.mxu0 %v7488_v36 }
  0xd6   :  { %6331 = vmatpush3.bf16.msra.mxu0 %v7497_v39 }
  0xd7   :  { %6332 = vmatprep.subr.bf16.mxu0 %v7506_v41 }
  0xda   :  { %6333 = vmatpush3.bf16.msra.mxu0 %v7516_v43 }
  0xdb   :  { %6334 = vmatprep.subr.bf16.mxu0 %v7524_v45 }
  0xde   :  { %6335 = vmatpush3.bf16.msra.mxu0 %v7534_v47 }
  0xdf   :  { %6336 = vmatprep.subr.bf16.mxu0 %v7561_v38 }
  0xe2   :  { %6337 = vmatpush3.bf16.msra.mxu0 %v7566_v51 }
  0xe3   :  { %6338 = vmatprep.subr.bf16.mxu0 %v7575_v52 }
  0xe6   :  { %6339 = vmatpush3.bf16.msra.mxu0 %v7580_v53 }
  0xe7   :  { %5772 = vmatprep.subr.msk.bf16.mxu0 %vm1051_vm0, %v7624_v54 }
 0x11c   :  { %v307_v60 = vpop.f32.mrb[0].mxu0 }
 0x11d   :  { %v309_v61 = vpop.f32.mrb[1].mxu0  ;;  %v308_v4 = vadd.f32 %v307_v60, %v106_v59 }
 0x11e   :  { %v311_v63 = vpop.f32.mrb[2].mxu0  ;;  %v310_v6 = vadd.f32 %v309_v61, %v110_v62 }
 0x11f   :  { %v312_v0 = vadd.f32 %v311_v63, %v106_v59  ;;  %v313_v1 = vpop.f32.mrb[3].mxu0  ;;  %v810_v9 = vmul.f32 0.17677669, %v308_v4  ;;  %v7631_v59 = vsel %vm1051_vm0, %v5770_v57, 0 }
 0x120   :  { %v314_v2 = vadd.f32 %v313_v1, %v110_v62  ;;  %v811_v13 = vmul.f32 0.17677669, %v310_v6 }
 0x121   :  { %v812_v10 = vmul.f32 0.17677669, %v312_v0 }
 0x122   :  { %v813_v14 = vmul.f32 0.17677669, %v314_v2 }
 0x15c   :  { %v554_v8 = vpop.f32.mrb[4].mxu0 }
 0x15d   :  { %v555_v11 = vadd.f32 %v554_v8, %v353_v5  ;;  %v556_v12 = vpop.f32.mrb[5].mxu0 }
 0x15e   :  { %v557_v15 = vadd.f32 %v556_v12, %v357_v7  ;;  %v558_v16 = vpop.f32.mrb[6].mxu0 }
 0x15f   :  { %v847_v17 = vmul.f32 %v810_v9, %v555_v11  ;;  %v7605_v18 = vmul.f32 %v812_v10, %v555_v11  ;;  %v559_v19 = vadd.f32 %v558_v16, %v353_v5  ;;  %v560_v20 = vpop.f32.mrb[7].mxu0 }
 0x160   :  { %v848_v21 = vmul.f32 %v811_v13, %v557_v15  ;;  %v7607_v22 = vmul.f32 %v813_v14, %v557_v15  ;;  %v561_v23 = vadd.f32 %v560_v20, %v357_v7 }
 0x161   :  { %v987_v24 = vmul.f32 %v810_v9, %v559_v19  ;;  %v7609_v25 = vmul.f32 %v812_v10, %v559_v19  ;;  %v849_v34 = vpack.c.bf16 %v847_v17, %v847_v17 }
 0x162   :  { %v850_v29 = vpack.c.bf16 %v848_v21, %v848_v21  ;;  %v1200_v30 = vmul.f32 %v813_v14, %v561_v23  ;;  %v988_v33 = vmul.f32 %v811_v13, %v561_v23  ;;  %v1158_v19 = vpack.c.bf16 %v7607_v22, %v7607_v22 }
 0x163   :  { %v989_v40 = vpack.c.bf16 %v987_v24, %v987_v24 }
 0x164   :  { %979 = vmatprep.mubr.bf16.mxu0 %v850_v29  ;;  %v990_v37 = vpack.c.bf16 %v988_v33, %v988_v33  ;;  %v1202_v20 = vpack.c.bf16 %v1200_v30, %v1200_v30 }
 0x165   :  { %980 = vmatmul.mubr.bf16.vlgmr.msra.gmra.mrb[12].mxu0 %v849_v34 }
 0x166   :  { %1023 = vmatprep.mubr.bf16.mxu1 %v990_v37  ;;  %1090 = vmatprep.mubr.bf16.mxu0 %v7064_v50 }
 0x167   :  { %1024 = vmatmul.mubr.bf16.vlgmr.msra.gmra.mrb[0].mxu1 %v989_v40  ;;  %1059 = vmatpush1.bf16.msra.mxu0 %v7631_v59 }
 0x168   :  { %1140 = vmatprep.mubr.bf16.mxu1 %v7064_v50  ;;  %1109 = vmatpush1.bf16.msra.mxu1 %v7631_v59 }
 0x169   :  { %6368 = vmatprep.subr.bf16.mxu0 %v7441_v26  ;;  %6390 = vmatprep.subr.bf16.mxu1 %v7441_v26 }
 0x19c   :  { %v7611_v42 = vpop.f32.mrb[8].mxu0 }
 0x19d   :  { %v7613_v44 = vpop.f32.mrb[9].mxu0 }
 0x19e   :  { %v7615_v46 = vpop.f32.mrb[10].mxu0 }
 0x19f   :  { %v7617_v48 = vpop.f32.mrb[11].mxu0 }
 0x238   :  { %v6340_v60 = vpop.f32.mrb[12].mxu0 }
 0x239   :  { %v6341_v61 = vpop.f32.mrb[13].mxu0 }
 0x23a   :  { %v6342_v62 = vadd.f32 %v6341_v61, %v6340_v60  ;;  %v6343_v63 = vpop.f32.mrb[14].mxu0  ;;  %v6362_v0 = vpop.f32.mrb[0].mxu1 }
 0x23b   :  { %v6344_v1 = vpop.f32.mrb[15].mxu0  ;;  %v6363_v2 = vpop.f32.mrb[1].mxu1 }
 0x23c   :  { %v6364_v3 = vadd.f32 %v6363_v2, %v6362_v0  ;;  %v6365_v4 = vpop.f32.mrb[2].mxu1 }
 0x23d   :  { %v6366_v5 = vpop.f32.mrb[3].mxu1 }
 0x23e   :  { %v1031_v6 = vmax.f32 %v6342_v62, %v6364_v3  ;;  %v6607_v5 = vld [vmem:[%s9568_s7] ss:$8 sps:$4 sm:$0xff]  }
 0x240   :  { %v1032_v7 = vsub.f32 %v6342_v62, %v1031_v6  ;;  %v1035_v8 = vsub.f32 %v6364_v3, %v1031_v6 }
 0x242   :  { %v1033_v9 = vmul.f32 1.442695, %v1032_v7  ;;  %v1036_v10 = vmul.f32 1.442695, %v1035_v8  ;;  %v6612_v8 = vld [vmem:[%s9568_s7 + $0x14] ss:$8 sps:$4 sm:$0xff]  }
 0x244   :  { %7039 = vpow2.f32 %v1033_v9  ;;  %v6610_v9 = vld [vmem:[%s9568_s7 + $0x10] ss:$8 sps:$4 sm:$0xff]  }
 0x245   :  { %7041 = vpow2.f32 %v1036_v10  ;;  %v6615_v10 = vld [vmem:[%s9568_s7 + $0x24] ss:$8 sps:$4 sm:$0xff]  }
 0x24e   :  { %v7040_v11 = vpop.eup %7039 }
 0x24f   :  { %v7042_v12 = vpop.eup %7041 }
 0x250   :  { %v1038_v26 = vadd.f32 %v7042_v12, %v7040_v11 }
 0x252   :  { %7043 = vrcp.f32 %v1038_v26  ;;  %v6616_v26 = vld [vmem:[%s9568_s7 + $0x30] ss:$8 sps:$4 sm:$0xff]  }
 0x25c   :  { %v7044_v13 = vpop.eup %7043 }
 0x25d   :  { %v1040_v14 = vmul.f32 %v7044_v13, %v7040_v11  ;;  %v1103_v15 = vmul.f32 %v7044_v13, %v7042_v12  ;;  %v6613_v11 = vld [vmem:[%s9568_s7 + $0x20] ss:$8 sps:$4 sm:$0xff]   ;;  %v6618_v12 = vld [vmem:[%s9568_s7 + $0x34] ss:$8 sps:$4 sm:$0xff]   ;;  %v6621_v13 = vld [vmem:[%s9568_s7 + $0x44] ss:$8 sps:$4 sm:$0xff]  }
 0x25f   :  { %v1041_v16 = vpack.c.bf16 %v1040_v14, %v1040_v14  ;;  %v1104_v17 = vpack.c.bf16 %v1103_v15, %v1103_v15  ;;  %v6619_v14 = vld [vmem:[%s9568_s7 + $0x40] ss:$8 sps:$4 sm:$0xff]   ;;  %v6624_v15 = vld [vmem:[%s9568_s7 + $0x54] ss:$8 sps:$4 sm:$0xff]  }
 0x261   :  { %5773 = vmatmul.mubr.msk.bf16.vlgmr.msra.gmra.mrb[16].mxu0 %vm1047_vm1, %v1041_v16  ;;  %5775 = vmatmul.mubr.msk.bf16.vlgmr.msra.gmra.mrb[4].mxu1 %vm1047_vm1, %v1104_v17  ;;  %v6622_v16 = vld [vmem:[%s9568_s7 + $0x50] ss:$8 sps:$4 sm:$0xff]   ;;  %v6627_v17 = vld [vmem:[%s9568_s7 + $0x64] ss:$8 sps:$4 sm:$0xff]  }
 0x262   :  { %6369 = vmatpush3.bf16.msra.mxu0 %v7446_v27  ;;  %6391 = vmatpush3.bf16.msra.mxu1 %v7446_v27  ;;  %v1157_v27 = vpack.c.bf16 %v7605_v18, %v7605_v18 }
 0x263   :  { %1191 = vmatprep.mubr.bf16.mxu0 %v1158_v19  ;;  %1235 = vmatprep.mubr.bf16.mxu1 %v1202_v20  ;;  %v6625_v19 = vld [vmem:[%s9568_s7 + $0x60] ss:$8 sps:$4 sm:$0xff]   ;;  %v6630_v20 = vld [vmem:[%s9568_s7 + $0x74] ss:$8 sps:$4 sm:$0xff]  }
 0x264   :  { %6370 = vmatprep.subr.bf16.mxu0 %v7452_v28  ;;  %6392 = vmatprep.subr.bf16.mxu1 %v7452_v28  ;;  %v1201_v28 = vpack.c.bf16 %v7609_v25, %v7609_v25 }
 0x266   :  { %6371 = vmatpush3.bf16.msra.mxu0 %v7465_v31  ;;  %6393 = vmatpush3.bf16.msra.mxu1 %v7465_v31  ;;  %v6609_v31 = vld [vmem:[%s9568_s7 + $0x4] ss:$8 sps:$4 sm:$0xff]  }
 0x267   :  { %6372 = vmatprep.subr.bf16.mxu0 %v7470_v32  ;;  %6394 = vmatprep.subr.bf16.mxu1 %v7470_v32  ;;  %v595_v32 = vld [vmem:[%s9569_s6] sm:$0x3] }
 0x26a   :  { %6373 = vmatpush3.bf16.msra.mxu0 %v7483_v35  ;;  %6395 = vmatpush3.bf16.msra.mxu1 %v7483_v35  ;;  %v600_v35 = vrot.slane %v595_v32, %v7590_v56 }
 0x26b   :  { %6374 = vmatprep.subr.bf16.mxu0 %v7488_v36  ;;  %6396 = vmatprep.subr.bf16.mxu1 %v7488_v36  ;;  %v604_v36 = vrot.slane %v595_v32, %v7596_v58  ;;  %v6636_v32 = vld [vmem:[%s9568_s7 + $0x94] ss:$8 sps:$4 sm:$0xff]  }
 0x26e   :  { %6375 = vmatpush3.bf16.msra.mxu0 %v7497_v39  ;;  %6397 = vmatpush3.bf16.msra.mxu1 %v7497_v39  ;;  %v7692_v39 = vadd.f32 %v7611_v42, %v600_v35 }
 0x26f   :  { %6376 = vmatprep.subr.bf16.mxu0 %v7506_v41  ;;  %6398 = vmatprep.subr.bf16.mxu1 %v7506_v41  ;;  %v7695_v41 = vadd.f32 %v7615_v46, %v600_v35  ;;  %v6634_v35 = vld [vmem:[%s9568_s7 + $0x90] ss:$8 sps:$4 sm:$0xff]  }
 0x272   :  { %6377 = vmatpush3.bf16.msra.mxu0 %v7516_v43  ;;  %6399 = vmatpush3.bf16.msra.mxu1 %v7516_v43  ;;  %v7698_v43 = vadd.f32 %v7613_v44, %v604_v36 }
 0x273   :  { %6378 = vmatprep.subr.bf16.mxu0 %v7524_v45  ;;  %6400 = vmatprep.subr.bf16.mxu1 %v7524_v45  ;;  %v7701_v45 = vadd.f32 %v7617_v48, %v604_v36  ;;  %v6639_v36 = vld [vmem:[%s9568_s7 + $0xa4] ss:$8 sps:$4 sm:$0xff]  }
 0x276   :  { %6379 = vmatpush3.bf16.msra.mxu0 %v7534_v47  ;;  %6401 = vmatpush3.bf16.msra.mxu1 %v7534_v47 }
 0x277   :  { %6380 = vmatprep.subr.bf16.mxu0 %v7561_v38  ;;  %6402 = vmatprep.subr.bf16.mxu1 %v7561_v38 }
 0x27a   :  { %6381 = vmatpush3.bf16.msra.mxu0 %v7566_v51  ;;  %6403 = vmatpush3.bf16.msra.mxu1 %v7566_v51 }
 0x27b   :  { %6382 = vmatprep.subr.bf16.mxu0 %v7575_v52  ;;  %6404 = vmatprep.subr.bf16.mxu1 %v7575_v52 }
 0x27e   :  { %6383 = vmatpush3.bf16.msra.mxu0 %v7580_v53  ;;  %6405 = vmatpush3.bf16.msra.mxu1 %v7580_v53 }
 0x27f   :  { %5776 = vmatprep.subr.msk.bf16.mxu0 %vm1051_vm0, %v7624_v54  ;;  %5778 = vmatprep.subr.msk.bf16.mxu1 %vm1051_vm0, %v7624_v54 }
 0x281   :  { %1192 = vmatmul.mubr.bf16.vlgmr.msra.gmra.mrb[20].mxu0 %v1157_v27  ;;  %1236 = vmatmul.mubr.bf16.vlgmr.msra.gmra.mrb[8].mxu1 %v1201_v28  ;;  %v6628_v27 = vld [vmem:[%s9568_s7 + $0x70] ss:$8 sps:$4 sm:$0xff]   ;;  %v6633_v28 = vld [vmem:[%s9568_s7 + $0x84] ss:$8 sps:$4 sm:$0xff]  }
 0x282   :  { %1258 = vmatpush1.bf16.msra.mxu0 %v7631_v59  ;;  %1308 = vmatpush1.bf16.msra.mxu1 %v7631_v59 }
 0x283   :  { %1289 = vmatprep.mubr.bf16.mxu0 %v7064_v50  ;;  %1339 = vmatprep.mubr.bf16.mxu1 %v7064_v50 }
 0x284   :  { %1564 = vmatprep.subr.bf16.mxu0 %v6609_v31  ;;  %v6631_v31 = vld [vmem:[%s9568_s7 + $0x80] ss:$8 sps:$4 sm:$0xff]  }
 0x334   :  { %v1092_v47 = vpop.f32.mrb[16].mxu0  ;;  %v1142_v38 = vpop.f32.mrb[4].mxu1 }
 0x335   :  { %v1099_v51 = vmul.f32 %v1092_v47, %v7692_v39  ;;  %v1149_v52 = vmul.f32 %v1142_v38, %v7695_v41  ;;  %v1094_v53 = vpop.f32.mrb[17].mxu0  ;;  %v1144_v18 = vpop.f32.mrb[5].mxu1  ;;  %v6637_v47 = vld [vmem:[%s9568_s7 + $0xa0] ss:$8 sps:$4 sm:$0xff]   ;;  %v6642_v38 = vld [vmem:[%s9568_s7 + $0xb4] ss:$8 sps:$4 sm:$0xff]  }
 0x336   :  { %v1100_v21 = vmul.f32 %v1094_v53, %v7698_v43  ;;  %v1150_v22 = vmul.f32 %v1144_v18, %v7701_v45  ;;  %v1096_v23 = vpop.f32.mrb[18].mxu0  ;;  %v1146_v24 = vpop.f32.mrb[6].mxu1  ;;  %v6643_v53 = vld [vmem:[%s9568_s7 + $0xc0] ss:$8 sps:$4 sm:$0xff]   ;;  %v6648_v18 = vld [vmem:[%s9568_s7 + $0xd4] ss:$8 sps:$4 sm:$0xff]  }
 0x337   :  { %v7707_v25 = vadd.f32 %v1149_v52, %v1099_v51  ;;  %v1097_v29 = vpop.f32.mrb[19].mxu0  ;;  %v1147_v30 = vpop.f32.mrb[7].mxu1  ;;  %v6640_v51 = vld [vmem:[%s9568_s7 + $0xb0] ss:$8 sps:$4 sm:$0xff]   ;;  %v6645_v52 = vld [vmem:[%s9568_s7 + $0xc4] ss:$8 sps:$4 sm:$0xff]  }
 0x338   :  { %v7709_v33 = vadd.f32 %v1150_v22, %v1100_v21  ;;  %v6646_v21 = vld [vmem:[%s9568_s7 + $0xd0] ss:$8 sps:$4 sm:$0xff]   ;;  %v6651_v22 = vld [vmem:[%s9568_s7 + $0xe4] ss:$8 sps:$4 sm:$0xff]   ;;  %v6649_v23 = vld [vmem:[%s9568_s7 + $0xe0] ss:$8 sps:$4 sm:$0xff]  }
 0x339   :  { %v6654_v24 = vld [vmem:[%s9568_s7 + $0xf4] ss:$8 sps:$4 sm:$0xff]   ;;  %v6652_v29 = vld [vmem:[%s9568_s7 + $0xf0] ss:$8 sps:$4 sm:$0xff]  }
 0x354   :  { %v6384_v34 = vpop.f32.mrb[20].mxu0  ;;  %v6406_v37 = vpop.f32.mrb[8].mxu1 }
 0x355   :  { %v6385_v40 = vpop.f32.mrb[21].mxu0  ;;  %v6407_v42 = vpop.f32.mrb[9].mxu1 }
 0x356   :  { %v6386_v44 = vadd.f32 %v6385_v40, %v6384_v34  ;;  %v6408_v46 = vadd.f32 %v6407_v42, %v6406_v37  ;;  %v6387_v48 = vpop.f32.mrb[22].mxu0  ;;  %v6409_v49 = vpop.f32.mrb[10].mxu1 }
 0x357   :  { %v6388_v50 = vpop.f32.mrb[23].mxu0  ;;  %v6410_v54 = vpop.f32.mrb[11].mxu1 }
 0x358   :  { %v1243_v57 = vmax.f32 %v6386_v44, %v6408_v46 }
 0x35a   :  { %v1244_v59 = vsub.f32 %v6386_v44, %v1243_v57  ;;  %v1247_v60 = vsub.f32 %v6408_v46, %v1243_v57 }
 0x35c   :  { %v1245_v61 = vmul.f32 1.442695, %v1244_v59  ;;  %v1248_v62 = vmul.f32 1.442695, %v1247_v60 }
 0x35e   :  { %7045 = vpow2.f32 %v1245_v61 }
 0x35f   :  { %7047 = vpow2.f32 %v1248_v62 }
 0x368   :  { %v7046_v63 = vpop.eup %7045 }
 0x369   :  { %v7048_v0 = vpop.eup %7047 }
 0x36a   :  { %v1250_v1 = vadd.f32 %v7048_v0, %v7046_v63 }
 0x36c   :  { %7049 = vrcp.f32 %v1250_v1 }
 0x376   :  { %v7050_v2 = vpop.eup %7049 }
 0x377   :  { %v1252_v3 = vmul.f32 %v7050_v2, %v7046_v63  ;;  %v1302_v4 = vmul.f32 %v7050_v2, %v7048_v0 }
 0x379   :  { %v1253_v6 = vpack.c.bf16 %v1252_v3, %v1252_v3  ;;  %v1303_v7 = vpack.c.bf16 %v1302_v4, %v1302_v4 }
 0x37b   :  { %5777 = vmatmul.mubr.msk.bf16.vlgmr.msra.gmra.mrb[24].mxu0 %vm1047_vm1, %v1253_v6  ;;  %5779 = vmatmul.mubr.msk.bf16.vlgmr.msra.gmra.mrb[12].mxu1 %vm1047_vm1, %v1303_v7  ;;  %v7060_v6 = vld [vmem:[%s9589_s1 + $0x8] sm:$0xff] }
 0x37c   :  { %1565 = vmatpush1.bf16.msra.mxu0 %v6607_v5 }
 0x37d   :  { %1566 = vmatprep.subr.bf16.mxu0 %v6612_v8  ;;  %v7061_v8 = vld [vmem:[%s9589_s1 + $0x10] sm:$0xff] }
 0x380   :  { %1567 = vmatpush1.bf16.msra.mxu0 %v6610_v9 }
 0x381   :  { %1568 = vmatprep.subr.bf16.mxu0 %v6615_v10  ;;  %v7062_v10 = vld [vmem:[%s9589_s1 + $0x18] sm:$0xff] }
 0x384   :  { %1569 = vmatpush1.bf16.msra.mxu0 %v6613_v11 }
 0x385   :  { %1570 = vmatprep.subr.bf16.mxu0 %v6618_v12 }
 0x388   :  { %1571 = vmatpush1.bf16.msra.mxu0 %v6616_v26 }
 0x389   :  { %1572 = vmatprep.subr.bf16.mxu0 %v6621_v13  ;;  %v1678_v13 = vld [vmem:[%s9571_s11] sm:$0xff] }
 0x38c   :  { %1573 = vmatpush1.bf16.msra.mxu0 %v6619_v14  ;;  %v1686_v14 = vld [vmem:[%s9571_s11 + $0x40] sm:$0xff] }
 0x38d   :  { %1574 = vmatprep.subr.bf16.mxu0 %v6624_v15  ;;  %v1682_v15 = vld [vmem:[%s9571_s11 + $0x20] sm:$0xff] }
 0x390   :  { %1575 = vmatpush1.bf16.msra.mxu0 %v6622_v16  ;;  %v5812_v16 = vcombine.low %v1678_v13, %v1686_v14 }
 0x391   :  { %1576 = vmatprep.subr.bf16.mxu0 %v6627_v17  ;;  %v5813_v17 = vcombine.high %v1678_v13, %v1686_v14  ;;  %v1802_v13 = vld [vmem:[%s9571_s11 + $0x3e0] sm:$0xff] }
 0x394   :  { %1577 = vmatpush1.bf16.msra.mxu0 %v6625_v19  ;;  %v1690_v19 = vld [vmem:[%s9571_s11 + $0x60] sm:$0xff] }
 0x395   :  { %1578 = vmatprep.subr.bf16.mxu0 %v6630_v20  ;;  %v1694_v20 = vld [vmem:[%s9571_s11 + $0x80] sm:$0xff] }
 0x398   :  { %1579 = vmatpush1.bf16.msra.mxu0 %v6628_v27  ;;  %v1702_v27 = vld [vmem:[%s9571_s11 + $0xc0] sm:$0xff] }
 0x399   :  { %1580 = vmatprep.subr.bf16.mxu0 %v6633_v28  ;;  %v5820_v28 = vcombine.low %v1682_v15, %v1690_v19 }
 0x39c   :  { %1581 = vmatpush1.bf16.msra.mxu0 %v6631_v31  ;;  %v5821_v31 = vcombine.high %v1682_v15, %v1690_v19  ;;  %v1806_v19 = vld [vmem:[%s9571_s11 + $0x400] sm:$0xff] }
 0x39d   :  { %1582 = vmatprep.subr.bf16.mxu0 %v6636_v32  ;;  %v5829_v32 = vcombine.high %v1694_v20, %v1702_v27 }
 0x39e   :  { %3470 = vmatprep.subr.bf16.mxu1 %v5821_v31 }
 0x39f   :  { %3471 = vmatpush1.bf16.msra.mxu1 %v5820_v28  ;;  %v1818_v28 = vld [vmem:[%s9571_s11 + $0x460] sm:$0xff] }
 0x3a0   :  { %1583 = vmatpush1.bf16.msra.mxu0 %v6634_v35  ;;  %v1698_v35 = vld [vmem:[%s9571_s11 + $0xa0] sm:$0xff] }
 0x3a1   :  { %1584 = vmatprep.subr.bf16.mxu0 %v6639_v36  ;;  %v1706_v36 = vld [vmem:[%s9571_s11 + $0xe0] sm:$0xff] }
 0x3a4   :  { %1585 = vmatpush1.bf16.msra.mxu0 %v6637_v47  ;;  %v1710_v47 = vld [vmem:[%s9571_s11 + $0x100] sm:$0xff] }
 0x3a5   :  { %1586 = vmatprep.subr.bf16.mxu0 %v6642_v38  ;;  %v5837_v38 = vcombine.high %v1698_v35, %v1706_v36 }
 0x3a7   :  { %3472 = vmatprep.subr.bf16.mxu1 %v5837_v38  ;;  %v1830_v38 = vld [vmem:[%s9571_s11 + $0x4c0] sm:$0xff] }
 0x3a8   :  { %1587 = vmatpush1.bf16.msra.mxu0 %v6640_v51  ;;  %v1718_v51 = vld [vmem:[%s9571_s11 + $0x140] sm:$0xff] }
 0x3a9   :  { %1588 = vmatprep.subr.bf16.mxu0 %v6645_v52  ;;  %v1714_v52 = vld [vmem:[%s9571_s11 + $0x120] sm:$0xff] }
 0x3ac   :  { %1589 = vmatpush1.bf16.msra.mxu0 %v6643_v53  ;;  %v1722_v53 = vld [vmem:[%s9571_s11 + $0x160] sm:$0xff] }
 0x3ad   :  { %1590 = vmatprep.subr.bf16.mxu0 %v6648_v18  ;;  %v5828_v18 = vcombine.low %v1694_v20, %v1702_v27  ;;  %v1814_v20 = vld [vmem:[%s9571_s11 + $0x440] sm:$0xff] }
 0x3ae   :  { %v1810_v27 = vld [vmem:[%s9571_s11 + $0x420] sm:$0xff] }
 0x3b0   :  { %1591 = vmatpush1.bf16.msra.mxu0 %v6646_v21  ;;  %v5836_v21 = vcombine.low %v1698_v35, %v1706_v36  ;;  %v5941_v35 = vcombine.high %v1806_v19, %v1814_v20  ;;  %v5949_v36 = vcombine.high %v1810_v27, %v1818_v28 }
 0x3b1   :  { %1592 = vmatprep.subr.bf16.mxu0 %v6651_v22  ;;  %v5845_v22 = vcombine.high %v1710_v47, %v1718_v51 }
 0x3b2   :  { %3473 = vmatpush1.bf16.msra.mxu1 %v5836_v21 }
 0x3b4   :  { %1593 = vmatpush1.bf16.msra.mxu0 %v6649_v23  ;;  %v5853_v23 = vcombine.high %v1714_v52, %v1722_v53 }
 0x3b5   :  { %1594 = vmatprep.subr.bf16.mxu0 %v6654_v24  ;;  %v1726_v24 = vld [vmem:[%s9571_s11 + $0x180] sm:$0xff] }
 0x3b6   :  { %3474 = vmatprep.subr.bf16.mxu1 %v5853_v23 }
 0x3b8   :  { %1595 = vmatpush1.bf16.msra.mxu0 %v6652_v29  ;;  %v1734_v29 = vld [vmem:[%s9571_s11 + $0x1c0] sm:$0xff] }
 0x3b9   :  { %3298 = vmatprep.subr.bf16.mxu0 %v5813_v17 }
 0x44e   :  { %v1291_v30 = vpop.f32.mrb[24].mxu0  ;;  %v1341_v34 = vpop.f32.mrb[12].mxu1 }
 0x44f   :  { %v1298_v37 = vmul.f32 %v1291_v30, %v7692_v39  ;;  %v1348_v40 = vmul.f32 %v1341_v34, %v7695_v41  ;;  %v1293_v42 = vpop.f32.mrb[25].mxu0  ;;  %v1343_v44 = vpop.f32.mrb[13].mxu1  ;;  %v1392_v39 = vld [vmem:[%s9570_s8] sm:$0x3] }
 0x450   :  { %v1299_v46 = vmul.f32 %v1293_v42, %v7698_v43  ;;  %v1349_v48 = vmul.f32 %v1343_v44, %v7701_v45  ;;  %v1295_v49 = vpop.f32.mrb[26].mxu0  ;;  %v1345_v50 = vpop.f32.mrb[14].mxu1  ;;  %v1397_v41 = vrot.slane %v1392_v39, %v7590_v56  ;;  %v1401_v43 = vrot.slane %v1392_v39, %v7596_v58  ;;  %v1730_v30 = vld [vmem:[%s9571_s11 + $0x1a0] sm:$0xff] }
 0x451   :  { %v1350_v54 = vadd.f32 %v1348_v40, %v1298_v37  ;;  %v1296_v57 = vpop.f32.mrb[27].mxu0  ;;  %v1346_v59 = vpop.f32.mrb[15].mxu1  ;;  %v1738_v34 = vld [vmem:[%s9571_s11 + $0x1e0] sm:$0xff]  ;;  %v5844_v37 = vcombine.low %v1710_v47, %v1718_v51  ;;  %v5852_v40 = vcombine.low %v1714_v52, %v1722_v53  ;;  %v5861_v42 = vcombine.high %v1726_v24, %v1734_v29 }
 0x452   :  { %v1351_v60 = vadd.f32 %v1349_v48, %v1299_v46  ;;  %v5869_v44 = vcombine.high %v1730_v30, %v1738_v34  ;;  %v1742_v46 = vld [vmem:[%s9571_s11 + $0x200] sm:$0xff]  ;;  %v5868_v57 = vcombine.low %v1730_v30, %v1738_v34  ;;  %v5940_v53 = vcombine.low %v1806_v19, %v1814_v20 }
 0x453   :  { %v1358_v61 = vpack.c.bf16 %v1350_v54, %v7707_v25  ;;  %v7059_v25 = vld [vmem:[%s9589_s1] sm:$0xff]  ;;  %v5860_v54 = vcombine.low %v1726_v24, %v1734_v29  ;;  %3475 = vmatpush1.bf16.msra.mxu1 %v5852_v40 }
 0x454   :  { %v1359_v62 = vpack.c.bf16 %v1351_v60, %v7709_v33  ;;  %v1750_v48 = vld [vmem:[%s9571_s11 + $0x240] sm:$0xff]  ;;  %3476 = vmatprep.subr.bf16.mxu1 %v5869_v44 }
 0x455   :  { %v1746_v49 = vld [vmem:[%s9571_s11 + $0x220] sm:$0xff]  ;;  %v5877_v59 = vcombine.high %v1742_v46, %v1750_v48 }
 0x456   :  { %1596 = vmatprep.mubr.bf16.mxu0 %v1359_v62  ;;  %v1754_v50 = vld [vmem:[%s9571_s11 + $0x260] sm:$0xff] }
 0x457   :  { %1597 = vmatmul.mubr.bf16.vlgmr.msra.gmra.mrb[28].mxu0 %v1358_v61  ;;  %v5885_v60 = vcombine.high %v1746_v49, %v1754_v50  ;;  %v1758_v61 = vld [vmem:[%s9571_s11 + $0x280] sm:$0xff]  ;;  %3477 = vmatpush1.bf16.msra.mxu1 %v5868_v57 }
 0x458   :  { %3299 = vmatpush1.bf16.msra.mxu0 %v5812_v16  ;;  %v1766_v62 = vld [vmem:[%s9571_s11 + $0x2c0] sm:$0xff] }
 0x459   :  { %3300 = vmatprep.subr.bf16.mxu0 %v5829_v32  ;;  %v1762_v39 = vld [vmem:[%s9571_s11 + $0x2a0] sm:$0xff]  ;;  %3478 = vmatprep.subr.bf16.mxu1 %v5885_v60 }
 0x45a   :  { %v1822_v47 = vld [vmem:[%s9571_s11 + $0x480] sm:$0xff] }
 0x45b   :  { %v1826_v51 = vld [vmem:[%s9571_s11 + $0x4a0] sm:$0xff]  ;;  %v5957_v21 = vcombine.high %v1822_v47, %v1830_v38  ;;  %v5956_v23 = vcombine.low %v1822_v47, %v1830_v38 }
 0x45c   :  { %3301 = vmatpush1.bf16.msra.mxu0 %v5828_v18  ;;  %v1834_v52 = vld [vmem:[%s9571_s11 + $0x4e0] sm:$0xff]  ;;  %v5948_v18 = vcombine.low %v1810_v27, %v1818_v28 }
 0x45d   :  { %3302 = vmatprep.subr.bf16.mxu0 %v5845_v22  ;;  %v5965_v22 = vcombine.high %v1826_v51, %v1834_v52  ;;  %v5964_v24 = vcombine.low %v1826_v51, %v1834_v52  ;;  %v1838_v57 = vld [vmem:[%s9571_s11 + $0x500] sm:$0xff] }
 0x45e   :  { %v1850_v60 = vld [vmem:[%s9571_s11 + $0x560] sm:$0xff] }
 0x45f   :  { %v1902_v28 = vld [vmem:[%s9571_s11 + $0x700] sm:$0xff] }
 0x460   :  { %3303 = vmatpush1.bf16.msra.mxu0 %v5844_v37  ;;  %v1918_v52 = vld [vmem:[%s9571_s11 + $0x780] sm:$0xff] }
 0x461   :  { %3304 = vmatprep.subr.bf16.mxu0 %v5861_v42 }
 0x464   :  { %3305 = vmatpush1.bf16.msra.mxu0 %v5860_v54 }
 0x465   :  { %3306 = vmatprep.subr.bf16.mxu0 %v5877_v59 }
 0x52a   :  { %v1598_v45 = vpop.f32.mrb[28].mxu0 }
 0x52b   :  { %v1599_v63 = vadd.f32 %v1598_v45, %v1397_v41  ;;  %v1600_v0 = vpop.f32.mrb[29].mxu0  ;;  %v5884_v45 = vcombine.low %v1746_v49, %v1754_v50 }
 0x52c   :  { %v1601_v1 = vadd.f32 %v1600_v0, %v1401_v43  ;;  %v1602_v2 = vpop.f32.mrb[30].mxu0 }
 0x52d   :  { %v1603_v3 = vadd.f32 %v1602_v2, %v1397_v41  ;;  %v1604_v4 = vpop.f32.mrb[31].mxu0  ;;  %v7820_v33 = vadd.f32 %v7059_v25, %v1599_v63  ;;  %v1770_v41 = vld [vmem:[%s9571_s11 + $0x2e0] sm:$0xff]  ;;  %v5893_v63 = vcombine.high %v1758_v61, %v1766_v62  ;;  %v5892_v25 = vcombine.low %v1758_v61, %v1766_v62  ;;  %3479 = vmatpush1.bf16.msra.mxu1 %v5884_v45 }
 0x52e   :  { %v1605_v5 = vadd.f32 %v1604_v4, %v1401_v43  ;;  %v7825_v7 = vadd.f32 %v7060_v6, %v1601_v1  ;;  %v5876_v43 = vcombine.low %v1742_v46, %v1750_v48  ;;  %v5901_v0 = vcombine.high %v1762_v39, %v1770_v41  ;;  %v1774_v1 = vld [vmem:[%s9571_s11 + $0x300] sm:$0xff] }
 0x52f   :  { %v7830_v9 = vadd.f32 %v7061_v8, %v1603_v3  ;;  %v1782_v2 = vld [vmem:[%s9571_s11 + $0x340] sm:$0xff] }
 0x530   :  { %v7835_v11 = vadd.f32 %v7062_v10, %v1605_v5  ;;  %v1613_v12 = vadd.f32 %v7825_v7, %v7820_v33  ;;  %v1778_v3 = vld [vmem:[%s9571_s11 + $0x320] sm:$0xff]  ;;  %3307 = vmatpush1.bf16.msra.mxu0 %v5876_v43  ;;  %v5900_v5 = vcombine.low %v1762_v39, %v1770_v41  ;;  %v5909_v6 = vcombine.high %v1774_v1, %v1782_v2 }
 0x531   :  { %v1786_v4 = vld [vmem:[%s9571_s11 + $0x360] sm:$0xff]  ;;  %3308 = vmatprep.subr.bf16.mxu0 %v5893_v63  ;;  %3480 = vmatprep.subr.bf16.mxu1 %v5901_v0  ;;  %v5908_v14 = vcombine.low %v1774_v1, %v1782_v2 }
 0x532   :  { %1614 = vadd.xlane.f32.xlu0 %v1613_v12  ;;  %v1616_v26 = vadd.f32 %v7835_v11, %v7830_v9  ;;  %v5917_v8 = vcombine.high %v1778_v3, %v1786_v4  ;;  %v1790_v10 = vld [vmem:[%s9571_s11 + $0x380] sm:$0xff]  ;;  %3481 = vmatpush1.bf16.msra.mxu1 %v5900_v5  ;;  %v5916_v15 = vcombine.low %v1778_v3, %v1786_v4 }
 0x533   :  { %v1798_v12 = vld [vmem:[%s9571_s11 + $0x3c0] sm:$0xff] }
 0x534   :  { %3309 = vmatpush1.bf16.msra.mxu0 %v5892_v25  ;;  %v5925_v16 = vcombine.high %v1790_v10, %v1798_v12  ;;  %3482 = vmatprep.subr.bf16.mxu1 %v5917_v8  ;;  %v5924_v31 = vcombine.low %v1790_v10, %v1798_v12  ;;  %v1854_v41 = vld [vmem:[%s9571_s11 + $0x580] sm:$0xff] }
 0x535   :  { %3310 = vmatprep.subr.bf16.mxu0 %v5909_v6  ;;  %v1862_v43 = vld [vmem:[%s9571_s11 + $0x5c0] sm:$0xff] }
 0x536   :  { %1617 = vadd.xlane.f32.xlu0 %v1616_v26  ;;  %v1794_v26 = vld [vmem:[%s9571_s11 + $0x3a0] sm:$0xff]  ;;  %3483 = vmatpush1.bf16.msra.mxu1 %v5916_v15  ;;  %v5989_v63 = vcombine.high %v1854_v41, %v1862_v43  ;;  %v5988_v1 = vcombine.low %v1854_v41, %v1862_v43 }
 0x537   :  { %v5933_v17 = vcombine.high %v1794_v26, %v1802_v13  ;;  %v5932_v32 = vcombine.low %v1794_v26, %v1802_v13  ;;  %v1858_v45 = vld [vmem:[%s9571_s11 + $0x5a0] sm:$0xff] }
 0x538   :  { %3311 = vmatpush1.bf16.msra.mxu0 %v5908_v14  ;;  %v1866_v0 = vld [vmem:[%s9571_s11 + $0x5e0] sm:$0xff] }
 0x539   :  { %3312 = vmatprep.subr.bf16.mxu0 %v5925_v16  ;;  %3484 = vmatprep.subr.bf16.mxu1 %v5933_v17  ;;  %v5996_v2 = vcombine.low %v1858_v45, %v1866_v0  ;;  %v5997_v3 = vcombine.high %v1858_v45, %v1866_v0  ;;  %v1870_v4 = vld [vmem:[%s9571_s11 + $0x600] sm:$0xff] }
 0x53a   :  { %3485 = vmatpush1.bf16.msra.mxu1 %v5932_v32  ;;  %v1878_v25 = vld [vmem:[%s9571_s11 + $0x640] sm:$0xff] }
 0x53b   :  { %3486 = vmatprep.subr.bf16.mxu1 %v5949_v36  ;;  %v1874_v5 = vld [vmem:[%s9571_s11 + $0x620] sm:$0xff]  ;;  %v6005_v6 = vcombine.high %v1870_v4, %v1878_v25  ;;  %v6004_v10 = vcombine.low %v1870_v4, %v1878_v25 }
 0x53c   :  { %3313 = vmatpush1.bf16.msra.mxu0 %v5924_v31  ;;  %v1882_v8 = vld [vmem:[%s9571_s11 + $0x660] sm:$0xff] }
 0x53d   :  { %3314 = vmatprep.subr.bf16.mxu0 %v5941_v35  ;;  %v6012_v12 = vcombine.low %v1874_v5, %v1882_v8  ;;  %v6013_v26 = vcombine.high %v1874_v5, %v1882_v8  ;;  %v1886_v13 = vld [vmem:[%s9571_s11 + $0x680] sm:$0xff] }
 0x53e   :  { %3487 = vmatpush1.bf16.msra.mxu1 %v5948_v18  ;;  %v1894_v14 = vld [vmem:[%s9571_s11 + $0x6c0] sm:$0xff] }
 0x53f   :  { %3488 = vmatprep.subr.bf16.mxu1 %v5965_v22  ;;  %v1890_v15 = vld [vmem:[%s9571_s11 + $0x6a0] sm:$0xff]  ;;  %v6021_v16 = vcombine.high %v1886_v13, %v1894_v14  ;;  %v6020_v19 = vcombine.low %v1886_v13, %v1894_v14  ;;  %v1708_v13 = vld [vmem:[%s9571_s11 + $0xf0] sm:$0xff] }
 0x540   :  { %3315 = vmatpush1.bf16.msra.mxu0 %v5940_v53  ;;  %v1898_v17 = vld [vmem:[%s9571_s11 + $0x6e0] sm:$0xff] }
 0x541   :  { %3316 = vmatprep.subr.bf16.mxu0 %v5957_v21  ;;  %v6028_v20 = vcombine.low %v1890_v15, %v1898_v17  ;;  %v6029_v27 = vcombine.high %v1890_v15, %v1898_v17  ;;  %v1910_v31 = vld [vmem:[%s9571_s11 + $0x740] sm:$0xff] }
 0x542   :  { %3489 = vmatpush1.bf16.msra.mxu1 %v5964_v24  ;;  %v1906_v32 = vld [vmem:[%s9571_s11 + $0x720] sm:$0xff]  ;;  %v6037_v35 = vcombine.high %v1902_v28, %v1910_v31  ;;  %v6036_v47 = vcombine.low %v1902_v28, %v1910_v31  ;;  %v1724_v28 = vld [vmem:[%s9571_s11 + $0x170] sm:$0xff] }
 0x543   :  { %v1914_v36 = vld [vmem:[%s9571_s11 + $0x760] sm:$0xff] }
 0x544   :  { %3317 = vmatpush1.bf16.msra.mxu0 %v5956_v23  ;;  %v6044_v38 = vcombine.low %v1906_v32, %v1914_v36  ;;  %v6045_v51 = vcombine.high %v1906_v32, %v1914_v36  ;;  %v1926_v53 = vld [vmem:[%s9571_s11 + $0x7c0] sm:$0xff] }
 0x545   :  { %v1922_v18 = vld [vmem:[%s9571_s11 + $0x7a0] sm:$0xff]  ;;  %v6053_v21 = vcombine.high %v1918_v52, %v1926_v53  ;;  %v6052_v23 = vcombine.low %v1918_v52, %v1926_v53  ;;  %v1740_v52 = vld [vmem:[%s9571_s11 + $0x1f0] sm:$0xff] }
 0x546   :  { %v1930_v22 = vld [vmem:[%s9571_s11 + $0x7e0] sm:$0xff] }
 0x547   :  { %v6060_v24 = vcombine.low %v1922_v18, %v1930_v22 }
 0x5bf   :  { %v1615_v29 = vpop.xlane.xlu0 %1614 }
 0x5c0   :  { %v1620_v30 = vmul.f32 0.00390625, %v1615_v29  ;;  %v6061_v29 = vcombine.high %v1922_v18, %v1930_v22 }
 0x5c2   :  { %v7962_v34 = vsub.f32 %v7820_v33, %v1620_v30  ;;  %v7965_v37 = vsub.f32 %v7825_v7, %v1620_v30  ;;  %v1679_v30 = vld [vmem:[%s9571_s11 + $0x8] sm:$0xff] }
 0x5c3   :  { %v1618_v40 = vpop.xlane.xlu0 %1617 }
 0x5c4   :  { %v1621_v42 = vmul.f32 0.00390625, %v1618_v40  ;;  %v1626_v44 = vmul.f32 %v7962_v34, %v7962_v34  ;;  %v1627_v46 = vmul.f32 %v7965_v37, %v7965_v37  ;;  %v1687_v40 = vld [vmem:[%s9571_s11 + $0x48] sm:$0xff] }
 0x5c6   :  { %v7972_v48 = vsub.f32 %v7830_v9, %v1621_v42  ;;  %v7975_v49 = vsub.f32 %v7835_v11, %v1621_v42  ;;  %v1630_v50 = vadd.f32 %v1627_v46, %v1626_v44  ;;  %v1846_v9 = vld [vmem:[%s9571_s11 + $0x540] sm:$0xff]  ;;  %v1684_v42 = vld [vmem:[%s9571_s11 + $0x30] sm:$0xff]  ;;  %v5815_v44 = vcombine.high %v1679_v30, %v1687_v40 }
 0x5c7   :  { %v1842_v11 = vld [vmem:[%s9571_s11 + $0x520] sm:$0xff]  ;;  %v5973_v59 = vcombine.high %v1838_v57, %v1846_v9  ;;  %v5972_v61 = vcombine.low %v1838_v57, %v1846_v9  ;;  %v1692_v46 = vld [vmem:[%s9571_s11 + $0x70] sm:$0xff] }
 0x5c8   :  { %1631 = vadd.xlane.f32.xlu1 %v1630_v50  ;;  %v1628_v33 = vmul.f32 %v7972_v48, %v7972_v48  ;;  %v1629_v7 = vmul.f32 %v7975_v49, %v7975_v49  ;;  %v5980_v62 = vcombine.low %v1842_v11, %v1850_v60  ;;  %v5981_v39 = vcombine.high %v1842_v11, %v1850_v60 }
 0x5c9   :  { %3318 = vmatprep.subr.bf16.mxu0 %v5973_v59  ;;  %v5814_v50 = vcombine.low %v1679_v30, %v1687_v40  ;;  %v1756_v30 = vld [vmem:[%s9571_s11 + $0x270] sm:$0xff] }
 0x5ca   :  { %v1633_v54 = vadd.f32 %v1629_v7, %v1628_v33  ;;  %3490 = vmatprep.subr.bf16.mxu1 %v5981_v39  ;;  %3319 = vmatpush1.bf16.msra.mxu0 %v5972_v61  ;;  %v5824_v33 = vcombine.low %v1684_v42, %v1692_v46  ;;  %v5825_v7 = vcombine.high %v1684_v42, %v1692_v46  ;;  %v1611_v61 = vld [vmem:[%s9572_s9] sm:$0x3] }
 0x5cb   :  { %3491 = vmatpush1.bf16.msra.mxu1 %v5980_v62  ;;  %3320 = vmatprep.subr.bf16.mxu0 %v5989_v63  ;;  %v1612_v39 = vld [vmem:[%s9573_s10] sm:$0x3]  ;;  %v1650_v41 = vrot.slane %v1611_v61, %v7590_v56  ;;  %v1654_v43 = vrot.slane %v1611_v61, %v7596_v58  ;;  %v1783_v61 = vld [vmem:[%s9571_s11 + $0x348] sm:$0xff] }
 0x5cc   :  { %1634 = vadd.xlane.f32.xlu1 %v1633_v54  ;;  %3492 = vmatprep.subr.bf16.mxu1 %v5997_v3 }
 0x5ce   :  { %3321 = vmatpush1.bf16.msra.mxu0 %v5988_v1  ;;  %v1665_v1 = vrot.slane %v1612_v39, %v7590_v56 }
 0x5cf   :  { %3493 = vmatpush1.bf16.msra.mxu1 %v5996_v2  ;;  %3322 = vmatprep.subr.bf16.mxu0 %v6005_v6  ;;  %v1669_v2 = vrot.slane %v1612_v39, %v7596_v58  ;;  %v1788_v39 = vld [vmem:[%s9571_s11 + $0x370] sm:$0xff] }
 0x5d0   :  { %3494 = vmatprep.subr.bf16.mxu1 %v6013_v26  ;;  %v1695_v26 = vld [vmem:[%s9571_s11 + $0x88] sm:$0xff] }
 0x5d2   :  { %3323 = vmatpush1.bf16.msra.mxu0 %v6004_v10 }
 0x5d3   :  { %3495 = vmatpush1.bf16.msra.mxu1 %v6012_v12  ;;  %3324 = vmatprep.subr.bf16.mxu0 %v6021_v16  ;;  %v1711_v16 = vld [vmem:[%s9571_s11 + $0x108] sm:$0xff] }
 0x5d4   :  { %3496 = vmatprep.subr.bf16.mxu1 %v6029_v27  ;;  %v1716_v27 = vld [vmem:[%s9571_s11 + $0x130] sm:$0xff] }
 0x5d5   :  { %v5857_v36 = vcombine.high %v1716_v27, %v1724_v28  ;;  %v5856_v18 = vcombine.low %v1716_v27, %v1724_v28  ;;  %v1831_v27 = vld [vmem:[%s9571_s11 + $0x4c8] sm:$0xff]  ;;  %v1828_v28 = vld [vmem:[%s9571_s11 + $0x4b0] sm:$0xff] }
 0x5d6   :  { %3325 = vmatpush1.bf16.msra.mxu0 %v6020_v19 }
 0x5d7   :  { %3497 = vmatpush1.bf16.msra.mxu1 %v6028_v20  ;;  %3326 = vmatprep.subr.bf16.mxu0 %v6037_v35  ;;  %v1719_v20 = vld [vmem:[%s9571_s11 + $0x148] sm:$0xff] }
 0x5d8   :  { %3498 = vmatprep.subr.bf16.mxu1 %v6045_v51  ;;  %v5847_v35 = vcombine.high %v1711_v16, %v1719_v20  ;;  %v1732_v51 = vld [vmem:[%s9571_s11 + $0x1b0] sm:$0xff]  ;;  %v5846_v53 = vcombine.low %v1711_v16, %v1719_v20  ;;  %v1823_v20 = vld [vmem:[%s9571_s11 + $0x488] sm:$0xff] }
 0x5d9   :  { %v5873_v22 = vcombine.high %v1732_v51, %v1740_v52  ;;  %v5872_v42 = vcombine.low %v1732_v51, %v1740_v52  ;;  %v1852_v51 = vld [vmem:[%s9571_s11 + $0x570] sm:$0xff]  ;;  %v5959_v52 = vcombine.high %v1823_v20, %v1831_v27 }
 0x5da   :  { %3327 = vmatpush1.bf16.msra.mxu0 %v6036_v47  ;;  %v1727_v47 = vld [vmem:[%s9571_s11 + $0x188] sm:$0xff] }
 0x5db   :  { %3499 = vmatpush1.bf16.msra.mxu1 %v6044_v38  ;;  %3328 = vmatprep.subr.bf16.mxu0 %v6053_v21  ;;  %v1735_v38 = vld [vmem:[%s9571_s11 + $0x1c8] sm:$0xff] }
 0x5dc   :  { %3500 = vmatprep.subr.bf16.mxu1 %v6061_v29  ;;  %v5863_v21 = vcombine.high %v1727_v47, %v1735_v38  ;;  %v1748_v29 = vld [vmem:[%s9571_s11 + $0x230] sm:$0xff]  ;;  %v5862_v40 = vcombine.low %v1727_v47, %v1735_v38  ;;  %v1847_v47 = vld [vmem:[%s9571_s11 + $0x548] sm:$0xff] }
 0x5dd   :  { %v5889_v46 = vcombine.high %v1748_v29, %v1756_v30  ;;  %v1844_v38 = vld [vmem:[%s9571_s11 + $0x530] sm:$0xff] }
 0x5de   :  { %3329 = vmatpush1.bf16.msra.mxu0 %v6052_v23  ;;  %v1743_v23 = vld [vmem:[%s9571_s11 + $0x208] sm:$0xff] }
 0x5df   :  { %3501 = vmatpush1.bf16.msra.mxu1 %v6060_v24  ;;  %3341 = vmatprep.subr.bf16.mxu0 %v5815_v44  ;;  %v1751_v24 = vld [vmem:[%s9571_s11 + $0x248] sm:$0xff] }
 0x5e0   :  { %3556 = vmatprep.subr.bf16.mxu1 %v5825_v7  ;;  %v5879_v44 = vcombine.high %v1743_v23, %v1751_v24  ;;  %v1764_v7 = vld [vmem:[%s9571_s11 + $0x2b0] sm:$0xff] }
 0x655   :  { %v1632_v54 = vpop.xlane.xlu1 %1631 }
 0x656   :  { %v1636_v57 = vmul.f32 0.00390625, %v1632_v54  ;;  %v1772_v54 = vld [vmem:[%s9571_s11 + $0x2f0] sm:$0xff] }
 0x658   :  { %v1638_v9 = vadd.f32 1e-05, %v1636_v57  ;;  %v5878_v57 = vcombine.low %v1743_v23, %v1751_v24  ;;  %v1863_v23 = vld [vmem:[%s9571_s11 + $0x5c8] sm:$0xff]  ;;  %v1860_v24 = vld [vmem:[%s9571_s11 + $0x5b0] sm:$0xff] }
 0x659   :  { %v1635_v11 = vpop.xlane.xlu1 %1634 }
 0x65a   :  { %7051 = vrsqrt.f32 %v1638_v9  ;;  %v1637_v59 = vmul.f32 0.00390625, %v1635_v11  ;;  %v5888_v9 = vcombine.low %v1748_v29, %v1756_v30  ;;  %v1868_v29 = vld [vmem:[%s9571_s11 + $0x5f0] sm:$0xff] }
 0x65c   :  { %v1639_v60 = vadd.f32 1e-05, %v1637_v59  ;;  %v5905_v59 = vcombine.high %v1764_v7, %v1772_v54 }
 0x65e   :  { %7053 = vrsqrt.f32 %v1639_v60  ;;  %v1775_v60 = vld [vmem:[%s9571_s11 + $0x308] sm:$0xff] }
 0x664   :  { %v7052_v62 = vpop.eup %7051 }
 0x665   :  { %v1642_v45 = vmul.f32 %v7052_v62, %v7962_v34  ;;  %v1643_v63 = vmul.f32 %v7052_v62, %v7965_v37  ;;  %v1780_v62 = vld [vmem:[%s9571_s11 + $0x330] sm:$0xff] }
 0x667   :  { %v1657_v3 = vmul.f32 %v1650_v41, %v1642_v45  ;;  %v1658_v4 = vmul.f32 %v1654_v43, %v1643_v63  ;;  %v5911_v45 = vcombine.high %v1775_v60, %v1783_v61  ;;  %v5921_v63 = vcombine.high %v1780_v62, %v1788_v39 }
 0x668   :  { %v7054_v0 = vpop.eup %7053 }
 0x669   :  { %v1644_v25 = vmul.f32 %v7054_v0, %v7972_v48  ;;  %v1645_v5 = vmul.f32 %v7054_v0, %v7975_v49  ;;  %v8079_v10 = vadd.f32 %v1665_v1, %v1657_v3  ;;  %v8081_v12 = vadd.f32 %v1669_v2, %v1658_v4  ;;  %v1703_v48 = vld [vmem:[%s9571_s11 + $0xc8] sm:$0xff]  ;;  %v1700_v49 = vld [vmem:[%s9571_s11 + $0xb0] sm:$0xff] }
 0x66a   :  { %v5831_v17 = vcombine.high %v1695_v26, %v1703_v48  ;;  %v5841_v19 = vcombine.high %v1700_v49, %v1708_v13  ;;  %v5830_v31 = vcombine.low %v1695_v26, %v1703_v48  ;;  %v5840_v32 = vcombine.low %v1700_v49, %v1708_v13  ;;  %v1791_v0 = vld [vmem:[%s9571_s11 + $0x388] sm:$0xff]  ;;  %v1804_v3 = vld [vmem:[%s9571_s11 + $0x3f0] sm:$0xff] }
 0x66b   :  { %v1659_v6 = vmul.f32 %v1650_v41, %v1644_v25  ;;  %v1660_v8 = vmul.f32 %v1654_v43, %v1645_v5  ;;  %v5904_v43 = vcombine.low %v1764_v7, %v1772_v54  ;;  %v5910_v4 = vcombine.low %v1775_v60, %v1783_v61  ;;  %v1815_v26 = vld [vmem:[%s9571_s11 + $0x448] sm:$0xff]  ;;  %v1812_v48 = vld [vmem:[%s9571_s11 + $0x430] sm:$0xff] }
 0x66c   :  { %v5920_v25 = vcombine.low %v1780_v62, %v1788_v39  ;;  %v1820_v49 = vld [vmem:[%s9571_s11 + $0x470] sm:$0xff]  ;;  %v1895_v60 = vld [vmem:[%s9571_s11 + $0x6c8] sm:$0xff] }
 0x66d   :  { %v8083_v34 = vadd.f32 %v1665_v1, %v1659_v6  ;;  %v8085_v37 = vadd.f32 %v1669_v2, %v1660_v8  ;;  %v1799_v1 = vld [vmem:[%s9571_s11 + $0x3c8] sm:$0xff]  ;;  %v1796_v2 = vld [vmem:[%s9571_s11 + $0x3b0] sm:$0xff] }
 0x66e   :  { %v5927_v5 = vcombine.high %v1791_v0, %v1799_v1  ;;  %v5937_v6 = vcombine.high %v1796_v2, %v1804_v3  ;;  %v1807_v8 = vld [vmem:[%s9571_s11 + $0x408] sm:$0xff]  ;;  %v5926_v13 = vcombine.low %v1791_v0, %v1799_v1  ;;  %v5936_v16 = vcombine.low %v1796_v2, %v1804_v3  ;;  %v1884_v7 = vld [vmem:[%s9571_s11 + $0x670] sm:$0xff] }
 0x66f   :  { %v8101_v14 = vpack.c.bf16 %v8083_v34, %v8079_v10  ;;  %v8105_v15 = vpack.c.bf16 %v8085_v37, %v8081_v12  ;;  %v1892_v61 = vld [vmem:[%s9571_s11 + $0x6b0] sm:$0xff]  ;;  %v1911_v0 = vld [vmem:[%s9571_s11 + $0x748] sm:$0xff] }
 0x670   :  { %v1900_v62 = vld [vmem:[%s9571_s11 + $0x6f0] sm:$0xff] }
 0x671   :  { %3330 = vmatprep.mubr.bf16.mxu0 %v8105_v15  ;;  %3502 = vmatprep.mubr.bf16.mxu1 %v8105_v15  ;;  %v1908_v1 = vld [vmem:[%s9571_s11 + $0x730] sm:$0xff] }
 0x672   :  { %3331 = vmatmul.mubr.bf16.vlgmr.msra.gmra.mrb[32].mxu0 %v8101_v14  ;;  %3503 = vmatmul.mubr.bf16.vlgmr.msra.gmra.mrb[16].mxu1 %v8101_v14  ;;  %v1916_v2 = vld [vmem:[%s9571_s11 + $0x770] sm:$0xff] }
 0x673   :  { %3342 = vmatpush1.bf16.msra.mxu0 %v5814_v50  ;;  %3557 = vmatpush1.bf16.msra.mxu1 %v5824_v33  ;;  %v1759_v50 = vld [vmem:[%s9571_s11 + $0x288] sm:$0xff] }
 0x674   :  { %3373 = vmatprep.mubr.bf16.mxu0 %v8105_v15  ;;  %3588 = vmatprep.mubr.bf16.mxu1 %v8105_v15  ;;  %v1767_v33 = vld [vmem:[%s9571_s11 + $0x2c8] sm:$0xff] }
 0x675   :  { %3343 = vmatprep.subr.bf16.mxu0 %v5831_v17  ;;  %3558 = vmatprep.subr.bf16.mxu1 %v5841_v19  ;;  %v5895_v11 = vcombine.high %v1759_v50, %v1767_v33  ;;  %v5894_v41 = vcombine.low %v1759_v50, %v1767_v33  ;;  %v5943_v17 = vcombine.high %v1807_v8, %v1815_v26  ;;  %v1879_v50 = vld [vmem:[%s9571_s11 + $0x648] sm:$0xff]  ;;  %v1876_v33 = vld [vmem:[%s9571_s11 + $0x630] sm:$0xff] }
 0x676   :  { %v5953_v19 = vcombine.high %v1812_v48, %v1820_v49 }
 0x677   :  { %3344 = vmatpush1.bf16.msra.mxu0 %v5830_v31  ;;  %3559 = vmatpush1.bf16.msra.mxu1 %v5840_v32  ;;  %v1836_v31 = vld [vmem:[%s9571_s11 + $0x4f0] sm:$0xff]  ;;  %v5942_v32 = vcombine.low %v1807_v8, %v1815_v26  ;;  %v1927_v8 = vld [vmem:[%s9571_s11 + $0x7c8] sm:$0xff] }
 0x678   :  { %3345 = vmatprep.subr.bf16.mxu0 %v5847_v35  ;;  %3560 = vmatprep.subr.bf16.mxu1 %v5857_v36  ;;  %v5952_v35 = vcombine.low %v1812_v48, %v1820_v49  ;;  %v1839_v36 = vld [vmem:[%s9571_s11 + $0x508] sm:$0xff]  ;;  %v1924_v26 = vld [vmem:[%s9571_s11 + $0x7b0] sm:$0xff] }
 0x679   :  { %v5975_v30 = vcombine.high %v1839_v36, %v1847_v47  ;;  %v1932_v48 = vld [vmem:[%s9571_s11 + $0x7f0] sm:$0xff] }
 0x67b   :  { %3346 = vmatpush1.bf16.msra.mxu0 %v5846_v53  ;;  %3561 = vmatpush1.bf16.msra.mxu1 %v5856_v18  ;;  %v5969_v53 = vcombine.high %v1828_v28, %v1836_v31  ;;  %v5958_v18 = vcombine.low %v1823_v20, %v1831_v27  ;;  %v1688_v20 = vld [vmem:[%s9571_s11 + $0x50] sm:$0xff] }
 0x67c   :  { %3347 = vmatprep.subr.bf16.mxu0 %v5863_v21  ;;  %3562 = vmatprep.subr.bf16.mxu1 %v5873_v22  ;;  %v5968_v21 = vcombine.low %v1828_v28, %v1836_v31  ;;  %v1855_v22 = vld [vmem:[%s9571_s11 + $0x588] sm:$0xff]  ;;  %v6065_v28 = vcombine.high %v1924_v26, %v1932_v48 }
 0x67d   :  { %v5991_v54 = vcombine.high %v1855_v22, %v1863_v23 }
 0x67f   :  { %3348 = vmatpush1.bf16.msra.mxu0 %v5862_v40  ;;  %3563 = vmatpush1.bf16.msra.mxu1 %v5872_v42  ;;  %v5985_v40 = vcombine.high %v1844_v38, %v1852_v51  ;;  %v5974_v42 = vcombine.low %v1839_v36, %v1847_v47  ;;  %v1704_v36 = vld [vmem:[%s9571_s11 + $0xd0] sm:$0xff]  ;;  %v6657_v47 = vld [vmem:[%s9574_s13 + $0x4] ss:$8 sps:$4 sm:$0xff]  }
 0x680   :  { %3349 = vmatprep.subr.bf16.mxu0 %v5879_v44  ;;  %3564 = vmatprep.subr.bf16.mxu1 %v5889_v46  ;;  %v5984_v44 = vcombine.low %v1844_v38, %v1852_v51  ;;  %v1871_v46 = vld [vmem:[%s9571_s11 + $0x608] sm:$0xff] }
 0x681   :  { %v6007_v39 = vcombine.high %v1871_v46, %v1879_v50 }
 0x683   :  { %3350 = vmatpush1.bf16.msra.mxu0 %v5878_v57  ;;  %3565 = vmatpush1.bf16.msra.mxu1 %v5888_v9  ;;  %v6001_v57 = vcombine.high %v1860_v24, %v1868_v29  ;;  %v5990_v9 = vcombine.low %v1855_v22, %v1863_v23 }
 0x684   :  { %3351 = vmatprep.subr.bf16.mxu0 %v5895_v11  ;;  %3566 = vmatprep.subr.bf16.mxu1 %v5905_v59  ;;  %v6000_v11 = vcombine.low %v1860_v24, %v1868_v29  ;;  %v1887_v59 = vld [vmem:[%s9571_s11 + $0x688] sm:$0xff]  ;;  %v1728_v24 = vld [vmem:[%s9571_s11 + $0x190] sm:$0xff] }
 0x685   :  { %v6023_v3 = vcombine.high %v1887_v59, %v1895_v60  ;;  %v1736_v29 = vld [vmem:[%s9571_s11 + $0x1d0] sm:$0xff] }
 0x687   :  { %3352 = vmatpush1.bf16.msra.mxu0 %v5894_v41  ;;  %3567 = vmatpush1.bf16.msra.mxu1 %v5904_v43  ;;  %v6017_v41 = vcombine.high %v1876_v33, %v1884_v7  ;;  %v6006_v43 = vcombine.low %v1871_v46, %v1879_v50  ;;  %v1744_v46 = vld [vmem:[%s9571_s11 + $0x210] sm:$0xff] }
 0x688   :  { %3353 = vmatprep.subr.bf16.mxu0 %v5911_v45  ;;  %3568 = vmatprep.subr.bf16.mxu1 %v5921_v63  ;;  %v6016_v45 = vcombine.low %v1876_v33, %v1884_v7  ;;  %v1903_v63 = vld [vmem:[%s9571_s11 + $0x708] sm:$0xff]  ;;  %v1752_v50 = vld [vmem:[%s9571_s11 + $0x250] sm:$0xff] }
 0x689   :  { %v6039_v49 = vcombine.high %v1903_v63, %v1911_v0  ;;  %v6661_v33 = vld [vmem:[%s9574_s13 + $0x20] ss:$8 sps:$4 sm:$0xff]   ;;  %v6666_v7 = vld [vmem:[%s9574_s13 + $0x34] ss:$8 sps:$4 sm:$0xff]  }
 0x68b   :  { %3354 = vmatpush1.bf16.msra.mxu0 %v5910_v4  ;;  %3569 = vmatpush1.bf16.msra.mxu1 %v5920_v25  ;;  %v6033_v4 = vcombine.high %v1892_v61, %v1900_v62  ;;  %v6022_v25 = vcombine.low %v1887_v59, %v1895_v60  ;;  %v6664_v59 = vld [vmem:[%s9574_s13 + $0x30] ss:$8 sps:$4 sm:$0xff]   ;;  %v6669_v60 = vld [vmem:[%s9574_s13 + $0x44] ss:$8 sps:$4 sm:$0xff]  }
 0x68c   :  { %3355 = vmatprep.subr.bf16.mxu0 %v5927_v5  ;;  %3570 = vmatprep.subr.bf16.mxu1 %v5937_v6  ;;  %v6032_v5 = vcombine.low %v1892_v61, %v1900_v62  ;;  %v1919_v6 = vld [vmem:[%s9571_s11 + $0x788] sm:$0xff]  ;;  %v5881_v61 = vcombine.high %v1744_v46, %v1752_v50  ;;  %v5880_v62 = vcombine.low %v1744_v46, %v1752_v50  ;;  %v1896_v46 = vld [vmem:[%s9571_s11 + $0x6d0] sm:$0xff] }
 0x68d   :  { %v6055_v27 = vcombine.high %v1919_v6, %v1927_v8  ;;  %v6054_v31 = vcombine.low %v1919_v6, %v1927_v8  ;;  %v1808_v6 = vld [vmem:[%s9571_s11 + $0x410] sm:$0xff] }
 0x68e   :  { %v1816_v8 = vld [vmem:[%s9571_s11 + $0x450] sm:$0xff] }
 0x68f   :  { %3356 = vmatpush1.bf16.msra.mxu0 %v5926_v13  ;;  %3571 = vmatpush1.bf16.msra.mxu1 %v5936_v16  ;;  %v6049_v13 = vcombine.high %v1908_v1, %v1916_v2  ;;  %v6038_v16 = vcombine.low %v1903_v63, %v1911_v0  ;;  %v6688_v50 = vld [vmem:[%s9574_s13 + $0xb0] ss:$8 sps:$4 sm:$0xff]  }
 0x690   :  { %3357 = vmatprep.subr.bf16.mxu0 %v5943_v17  ;;  %3572 = vmatprep.subr.bf16.mxu1 %v5953_v19  ;;  %v6048_v17 = vcombine.low %v1908_v1, %v1916_v2  ;;  %v1680_v19 = vld [vmem:[%s9571_s11 + $0x10] sm:$0xff] }
 0x691   :  { %v5817_v38 = vcombine.high %v1680_v19, %v1688_v20  ;;  %v5816_v51 = vcombine.low %v1680_v19, %v1688_v20  ;;  %v1792_v1 = vld [vmem:[%s9571_s11 + $0x390] sm:$0xff]  ;;  %v6681_v20 = vld [vmem:[%s9574_s13 + $0x84] ss:$8 sps:$4 sm:$0xff]  }
 0x692   :  { %v1800_v2 = vld [vmem:[%s9571_s11 + $0x3d0] sm:$0xff] }
 0x693   :  { %3358 = vmatpush1.bf16.msra.mxu0 %v5942_v32  ;;  %3573 = vmatpush1.bf16.msra.mxu1 %v5952_v35  ;;  %v6064_v32 = vcombine.low %v1924_v26, %v1932_v48  ;;  %v1696_v35 = vld [vmem:[%s9571_s11 + $0x90] sm:$0xff]  ;;  %v6673_v26 = vld [vmem:[%s9574_s13 + $0x60] ss:$8 sps:$4 sm:$0xff]  }
 0x694   :  { %3359 = vmatprep.subr.bf16.mxu0 %v5959_v52  ;;  %3574 = vmatprep.subr.bf16.mxu1 %v5969_v53  ;;  %v1712_v52 = vld [vmem:[%s9571_s11 + $0x110] sm:$0xff]  ;;  %v5833_v22 = vcombine.high %v1696_v35, %v1704_v36  ;;  %v5832_v23 = vcombine.low %v1696_v35, %v1704_v36  ;;  %v6679_v35 = vld [vmem:[%s9574_s13 + $0x80] ss:$8 sps:$4 sm:$0xff]  }
 0x695   :  { %v1720_v53 = vld [vmem:[%s9571_s11 + $0x150] sm:$0xff] }
 0x696   :  { %v6678_v48 = vld [vmem:[%s9574_s13 + $0x74] ss:$8 sps:$4 sm:$0xff]   ;;  %v6676_v19 = vld [vmem:[%s9574_s13 + $0x70] ss:$8 sps:$4 sm:$0xff]  }
 0x697   :  { %3360 = vmatpush1.bf16.msra.mxu0 %v5958_v18  ;;  %3575 = vmatpush1.bf16.msra.mxu1 %v5968_v21  ;;  %v6655_v18 = vld [vmem:[%s9574_s13] ss:$8 sps:$4 sm:$0xff]   ;;  %v6660_v21 = vld [vmem:[%s9574_s13 + $0x14] ss:$8 sps:$4 sm:$0xff]  }
 0x698   :  { %3361 = vmatprep.subr.bf16.mxu0 %v5975_v30  ;;  %3576 = vmatprep.subr.bf16.mxu1 %v5985_v40  ;;  %v6658_v30 = vld [vmem:[%s9574_s13 + $0x10] ss:$8 sps:$4 sm:$0xff]   ;;  %v6663_v40 = vld [vmem:[%s9574_s13 + $0x24] ss:$8 sps:$4 sm:$0xff]   ;;  %v6684_v36 = vld [vmem:[%s9574_s13 + $0x94] ss:$8 sps:$4 sm:$0xff]  }
 0x69b   :  { %3362 = vmatpush1.bf16.msra.mxu0 %v5974_v42  ;;  %3577 = vmatpush1.bf16.msra.mxu1 %v5984_v44  ;;  %v5849_v42 = vcombine.high %v1712_v52, %v1720_v53  ;;  %v5848_v44 = vcombine.low %v1712_v52, %v1720_v53  ;;  %v1864_v52 = vld [vmem:[%s9571_s11 + $0x5d0] sm:$0xff] }
 0x69c   :  { %3363 = vmatprep.subr.bf16.mxu0 %v5991_v54  ;;  %3578 = vmatprep.subr.bf16.mxu1 %v6001_v57  ;;  %v5865_v54 = vcombine.high %v1728_v24, %v1736_v29  ;;  %v5864_v57 = vcombine.low %v1728_v24, %v1736_v29  ;;  %v6682_v53 = vld [vmem:[%s9574_s13 + $0x90] ss:$8 sps:$4 sm:$0xff]   ;;  %v6685_v29 = vld [vmem:[%s9574_s13 + $0xa0] ss:$8 sps:$4 sm:$0xff]  }
 0x69d   :  { %v1880_v24 = vld [vmem:[%s9571_s11 + $0x650] sm:$0xff] }
 0x69f   :  { %3364 = vmatpush1.bf16.msra.mxu0 %v5990_v9  ;;  %3579 = vmatpush1.bf16.msra.mxu1 %v6000_v11  ;;  %v1760_v9 = vld [vmem:[%s9571_s11 + $0x290] sm:$0xff] }
 0x6a0   :  { %3365 = vmatprep.subr.bf16.mxu0 %v6007_v39  ;;  %3580 = vmatprep.subr.bf16.mxu1 %v6017_v41  ;;  %v1768_v11 = vld [vmem:[%s9571_s11 + $0x2d0] sm:$0xff] }
 0x6a1   :  { %v1776_v39 = vld [vmem:[%s9571_s11 + $0x310] sm:$0xff]  ;;  %v5897_v63 = vcombine.high %v1760_v9, %v1768_v11  ;;  %v5896_v0 = vcombine.low %v1760_v9, %v1768_v11  ;;  %v6691_v11 = vld [vmem:[%s9574_s13 + $0xc0] ss:$8 sps:$4 sm:$0xff]  }
 0x6a2   :  { %v1784_v41 = vld [vmem:[%s9571_s11 + $0x350] sm:$0xff] }
 0x6a3   :  { %3366 = vmatpush1.bf16.msra.mxu0 %v6006_v43  ;;  %3581 = vmatpush1.bf16.msra.mxu1 %v6016_v45  ;;  %v6667_v43 = vld [vmem:[%s9574_s13 + $0x40] ss:$8 sps:$4 sm:$0xff]   ;;  %v6672_v45 = vld [vmem:[%s9574_s13 + $0x54] ss:$8 sps:$4 sm:$0xff]  }
 0x6a4   :  { %3367 = vmatprep.subr.bf16.mxu0 %v6023_v3  ;;  %3582 = vmatprep.subr.bf16.mxu1 %v6033_v4  ;;  %v5913_v3 = vcombine.high %v1776_v39, %v1784_v41  ;;  %v6670_v4 = vld [vmem:[%s9574_s13 + $0x50] ss:$8 sps:$4 sm:$0xff]  }
 0x6a5   :  { %v1912_v9 = vld [vmem:[%s9571_s11 + $0x750] sm:$0xff] }
 0x6a7   :  { %3368 = vmatpush1.bf16.msra.mxu0 %v6022_v25  ;;  %3583 = vmatpush1.bf16.msra.mxu1 %v6032_v5  ;;  %v6675_v25 = vld [vmem:[%s9574_s13 + $0x64] ss:$8 sps:$4 sm:$0xff]   ;;  %v5912_v5 = vcombine.low %v1776_v39, %v1784_v41  ;;  %v1928_v39 = vld [vmem:[%s9571_s11 + $0x7d0] sm:$0xff] }
 0x6a8   :  { %3369 = vmatprep.subr.bf16.mxu0 %v6039_v49  ;;  %3584 = vmatprep.subr.bf16.mxu1 %v6049_v13  ;;  %v5929_v49 = vcombine.high %v1792_v1, %v1800_v2  ;;  %v5928_v13 = vcombine.low %v1792_v1, %v1800_v2  ;;  %v6694_v41 = vld [vmem:[%s9574_s13 + $0xd0] ss:$8 sps:$4 sm:$0xff]   ;;  %v6697_v2 = vld [vmem:[%s9574_s13 + $0xe0] ss:$8 sps:$4 sm:$0xff]  }
 0x6a9   :  { %v1689_v1 = vld [vmem:[%s9571_s11 + $0x58] sm:$0xff] }
 0x6ab   :  { %3370 = vmatpush1.bf16.msra.mxu0 %v6038_v16  ;;  %3585 = vmatpush1.bf16.msra.mxu1 %v6048_v17  ;;  %v1824_v16 = vld [vmem:[%s9571_s11 + $0x490] sm:$0xff] }
 0x6ac   :  { %3371 = vmatprep.subr.bf16.mxu0 %v6055_v27  ;;  %3586 = vmatprep.subr.bf16.mxu1 %v6065_v28  ;;  %v1832_v17 = vld [vmem:[%s9571_s11 + $0x4d0] sm:$0xff]  ;;  %v5945_v27 = vcombine.high %v1808_v6, %v1816_v8  ;;  %v5944_v28 = vcombine.low %v1808_v6, %v1816_v8  ;;  %v1705_v6 = vld [vmem:[%s9571_s11 + $0xd8] sm:$0xff] }
 0x6ad   :  { %v6700_v8 = vld [vmem:[%s9574_s13 + $0xf0] ss:$8 sps:$4 sm:$0xff]  }
 0x6af   :  { %3372 = vmatpush1.bf16.msra.mxu0 %v6054_v31  ;;  %3587 = vmatpush1.bf16.msra.mxu1 %v6064_v32  ;;  %v1840_v31 = vld [vmem:[%s9571_s11 + $0x510] sm:$0xff] }
 0x6b0   :  { %3384 = vmatprep.subr.bf16.mxu0 %v5817_v38  ;;  %5238 = vmatprep.subr.bf16.mxu1 %v6657_v47  ;;  %v1848_v32 = vld [vmem:[%s9571_s11 + $0x550] sm:$0xff]  ;;  %v5961_v47 = vcombine.high %v1824_v16, %v1832_v17  ;;  %v5960_v38 = vcombine.low %v1824_v16, %v1832_v17  ;;  %v1721_v16 = vld [vmem:[%s9571_s11 + $0x158] sm:$0xff] }
 0x6b2   :  { %3374 = vmatmul.mubr.bf16.vlgmr.msra.gmra.mrb[36].mxu0 %v8101_v14  ;;  %3589 = vmatmul.mubr.bf16.vlgmr.msra.gmra.mrb[20].mxu1 %v8101_v14 }
 0x6b3   :  { %3385 = vmatpush1.bf16.msra.mxu0 %v5816_v51  ;;  %3416 = vmatprep.mubr.bf16.mxu0 %v8105_v15  ;;  %v1856_v51 = vld [vmem:[%s9571_s11 + $0x590] sm:$0xff] }
 0x6b4   :  { %3386 = vmatprep.subr.bf16.mxu0 %v5833_v22  ;;  %5239 = vmatpush1.bf16.msra.mxu1 %v6655_v18  ;;  %v6687_v18 = vld [vmem:[%s9574_s13 + $0xa4] ss:$8 sps:$4 sm:$0xff]   ;;  %v5976_v22 = vcombine.low %v1840_v31, %v1848_v32 }
 0x6b5   :  { %5240 = vmatprep.subr.bf16.mxu1 %v6660_v21  ;;  %v5977_v21 = vcombine.high %v1840_v31, %v1848_v32  ;;  %v1745_v32 = vld [vmem:[%s9571_s11 + $0x218] sm:$0xff] }
 0x6b7   :  { %3387 = vmatpush1.bf16.msra.mxu0 %v5832_v23  ;;  %v1872_v23 = vld [vmem:[%s9571_s11 + $0x610] sm:$0xff] }
 0x6b8   :  { %3388 = vmatprep.subr.bf16.mxu0 %v5849_v42  ;;  %5241 = vmatpush1.bf16.msra.mxu1 %v6658_v30  ;;  %v6690_v30 = vld [vmem:[%s9574_s13 + $0xb4] ss:$8 sps:$4 sm:$0xff]   ;;  %v5992_v42 = vcombine.low %v1856_v51, %v1864_v52 }
 0x6b9   :  { %5242 = vmatprep.subr.bf16.mxu1 %v6663_v40  ;;  %v5993_v40 = vcombine.high %v1856_v51, %v1864_v52  ;;  %v1769_v51 = vld [vmem:[%s9571_s11 + $0x2d8] sm:$0xff] }
 0x6bb   :  { %3389 = vmatpush1.bf16.msra.mxu0 %v5848_v44  ;;  %v1888_v44 = vld [vmem:[%s9571_s11 + $0x690] sm:$0xff] }
 0x6bc   :  { %3390 = vmatprep.subr.bf16.mxu0 %v5865_v54  ;;  %5243 = vmatpush1.bf16.msra.mxu1 %v6661_v33  ;;  %v6693_v33 = vld [vmem:[%s9574_s13 + $0xc4] ss:$8 sps:$4 sm:$0xff]   ;;  %v6008_v54 = vcombine.low %v1872_v23, %v1880_v24 }
 0x6bd   :  { %5244 = vmatprep.subr.bf16.mxu1 %v6666_v7  ;;  %v6009_v7 = vcombine.high %v1872_v23, %v1880_v24  ;;  %v1793_v24 = vld [vmem:[%s9571_s11 + $0x398] sm:$0xff] }
 0x6bf   :  { %3391 = vmatpush1.bf16.msra.mxu0 %v5864_v57  ;;  %v1904_v57 = vld [vmem:[%s9571_s11 + $0x710] sm:$0xff] }
 0x6c0   :  { %3392 = vmatprep.subr.bf16.mxu0 %v5881_v61  ;;  %5245 = vmatpush1.bf16.msra.mxu1 %v6664_v59  ;;  %v6696_v59 = vld [vmem:[%s9574_s13 + $0xd4] ss:$8 sps:$4 sm:$0xff]   ;;  %v6024_v61 = vcombine.low %v1888_v44, %v1896_v46 }
 0x6c1   :  { %5246 = vmatprep.subr.bf16.mxu1 %v6669_v60  ;;  %v6025_v60 = vcombine.high %v1888_v44, %v1896_v46  ;;  %v1817_v44 = vld [vmem:[%s9571_s11 + $0x458] sm:$0xff] }
 0x6c3   :  { %3393 = vmatpush1.bf16.msra.mxu0 %v5880_v62  ;;  %v1920_v62 = vld [vmem:[%s9571_s11 + $0x790] sm:$0xff] }
 0x6c4   :  { %3394 = vmatprep.subr.bf16.mxu0 %v5897_v63  ;;  %5247 = vmatpush1.bf16.msra.mxu1 %v6667_v43  ;;  %v6699_v43 = vld [vmem:[%s9574_s13 + $0xe4] ss:$8 sps:$4 sm:$0xff]   ;;  %v6040_v63 = vcombine.low %v1904_v57, %v1912_v9 }
 0x6c5   :  { %5248 = vmatprep.subr.bf16.mxu1 %v6672_v45  ;;  %v6041_v45 = vcombine.high %v1904_v57, %v1912_v9 }
 0x6c7   :  { %3395 = vmatpush1.bf16.msra.mxu0 %v5896_v0  ;;  %v1681_v0 = vld [vmem:[%s9571_s11 + $0x18] sm:$0xff] }
 0x6c8   :  { %3396 = vmatprep.subr.bf16.mxu0 %v5913_v3  ;;  %5249 = vmatpush1.bf16.msra.mxu1 %v6670_v4  ;;  %v6702_v3 = vld [vmem:[%s9574_s13 + $0xf4] ss:$8 sps:$4 sm:$0xff]   ;;  %v6057_v4 = vcombine.high %v1920_v62, %v1928_v39 }
 0x6c9   :  { %5250 = vmatprep.subr.bf16.mxu1 %v6675_v25  ;;  %v6056_v25 = vcombine.low %v1920_v62, %v1928_v39  ;;  %v1857_v62 = vld [vmem:[%s9571_s11 + $0x598] sm:$0xff] }
 0x6ca   :  { %v1865_v39 = vld [vmem:[%s9571_s11 + $0x5d8] sm:$0xff] }
 0x6cb   :  { %3397 = vmatpush1.bf16.msra.mxu0 %v5912_v5  ;;  %v1697_v5 = vld [vmem:[%s9571_s11 + $0x98] sm:$0xff] }
 0x6cc   :  { %3398 = vmatprep.subr.bf16.mxu0 %v5929_v49  ;;  %5251 = vmatpush1.bf16.msra.mxu1 %v6673_v26  ;;  %v6705_v26 = vld [vmem:[%s9574_s13 + $0x104] ss:$8 sps:$4 sm:$0xff]   ;;  %v5818_v49 = vcombine.low %v1681_v0, %v1689_v1  ;;  %v5835_v17 = vcombine.high %v1697_v5, %v1705_v6 }
 0x6cd   :  { %5252 = vmatprep.subr.bf16.mxu1 %v6678_v48  ;;  %v5819_v48 = vcombine.high %v1681_v0, %v1689_v1  ;;  %v5994_v0 = vcombine.low %v1857_v62, %v1865_v39 }
 0x6cf   :  { %3399 = vmatpush1.bf16.msra.mxu0 %v5928_v13  ;;  %v1713_v13 = vld [vmem:[%s9571_s11 + $0x118] sm:$0xff] }
 0x6d0   :  { %3400 = vmatprep.subr.bf16.mxu0 %v5945_v27  ;;  %5253 = vmatpush1.bf16.msra.mxu1 %v6676_v19  ;;  %v5834_v19 = vcombine.low %v1697_v5, %v1705_v6  ;;  %v1737_v27 = vld [vmem:[%s9571_s11 + $0x1d8] sm:$0xff]  ;;  %v5850_v31 = vcombine.low %v1713_v13, %v1721_v16 }
 0x6d1   :  { %5254 = vmatprep.subr.bf16.mxu1 %v6681_v20  ;;  %v1729_v20 = vld [vmem:[%s9571_s11 + $0x198] sm:$0xff] }
 0x6d2   :  { %v1905_v5 = vld [vmem:[%s9571_s11 + $0x718] sm:$0xff] }
 0x6d3   :  { %3401 = vmatpush1.bf16.msra.mxu0 %v5944_v28  ;;  %v5851_v28 = vcombine.high %v1713_v13, %v1721_v16  ;;  %v1913_v6 = vld [vmem:[%s9571_s11 + $0x758] sm:$0xff] }
 0x6d4   :  { %3402 = vmatprep.subr.bf16.mxu0 %v5961_v47  ;;  %5255 = vmatpush1.bf16.msra.mxu1 %v6679_v35  ;;  %v1753_v35 = vld [vmem:[%s9571_s11 + $0x258] sm:$0xff]  ;;  %v5866_v47 = vcombine.low %v1729_v20, %v1737_v27  ;;  %v6042_v13 = vcombine.low %v1905_v5, %v1913_v6 }
 0x6d5   :  { %5256 = vmatprep.subr.bf16.mxu1 %v6684_v36  ;;  %v5867_v36 = vcombine.high %v1729_v20, %v1737_v27  ;;  %v5883_v52 = vcombine.high %v1745_v32, %v1753_v35 }
 0x6d7   :  { %3403 = vmatpush1.bf16.msra.mxu0 %v5960_v38  ;;  %v1761_v38 = vld [vmem:[%s9571_s11 + $0x298] sm:$0xff] }
 0x6d8   :  { %3404 = vmatprep.subr.bf16.mxu0 %v5977_v21  ;;  %5257 = vmatpush1.bf16.msra.mxu1 %v6682_v53  ;;  %v5882_v53 = vcombine.low %v1745_v32, %v1753_v35  ;;  %v1785_v21 = vld [vmem:[%s9571_s11 + $0x358] sm:$0xff]  ;;  %v5898_v23 = vcombine.low %v1761_v38, %v1769_v51 }
 0x6d9   :  { %5258 = vmatprep.subr.bf16.mxu1 %v6687_v18  ;;  %v1777_v18 = vld [vmem:[%s9571_s11 + $0x318] sm:$0xff] }
 0x6db   :  { %3405 = vmatpush1.bf16.msra.mxu0 %v5976_v22  ;;  %v5899_v22 = vcombine.high %v1761_v38, %v1769_v51 }
 0x6dc   :  { %3406 = vmatprep.subr.bf16.mxu0 %v5993_v40  ;;  %5259 = vmatpush1.bf16.msra.mxu1 %v6685_v29  ;;  %v1801_v29 = vld [vmem:[%s9571_s11 + $0x3d8] sm:$0xff]  ;;  %v5914_v40 = vcombine.low %v1777_v18, %v1785_v21 }
 0x6dd   :  { %5260 = vmatprep.subr.bf16.mxu1 %v6690_v30  ;;  %v5915_v30 = vcombine.high %v1777_v18, %v1785_v21  ;;  %v5931_v46 = vcombine.high %v1793_v24, %v1801_v29 }
 0x6df   :  { %3407 = vmatpush1.bf16.msra.mxu0 %v5992_v42  ;;  %v1809_v42 = vld [vmem:[%s9571_s11 + $0x418] sm:$0xff] }
 0x6e0   :  { %3408 = vmatprep.subr.bf16.mxu0 %v6009_v7  ;;  %5261 = vmatpush1.bf16.msra.mxu1 %v6688_v50  ;;  %v5930_v50 = vcombine.low %v1793_v24, %v1801_v29  ;;  %v1833_v7 = vld [vmem:[%s9571_s11 + $0x4d8] sm:$0xff]  ;;  %v5946_v57 = vcombine.low %v1809_v42, %v1817_v44 }
 0x6e1   :  { %5262 = vmatprep.subr.bf16.mxu1 %v6693_v33  ;;  %v1825_v33 = vld [vmem:[%s9571_s11 + $0x498] sm:$0xff] }
 0x6e2   :  { %v5963_v9 = vcombine.high %v1825_v33, %v1833_v7 }
 0x6e3   :  { %3409 = vmatpush1.bf16.msra.mxu0 %v6008_v54  ;;  %v5947_v54 = vcombine.high %v1809_v42, %v1817_v44  ;;  %v8618_v44 = vld [vmem:[%s9575_s12] sm:$0xff] }
 0x6e4   :  { %3410 = vmatprep.subr.bf16.mxu0 %v6025_v60  ;;  %5263 = vmatpush1.bf16.msra.mxu1 %v6691_v11  ;;  %v1841_v11 = vld [vmem:[%s9571_s11 + $0x518] sm:$0xff]  ;;  %v5962_v60 = vcombine.low %v1825_v33, %v1833_v7  ;;  %v1779_v33 = vld [vmem:[%s9571_s11 + $0x328] sm:$0xff] }
 0x6e5   :  { %5264 = vmatprep.subr.bf16.mxu1 %v6696_v59  ;;  %v1849_v59 = vld [vmem:[%s9571_s11 + $0x558] sm:$0xff]  ;;  %v1787_v7 = vld [vmem:[%s9571_s11 + $0x368] sm:$0xff] }
 0x6e7   :  { %3411 = vmatpush1.bf16.msra.mxu0 %v6024_v61  ;;  %v5979_v61 = vcombine.high %v1841_v11, %v1849_v59 }
 0x6e8   :  { %3412 = vmatprep.subr.bf16.mxu0 %v6041_v45  ;;  %5265 = vmatpush1.bf16.msra.mxu1 %v6694_v41  ;;  %v5978_v41 = vcombine.low %v1841_v11, %v1849_v59  ;;  %v1873_v45 = vld [vmem:[%s9571_s11 + $0x618] sm:$0xff]  ;;  %v1945_v11 = vrot.slane %v8618_v44, %v7596_v58 }
 0x6e9   :  { %5266 = vmatprep.subr.bf16.mxu1 %v6699_v43  ;;  %v5995_v43 = vcombine.high %v1857_v62, %v1865_v39  ;;  %v1795_v39 = vld [vmem:[%s9571_s11 + $0x3a8] sm:$0xff] }
 0x6eb   :  { %3413 = vmatpush1.bf16.msra.mxu0 %v6040_v63  ;;  %v1881_v63 = vld [vmem:[%s9571_s11 + $0x658] sm:$0xff] }
 0x6ec   :  { %3414 = vmatprep.subr.bf16.mxu0 %v6057_v4  ;;  %5267 = vmatpush1.bf16.msra.mxu1 %v6697_v2  ;;  %v6011_v1 = vcombine.high %v1873_v45, %v1881_v63  ;;  %v1889_v2 = vld [vmem:[%s9571_s11 + $0x698] sm:$0xff]  ;;  %v6010_v4 = vcombine.low %v1873_v45, %v1881_v63 }
 0x6ed   :  { %5268 = vmatprep.subr.bf16.mxu1 %v6702_v3  ;;  %v1897_v3 = vld [vmem:[%s9571_s11 + $0x6d8] sm:$0xff] }
 0x6ef   :  { %3415 = vmatpush1.bf16.msra.mxu0 %v6056_v25  ;;  %v6027_v25 = vcombine.high %v1889_v2, %v1897_v3 }
 0x6f0   :  { %3427 = vmatprep.subr.bf16.mxu0 %v5819_v48  ;;  %5269 = vmatpush1.bf16.msra.mxu1 %v6700_v8  ;;  %v6026_v8 = vcombine.low %v1889_v2, %v1897_v3  ;;  %v1921_v48 = vld [vmem:[%s9571_s11 + $0x798] sm:$0xff] }
 0x6f1   :  { %5281 = vmatprep.subr.bf16.mxu1 %v6705_v26  ;;  %v6043_v26 = vcombine.high %v1905_v5, %v1913_v6 }
 0x6f2   :  { %3417 = vmatmul.mubr.bf16.vlgmr.msra.gmra.mrb[40].mxu0 %v8101_v14 }
 0x6f3   :  { %3428 = vmatpush1.bf16.msra.mxu0 %v5818_v49  ;;  %3459 = vmatprep.mubr.bf16.mxu0 %v8105_v15  ;;  %v1929_v49 = vld [vmem:[%s9571_s11 + $0x7d8] sm:$0xff] }
 0x6f4   :  { %3429 = vmatprep.subr.bf16.mxu0 %v5835_v17  ;;  %v6059_v16 = vcombine.high %v1921_v48, %v1929_v49  ;;  %v1683_v17 = vld [vmem:[%s9571_s11 + $0x28] sm:$0xff]  ;;  %v6058_v20 = vcombine.low %v1921_v48, %v1929_v49 }
 0x6f7   :  { %3430 = vmatpush1.bf16.msra.mxu0 %v5834_v19  ;;  %v1691_v19 = vld [vmem:[%s9571_s11 + $0x68] sm:$0xff] }
 0x6f8   :  { %3431 = vmatprep.subr.bf16.mxu0 %v5851_v28  ;;  %v5823_v27 = vcombine.high %v1683_v17, %v1691_v19  ;;  %v1699_v28 = vld [vmem:[%s9571_s11 + $0xa8] sm:$0xff]  ;;  %v5822_v32 = vcombine.low %v1683_v17, %v1691_v19 }
 0x6f9   :  { %v1811_v17 = vld [vmem:[%s9571_s11 + $0x428] sm:$0xff] }
 0x6fa   :  { %v1819_v19 = vld [vmem:[%s9571_s11 + $0x468] sm:$0xff] }
 0x6fb   :  { %3432 = vmatpush1.bf16.msra.mxu0 %v5850_v31  ;;  %v1707_v31 = vld [vmem:[%s9571_s11 + $0xe8] sm:$0xff] }
 0x6fc   :  { %3433 = vmatprep.subr.bf16.mxu0 %v5867_v36  ;;  %v5839_v35 = vcombine.high %v1699_v28, %v1707_v31  ;;  %v1715_v36 = vld [vmem:[%s9571_s11 + $0x128] sm:$0xff]  ;;  %v5838_v38 = vcombine.low %v1699_v28, %v1707_v31 }
 0x6ff   :  { %3434 = vmatpush1.bf16.msra.mxu0 %v5866_v47  ;;  %v1723_v47 = vld [vmem:[%s9571_s11 + $0x168] sm:$0xff] }
 0x700   :  { %3435 = vmatprep.subr.bf16.mxu0 %v5883_v52  ;;  %v5855_v51 = vcombine.high %v1715_v36, %v1723_v47  ;;  %v1731_v52 = vld [vmem:[%s9571_s11 + $0x1a8] sm:$0xff]  ;;  %v5854_v18 = vcombine.low %v1715_v36, %v1723_v47 }
 0x703   :  { %3436 = vmatpush1.bf16.msra.mxu0 %v5882_v53  ;;  %v1739_v53 = vld [vmem:[%s9571_s11 + $0x1e8] sm:$0xff] }
 0x704   :  { %3437 = vmatprep.subr.bf16.mxu0 %v5899_v22  ;;  %v5871_v21 = vcombine.high %v1731_v52, %v1739_v53  ;;  %v1747_v22 = vld [vmem:[%s9571_s11 + $0x228] sm:$0xff]  ;;  %v5870_v24 = vcombine.low %v1731_v52, %v1739_v53  ;;  %v5951_v52 = vcombine.high %v1811_v17, %v1819_v19 }
 0x707   :  { %3438 = vmatpush1.bf16.msra.mxu0 %v5898_v23  ;;  %v1755_v23 = vld [vmem:[%s9571_s11 + $0x268] sm:$0xff] }
 0x708   :  { %3439 = vmatprep.subr.bf16.mxu0 %v5915_v30  ;;  %v5887_v29 = vcombine.high %v1747_v22, %v1755_v23  ;;  %v1763_v30 = vld [vmem:[%s9571_s11 + $0x2a8] sm:$0xff]  ;;  %v5886_v42 = vcombine.low %v1747_v22, %v1755_v23 }
 0x709   :  { %v1827_v22 = vld [vmem:[%s9571_s11 + $0x4a8] sm:$0xff] }
 0x70a   :  { %v1835_v23 = vld [vmem:[%s9571_s11 + $0x4e8] sm:$0xff] }
 0x70b   :  { %3440 = vmatpush1.bf16.msra.mxu0 %v5914_v40  ;;  %v1771_v40 = vld [vmem:[%s9571_s11 + $0x2e8] sm:$0xff] }
 0x70c   :  { %3441 = vmatprep.subr.bf16.mxu0 %v5931_v46  ;;  %v8623_v46 = vld [vmem:[%s9575_s12 + $0x8] sm:$0xff] }
 0x70d   :  { %v1977_v59 = vrot.slane %v8623_v46, %v7596_v58 }
 0x70f   :  { %3442 = vmatpush1.bf16.msra.mxu0 %v5930_v50  ;;  %v5903_v50 = vcombine.high %v1763_v30, %v1771_v40 }
 0x710   :  { %3443 = vmatprep.subr.bf16.mxu0 %v5947_v54  ;;  %v1941_v54 = vrot.slane %v8618_v44, %v7590_v56 }
 0x713   :  { %3444 = vmatpush1.bf16.msra.mxu0 %v5946_v57  ;;  %v1973_v57 = vrot.slane %v8623_v46, %v7590_v56 }
 0x714   :  { %3445 = vmatprep.subr.bf16.mxu0 %v5963_v9  ;;  %v5902_v9 = vcombine.low %v1763_v30, %v1771_v40  ;;  %v5967_v30 = vcombine.high %v1827_v22, %v1835_v23  ;;  %v6706_v40 = vld [vmem:[%s9574_s13 + $0x110] ss:$8 sps:$4 sm:$0xff]  }
 0x717   :  { %3446 = vmatpush1.bf16.msra.mxu0 %v5962_v60  ;;  %v5919_v60 = vcombine.high %v1779_v33, %v1787_v7 }
 0x718   :  { %3447 = vmatprep.subr.bf16.mxu0 %v5979_v61 }
 0x71b   :  { %3448 = vmatpush1.bf16.msra.mxu0 %v5978_v41  ;;  %v1803_v41 = vld [vmem:[%s9571_s11 + $0x3e8] sm:$0xff] }
 0x71c   :  { %3449 = vmatprep.subr.bf16.mxu0 %v5995_v43  ;;  %v5935_v48 = vcombine.high %v1795_v39, %v1803_v41 }
 0x71f   :  { %3450 = vmatpush1.bf16.msra.mxu0 %v5994_v0 }
 0x720   :  { %3451 = vmatprep.subr.bf16.mxu0 %v6011_v1 }
 0x723   :  { %3452 = vmatpush1.bf16.msra.mxu0 %v6010_v4 }
 0x724   :  { %3453 = vmatprep.subr.bf16.mxu0 %v6027_v25  ;;  %v5918_v25 = vcombine.low %v1779_v33, %v1787_v7  ;;  %v6711_v33 = vld [vmem:[%s9574_s13 + $0x124] ss:$8 sps:$4 sm:$0xff]   ;;  %v5966_v7 = vcombine.low %v1827_v22, %v1835_v23 }
 0x727   :  { %3454 = vmatpush1.bf16.msra.mxu0 %v6026_v8 }
 0x728   :  { %3455 = vmatprep.subr.bf16.mxu0 %v6043_v26 }
 0x72b   :  { %3456 = vmatpush1.bf16.msra.mxu0 %v6042_v13 }
 0x72c   :  { %3457 = vmatprep.subr.bf16.mxu0 %v6059_v16  ;;  %v5934_v16 = vcombine.low %v1795_v39, %v1803_v41  ;;  %v1875_v39 = vld [vmem:[%s9571_s11 + $0x628] sm:$0xff] }
 0x72d   :  { %v1883_v41 = vld [vmem:[%s9571_s11 + $0x668] sm:$0xff] }
 0x72f   :  { %3458 = vmatpush1.bf16.msra.mxu0 %v6058_v20 }
 0x730   :  { %3513 = vmatprep.subr.bf16.mxu0 %v5823_v27 }
 0x732   :  { %3460 = vmatmul.mubr.bf16.vlgmr.msra.gmra.mrb[44].mxu0 %v8101_v14 }
 0x733   :  { %3514 = vmatpush1.bf16.msra.mxu0 %v5822_v32  ;;  %3545 = vmatprep.mubr.bf16.mxu0 %v8105_v15 }
 0x734   :  { %3515 = vmatprep.subr.bf16.mxu0 %v5839_v35 }
 0x737   :  { %3516 = vmatpush1.bf16.msra.mxu0 %v5838_v38 }
 0x738   :  { %3517 = vmatprep.subr.bf16.mxu0 %v5855_v51 }
 0x73b   :  { %3518 = vmatpush1.bf16.msra.mxu0 %v5854_v18 }
 0x73c   :  { %3519 = vmatprep.subr.bf16.mxu0 %v5871_v21  ;;  %v6703_v21 = vld [vmem:[%s9574_s13 + $0x100] ss:$8 sps:$4 sm:$0xff]  }
 0x73f   :  { %3520 = vmatpush1.bf16.msra.mxu0 %v5870_v24  ;;  %v6708_v24 = vld [vmem:[%s9574_s13 + $0x114] ss:$8 sps:$4 sm:$0xff]  }
 0x740   :  { %3521 = vmatprep.subr.bf16.mxu0 %v5887_v29  ;;  %v5950_v29 = vcombine.low %v1811_v17, %v1819_v19  ;;  %v1931_v17 = vld [vmem:[%s9571_s11 + $0x7e8] sm:$0xff]  ;;  %v6726_v19 = vld [vmem:[%s9574_s13 + $0x174] ss:$8 sps:$4 sm:$0xff]  }
 0x743   :  { %3522 = vmatpush1.bf16.msra.mxu0 %v5886_v42  ;;  %v1843_v42 = vld [vmem:[%s9571_s11 + $0x528] sm:$0xff] }
 0x744   :  { %3523 = vmatprep.subr.bf16.mxu0 %v5903_v50  ;;  %v1851_v50 = vld [vmem:[%s9571_s11 + $0x568] sm:$0xff] }
 0x745   :  { %v3332_v61 = vpop.f32.mrb[32].mxu0  ;;  %v3504_v62 = vpop.f32.mrb[16].mxu1 }
 0x746   :  { %v3333_v43 = vadd.f32 %v3332_v61, %v1941_v54  ;;  %v3505_v45 = vadd.f32 %v3504_v62, %v1973_v57  ;;  %v3334_v63 = vpop.f32.mrb[33].mxu0  ;;  %v3506_v0 = vpop.f32.mrb[17].mxu1  ;;  %v6712_v62 = vld [vmem:[%s9574_s13 + $0x130] ss:$8 sps:$4 sm:$0xff]  }
 0x747   :  { %v3335_v1 = vadd.f32 %v3334_v63, %v1945_v11  ;;  %v3507_v2 = vadd.f32 %v3506_v0, %v1977_v59  ;;  %3524 = vmatpush1.bf16.msra.mxu0 %v5902_v9  ;;  %v3336_v3 = vpop.f32.mrb[34].mxu0  ;;  %v3508_v4 = vpop.f32.mrb[18].mxu1  ;;  %v1859_v9 = vld [vmem:[%s9571_s11 + $0x5a8] sm:$0xff]  ;;  %v6015_v63 = vcombine.high %v1875_v39, %v1883_v41 }
 0x748   :  { %v3337_v5 = vadd.f32 %v3336_v3, %v1941_v54  ;;  %v3509_v6 = vadd.f32 %v3508_v4, %v1973_v57  ;;  %v3338_v8 = vpop.f32.mrb[35].mxu0  ;;  %v3510_v26 = vpop.f32.mrb[19].mxu1  ;;  %3525 = vmatprep.subr.bf16.mxu0 %v5919_v60  ;;  %v3642_v20 = vmax.f32 %v3333_v43, 0.0  ;;  %v3650_v27 = vmax.f32 %v3505_v45, 0.0  ;;  %v6709_v57 = vld [vmem:[%s9574_s13 + $0x120] ss:$8 sps:$4 sm:$0xff]  }
 0x749   :  { %v3339_v49 = vadd.f32 %v3338_v8, %v1945_v11  ;;  %v3511_v13 = vadd.f32 %v3510_v26, %v1977_v59  ;;  %v3643_v32 = vmax.f32 %v3335_v1, 0.0  ;;  %v3651_v35 = vmax.f32 %v3507_v2, 0.0  ;;  %v1867_v11 = vld [vmem:[%s9571_s11 + $0x5e8] sm:$0xff]  ;;  %v6714_v59 = vld [vmem:[%s9574_s13 + $0x134] ss:$8 sps:$4 sm:$0xff]  }
 0x74a   :  { %v3658_v28 = vmax.f32 %v3337_v5, 0.0  ;;  %v3666_v31 = vmax.f32 %v3509_v6, 0.0  ;;  %v5983_v54 = vcombine.high %v1843_v42, %v1851_v50  ;;  %v5982_v60 = vcombine.low %v1843_v42, %v1851_v50  ;;  %v6717_v43 = vld [vmem:[%s9574_s13 + $0x144] ss:$8 sps:$4 sm:$0xff]   ;;  %v6715_v0 = vld [vmem:[%s9574_s13 + $0x140] ss:$8 sps:$4 sm:$0xff]  }
 0x74b   :  { %v3659_v36 = vmax.f32 %v3339_v49, 0.0  ;;  %v3667_v47 = vmax.f32 %v3511_v13, 0.0  ;;  %3526 = vmatpush1.bf16.msra.mxu0 %v5918_v25  ;;  %v5999_v61 = vcombine.high %v1859_v9, %v1867_v11  ;;  %v5998_v45 = vcombine.low %v1859_v9, %v1867_v11  ;;  %v1891_v1 = vld [vmem:[%s9571_s11 + $0x6a8] sm:$0xff]  ;;  %v6720_v3 = vld [vmem:[%s9574_s13 + $0x154] ss:$8 sps:$4 sm:$0xff]  }
 0x74c   :  { %v3674_v38 = vpack.c.bf16 %v3658_v28, %v3642_v20  ;;  %v8651_v51 = vpack.c.bf16 %v3666_v31, %v3650_v27  ;;  %3527 = vmatprep.subr.bf16.mxu0 %v5935_v48  ;;  %v1899_v2 = vld [vmem:[%s9571_s11 + $0x6e8] sm:$0xff]  ;;  %v6014_v4 = vcombine.low %v1875_v39, %v1883_v41  ;;  %v6718_v5 = vld [vmem:[%s9574_s13 + $0x150] ss:$8 sps:$4 sm:$0xff]  }
 0x74d   :  { %v3675_v53 = vpack.c.bf16 %v3659_v36, %v3643_v32  ;;  %v8653_v18 = vpack.c.bf16 %v3667_v47, %v3651_v35  ;;  %v6031_v25 = vcombine.high %v1891_v1, %v1899_v2  ;;  %v1907_v6 = vld [vmem:[%s9571_s11 + $0x728] sm:$0xff]  ;;  %v6030_v48 = vcombine.low %v1891_v1, %v1899_v2  ;;  %v6724_v28 = vld [vmem:[%s9574_s13 + $0x170] ss:$8 sps:$4 sm:$0xff]  }
 0x74e   :  { %v1915_v8 = vld [vmem:[%s9571_s11 + $0x768] sm:$0xff]  ;;  %v1685_v31 = vld [vmem:[%s9571_s11 + $0x38] sm:$0xff]  ;;  %v1956_v1 = vsub.s32 4, %v7587_v55 }
 0x74f   :  { %3528 = vmatpush1.bf16.msra.mxu0 %v5934_v16  ;;  %5270 = vmatprep.mubr.bf16.mxu1 %v3675_v53  ;;  %v6723_v26 = vld [vmem:[%s9574_s13 + $0x164] ss:$8 sps:$4 sm:$0xff]   ;;  %v6047_v49 = vcombine.high %v1907_v6, %v1915_v8  ;;  %v6721_v13 = vld [vmem:[%s9574_s13 + $0x160] ss:$8 sps:$4 sm:$0xff]   ;;  %v6046_v20 = vcombine.low %v1907_v6, %v1915_v8  ;;  %v1693_v32 = vld [vmem:[%s9571_s11 + $0x78] sm:$0xff] }
 0x750   :  { %5271 = vmatmul.mubr.bf16.vlgmr.msra.gmra.mrb[24].mxu1 %v3674_v38  ;;  %3529 = vmatprep.subr.bf16.mxu0 %v5951_v52  ;;  %v1923_v16 = vld [vmem:[%s9571_s11 + $0x7a8] sm:$0xff]  ;;  %v5827_v47 = vcombine.high %v1685_v31, %v1693_v32  ;;  %v1701_v52 = vld [vmem:[%s9571_s11 + $0xb8] sm:$0xff]  ;;  %v5826_v22 = vcombine.low %v1685_v31, %v1693_v32 }
 0x751   :  { %5282 = vmatpush1.bf16.msra.mxu1 %v6703_v21  ;;  %v6063_v27 = vcombine.high %v1923_v16, %v1931_v17  ;;  %v6729_v35 = vld [vmem:[%s9574_s13 + $0x184] ss:$8 sps:$4 sm:$0xff]   ;;  %v6062_v36 = vcombine.low %v1923_v16, %v1931_v17  ;;  %v6727_v38 = vld [vmem:[%s9574_s13 + $0x180] ss:$8 sps:$4 sm:$0xff]   ;;  %v1709_v53 = vld [vmem:[%s9571_s11 + $0xf8] sm:$0xff] }
 0x752   :  { %5283 = vmatprep.subr.bf16.mxu1 %v6708_v24  ;;  %v6732_v21 = vld [vmem:[%s9574_s13 + $0x194] ss:$8 sps:$4 sm:$0xff]   ;;  %v5843_v23 = vcombine.high %v1701_v52, %v1709_v53  ;;  %v6730_v24 = vld [vmem:[%s9574_s13 + $0x190] ss:$8 sps:$4 sm:$0xff]   ;;  %v5842_v42 = vcombine.low %v1701_v52, %v1709_v53  ;;  %v6739_v41 = vld [vmem:[%s9574_s13 + $0x1c0] ss:$8 sps:$4 sm:$0xff]  }
 0x753   :  { %3530 = vmatpush1.bf16.msra.mxu0 %v5950_v29  ;;  %v1717_v29 = vld [vmem:[%s9571_s11 + $0x138] sm:$0xff] }
 0x754   :  { %3531 = vmatprep.subr.bf16.mxu0 %v5967_v30  ;;  %v1725_v30 = vld [vmem:[%s9571_s11 + $0x178] sm:$0xff] }
 0x755   :  { %5284 = vmatpush1.bf16.msra.mxu1 %v6706_v40  ;;  %v6735_v40 = vld [vmem:[%s9574_s13 + $0x1a4] ss:$8 sps:$4 sm:$0xff]   ;;  %v5859_v50 = vcombine.high %v1717_v29, %v1725_v30  ;;  %v6736_v11 = vld [vmem:[%s9574_s13 + $0x1b0] ss:$8 sps:$4 sm:$0xff]  }
 0x756   :  { %5285 = vmatprep.subr.bf16.mxu1 %v6711_v33  ;;  %v6733_v33 = vld [vmem:[%s9574_s13 + $0x1a0] ss:$8 sps:$4 sm:$0xff]   ;;  %v1781_v6 = vld [vmem:[%s9571_s11 + $0x338] sm:$0xff] }
 0x757   :  { %3532 = vmatpush1.bf16.msra.mxu0 %v5966_v7  ;;  %v1733_v7 = vld [vmem:[%s9571_s11 + $0x1b8] sm:$0xff] }
 0x758   :  { %3533 = vmatprep.subr.bf16.mxu0 %v5983_v54  ;;  %v1741_v54 = vld [vmem:[%s9571_s11 + $0x1f8] sm:$0xff] }
 0x759   :  { %5286 = vmatpush1.bf16.msra.mxu1 %v6709_v57  ;;  %v5858_v57 = vcombine.low %v1717_v29, %v1725_v30  ;;  %v5875_v9 = vcombine.high %v1733_v7, %v1741_v54  ;;  %v1789_v8 = vld [vmem:[%s9571_s11 + $0x378] sm:$0xff] }
 0x75a   :  { %5287 = vmatprep.subr.bf16.mxu1 %v6714_v59  ;;  %v1749_v59 = vld [vmem:[%s9571_s11 + $0x238] sm:$0xff] }
 0x75b   :  { %3534 = vmatpush1.bf16.msra.mxu0 %v5982_v60  ;;  %v1757_v60 = vld [vmem:[%s9571_s11 + $0x278] sm:$0xff] }
 0x75c   :  { %3535 = vmatprep.subr.bf16.mxu0 %v5999_v61  ;;  %v6741_v61 = vld [vmem:[%s9574_s13 + $0x1c4] ss:$8 sps:$4 sm:$0xff]   ;;  %v5891_v39 = vcombine.high %v1749_v59, %v1757_v60  ;;  %v5890_v2 = vcombine.low %v1749_v59, %v1757_v60  ;;  %v1797_v31 = vld [vmem:[%s9571_s11 + $0x3b8] sm:$0xff] }
 0x75d   :  { %5288 = vmatpush1.bf16.msra.mxu1 %v6712_v62  ;;  %v5874_v62 = vcombine.low %v1733_v7, %v1741_v54  ;;  %v1805_v32 = vld [vmem:[%s9571_s11 + $0x3f8] sm:$0xff] }
 0x75e   :  { %5289 = vmatprep.subr.bf16.mxu1 %v6717_v43  ;;  %v1765_v43 = vld [vmem:[%s9571_s11 + $0x2b8] sm:$0xff]  ;;  %v5938_v54 = vcombine.low %v1797_v31, %v1805_v32 }
 0x75f   :  { %3536 = vmatpush1.bf16.msra.mxu0 %v5998_v45  ;;  %v1773_v45 = vld [vmem:[%s9571_s11 + $0x2f8] sm:$0xff] }
 0x760   :  { %3537 = vmatprep.subr.bf16.mxu0 %v6015_v63  ;;  %v6744_v63 = vld [vmem:[%s9574_s13 + $0x1d4] ss:$8 sps:$4 sm:$0xff]   ;;  %v5906_v17 = vcombine.low %v1765_v43, %v1773_v45  ;;  %v6748_v7 = vld [vmem:[%s9574_s13 + $0x1f0] ss:$8 sps:$4 sm:$0xff]  }
 0x761   :  { %5290 = vmatpush1.bf16.msra.mxu1 %v6715_v0  ;;  %v1948_v0 = vsub.s32 2, %v7587_v55 }
 0x762   :  { %5291 = vmatprep.subr.bf16.mxu1 %v6720_v3  ;;  %v1952_v3 = vsub.s32 3, %v7587_v55 }
 0x763   :  { %3538 = vmatpush1.bf16.msra.mxu0 %v6014_v4  ;;  %v1960_v4 = vsub.s32 5, %v7587_v55 }
 0x764   :  { %3539 = vmatprep.subr.bf16.mxu0 %v6031_v25  ;;  %v5907_v25 = vcombine.high %v1765_v43, %v1773_v45 }
 0x765   :  { %5292 = vmatpush1.bf16.msra.mxu1 %v6718_v5  ;;  %v6742_v5 = vld [vmem:[%s9574_s13 + $0x1d0] ss:$8 sps:$4 sm:$0xff]   ;;  %v1993_v16 = vrot.slane %v8623_v46, %v1960_v4 }
 0x766   :  { %5293 = vmatprep.subr.bf16.mxu1 %v6723_v26  ;;  %v1949_v26 = vrot.slane %v8618_v44, %v1948_v0 }
 0x767   :  { %3540 = vmatpush1.bf16.msra.mxu0 %v6030_v48  ;;  %v1989_v48 = vrot.slane %v8623_v46, %v1956_v1 }
 0x768   :  { %3541 = vmatprep.subr.bf16.mxu0 %v6047_v49  ;;  %v6747_v49 = vld [vmem:[%s9574_s13 + $0x1e4] ss:$8 sps:$4 sm:$0xff]  }
 0x769   :  { %5294 = vmatpush1.bf16.msra.mxu1 %v6721_v13  ;;  %v1953_v13 = vrot.slane %v8618_v44, %v1952_v3 }
 0x76a   :  { %5295 = vmatprep.subr.bf16.mxu1 %v6726_v19  ;;  %v5923_v19 = vcombine.high %v1781_v6, %v1789_v8 }
 0x76b   :  { %3542 = vmatpush1.bf16.msra.mxu0 %v6046_v20 }
 0x76c   :  { %3543 = vmatprep.subr.bf16.mxu0 %v6063_v27 }
 0x76d   :  { %5296 = vmatpush1.bf16.msra.mxu1 %v6724_v28  ;;  %v6745_v28 = vld [vmem:[%s9574_s13 + $0x1e0] ss:$8 sps:$4 sm:$0xff]  }
 0x76e   :  { %5297 = vmatprep.subr.bf16.mxu1 %v6729_v35 }
 0x76f   :  { %3544 = vmatpush1.bf16.msra.mxu0 %v6062_v36 }
 0x770   :  { %3599 = vmatprep.subr.bf16.mxu0 %v5827_v47 }
 0x771   :  { %5298 = vmatpush1.bf16.msra.mxu1 %v6727_v38  ;;  %v6750_v38 = vld [vmem:[%s9574_s13 + $0x1f4] ss:$8 sps:$4 sm:$0xff]  }
 0x772   :  { %3546 = vmatmul.mubr.bf16.vlgmr.msra.gmra.mrb[48].mxu0 %v8101_v14  ;;  %5299 = vmatprep.subr.bf16.mxu1 %v6732_v21 }
 0x773   :  { %3600 = vmatpush1.bf16.msra.mxu0 %v5826_v22  ;;  %3631 = vmatprep.mubr.bf16.mxu0 %v8105_v15  ;;  %v6738_v15 = vld [vmem:[%s9574_s13 + $0x1b4] ss:$8 sps:$4 sm:$0xff]  }
 0x774   :  { %3601 = vmatprep.subr.bf16.mxu0 %v5843_v23  ;;  %v5922_v23 = vcombine.low %v1781_v6, %v1789_v8  ;;  %v6751_v6 = vld [vmem:[%s9574_s13 + $0x200] ss:$8 sps:$4 sm:$0xff]   ;;  %v1829_v8 = vld [vmem:[%s9571_s11 + $0x4b8] sm:$0xff] }
 0x775   :  { %5300 = vmatpush1.bf16.msra.mxu1 %v6730_v24 }
 0x776   :  { %5301 = vmatprep.subr.bf16.mxu1 %v6735_v40 }
 0x777   :  { %3602 = vmatpush1.bf16.msra.mxu0 %v5842_v42  ;;  %v5939_v42 = vcombine.high %v1797_v31, %v1805_v32  ;;  %v6757_v31 = vld [vmem:[%s9574_s13 + $0x220] ss:$8 sps:$4 sm:$0xff]   ;;  %v1861_v32 = vld [vmem:[%s9571_s11 + $0x5b8] sm:$0xff] }
 0x778   :  { %3603 = vmatprep.subr.bf16.mxu0 %v5859_v50 }
 0x779   :  { %5302 = vmatpush1.bf16.msra.mxu1 %v6733_v33 }
 0x77a   :  { %5303 = vmatprep.subr.bf16.mxu1 %v6738_v15  ;;  %v1813_v15 = vld [vmem:[%s9571_s11 + $0x438] sm:$0xff] }
 0x77b   :  { %3604 = vmatpush1.bf16.msra.mxu0 %v5858_v57  ;;  %v1821_v57 = vld [vmem:[%s9571_s11 + $0x478] sm:$0xff] }
 0x77c   :  { %3605 = vmatprep.subr.bf16.mxu0 %v5875_v9 }
 0x77d   :  { %5304 = vmatpush1.bf16.msra.mxu1 %v6736_v11 }
 0x77e   :  { %5305 = vmatprep.subr.bf16.mxu1 %v6741_v61  ;;  %v6753_v61 = vld [vmem:[%s9574_s13 + $0x204] ss:$8 sps:$4 sm:$0xff]  }
 0x77f   :  { %3606 = vmatpush1.bf16.msra.mxu0 %v5874_v62 }
 0x780   :  { %3607 = vmatprep.subr.bf16.mxu0 %v5891_v39 }
 0x781   :  { %5306 = vmatpush1.bf16.msra.mxu1 %v6739_v41 }
 0x782   :  { %5307 = vmatprep.subr.bf16.mxu1 %v6744_v63 }
 0x783   :  { %3608 = vmatpush1.bf16.msra.mxu0 %v5890_v2  ;;  %v5955_v2 = vcombine.high %v1813_v15, %v1821_v57 }
 0x784   :  { %3609 = vmatprep.subr.bf16.mxu0 %v5907_v25 }
 0x785   :  { %v3375_v20 = vpop.f32.mrb[36].mxu0  ;;  %v3590_v27 = vpop.f32.mrb[20].mxu1  ;;  %5308 = vmatpush1.bf16.msra.mxu1 %v6742_v5 }
 0x786   :  { %v3376_v35 = vadd.f32 %v3375_v20, %v1949_v26  ;;  %v3591_v46 = vadd.f32 %v3590_v27, %v1989_v48  ;;  %v3377_v36 = vpop.f32.mrb[37].mxu0  ;;  %v3592_v47 = vpop.f32.mrb[21].mxu1  ;;  %5309 = vmatprep.subr.bf16.mxu1 %v6747_v49  ;;  %v5954_v49 = vcombine.low %v1813_v15, %v1821_v57  ;;  %v6759_v20 = vld [vmem:[%s9574_s13 + $0x224] ss:$8 sps:$4 sm:$0xff]  }
 0x787   :  { %v3378_v52 = vadd.f32 %v3377_v36, %v1953_v13  ;;  %v3593_v53 = vadd.f32 %v3592_v47, %v1993_v16  ;;  %v3379_v21 = vpop.f32.mrb[38].mxu0  ;;  %v3594_v22 = vpop.f32.mrb[22].mxu1  ;;  %3610 = vmatpush1.bf16.msra.mxu0 %v5906_v17  ;;  %v1845_v17 = vld [vmem:[%s9571_s11 + $0x538] sm:$0xff]  ;;  %v6771_v15 = vld [vmem:[%s9574_s13 + $0x264] ss:$8 sps:$4 sm:$0xff]  }
 0x788   :  { %v3380_v24 = vadd.f32 %v3379_v21, %v1949_v26  ;;  %v3595_v29 = vadd.f32 %v3594_v22, %v1989_v48  ;;  %v3381_v30 = vpop.f32.mrb[39].mxu0  ;;  %v3596_v40 = vpop.f32.mrb[23].mxu1  ;;  %3611 = vmatprep.subr.bf16.mxu0 %v5923_v19  ;;  %v3644_v9 = vmax.f32 %v3376_v35, 0.0  ;;  %v3654_v11 = vmax.f32 %v3591_v46, 0.0  ;;  %v1837_v26 = vld [vmem:[%s9571_s11 + $0x4f8] sm:$0xff] }
 0x789   :  { %v3382_v50 = vadd.f32 %v3381_v30, %v1953_v13  ;;  %v3597_v33 = vadd.f32 %v3596_v40, %v1993_v16  ;;  %5310 = vmatpush1.bf16.msra.mxu1 %v6745_v28  ;;  %v3645_v62 = vmax.f32 %v3378_v52, 0.0  ;;  %v3655_v39 = vmax.f32 %v3593_v53, 0.0  ;;  %v6756_v48 = vld [vmem:[%s9574_s13 + $0x214] ss:$8 sps:$4 sm:$0xff]   ;;  %v6754_v16 = vld [vmem:[%s9574_s13 + $0x210] ss:$8 sps:$4 sm:$0xff]  }
 0x78a   :  { %v3660_v59 = vmax.f32 %v3380_v24, 0.0  ;;  %v3670_v60 = vmax.f32 %v3595_v29, 0.0  ;;  %5311 = vmatprep.subr.bf16.mxu1 %v6750_v38  ;;  %v5971_v13 = vcombine.high %v1829_v8, %v1837_v26  ;;  %v1853_v19 = vld [vmem:[%s9571_s11 + $0x578] sm:$0xff]  ;;  %v5970_v27 = vcombine.low %v1829_v8, %v1837_v26  ;;  %v6765_v21 = vld [vmem:[%s9574_s13 + $0x244] ss:$8 sps:$4 sm:$0xff]  }
 0x78b   :  { %v3661_v41 = vmax.f32 %v3382_v50, 0.0  ;;  %v3671_v43 = vmax.f32 %v3597_v33, 0.0  ;;  %3612 = vmatpush1.bf16.msra.mxu0 %v5922_v23  ;;  %v5987_v28 = vcombine.high %v1845_v17, %v1853_v19  ;;  %v1869_v35 = vld [vmem:[%s9571_s11 + $0x5f8] sm:$0xff]  ;;  %v5986_v36 = vcombine.low %v1845_v17, %v1853_v19  ;;  %v6763_v24 = vld [vmem:[%s9574_s13 + $0x240] ss:$8 sps:$4 sm:$0xff]  }
 0x78c   :  { %v3676_v45 = vpack.c.bf16 %v3660_v59, %v3644_v9  ;;  %v8865_v63 = vpack.c.bf16 %v3670_v60, %v3654_v11  ;;  %3613 = vmatprep.subr.bf16.mxu0 %v5939_v42  ;;  %v6762_v46 = vld [vmem:[%s9574_s13 + $0x234] ss:$8 sps:$4 sm:$0xff]   ;;  %v6003_v47 = vcombine.high %v1861_v32, %v1869_v35  ;;  %v6760_v38 = vld [vmem:[%s9574_s13 + $0x230] ss:$8 sps:$4 sm:$0xff]   ;;  %v6002_v22 = vcombine.low %v1861_v32, %v1869_v35  ;;  %v6769_v11 = vld [vmem:[%s9574_s13 + $0x260] ss:$8 sps:$4 sm:$0xff]  }
 0x78d   :  { %v3677_v25 = vpack.c.bf16 %v3661_v41, %v3645_v62  ;;  %v8867_v5 = vpack.c.bf16 %v3671_v43, %v3655_v39  ;;  %5312 = vmatpush1.bf16.msra.mxu1 %v6748_v7  ;;  %v1877_v52 = vld [vmem:[%s9571_s11 + $0x638] sm:$0xff]  ;;  %v6777_v43 = vld [vmem:[%s9574_s13 + $0x284] ss:$8 sps:$4 sm:$0xff]   ;;  %v6781_v26 = vld [vmem:[%s9574_s13 + $0x2a0] ss:$8 sps:$4 sm:$0xff]   ;;  %v1957_v19 = vrot.slane %v8618_v44, %v1956_v1 }
 0x78e   :  { %5324 = vmatprep.subr.bf16.mxu1 %v6753_v61  ;;  %v1885_v53 = vld [vmem:[%s9571_s11 + $0x678] sm:$0xff]  ;;  %v6783_v8 = vld [vmem:[%s9574_s13 + $0x2a4] ss:$8 sps:$4 sm:$0xff]  }
 0x78f   :  { %3614 = vmatpush1.bf16.msra.mxu0 %v5938_v54  ;;  %5313 = vmatprep.mubr.bf16.mxu1 %v3677_v25  ;;  %v6019_v23 = vcombine.high %v1877_v52, %v1885_v53  ;;  %v1893_v29 = vld [vmem:[%s9571_s11 + $0x6b8] sm:$0xff]  ;;  %v6018_v42 = vcombine.low %v1877_v52, %v1885_v53 }
 0x790   :  { %5314 = vmatmul.mubr.bf16.vlgmr.msra.gmra.mrb[24].mxu1 %v3676_v45  ;;  %3615 = vmatprep.subr.bf16.mxu0 %v5955_v2  ;;  %v1901_v30 = vld [vmem:[%s9571_s11 + $0x6f8] sm:$0xff]  ;;  %v6775_v2 = vld [vmem:[%s9574_s13 + $0x280] ss:$8 sps:$4 sm:$0xff]  }
 0x791   :  { %5325 = vmatpush1.bf16.msra.mxu1 %v6751_v6  ;;  %v6768_v40 = vld [vmem:[%s9574_s13 + $0x254] ss:$8 sps:$4 sm:$0xff]   ;;  %v6035_v50 = vcombine.high %v1893_v29, %v1901_v30  ;;  %v6766_v33 = vld [vmem:[%s9574_s13 + $0x250] ss:$8 sps:$4 sm:$0xff]   ;;  %v6034_v57 = vcombine.low %v1893_v29, %v1901_v30 }
 0x792   :  { %5326 = vmatprep.subr.bf16.mxu1 %v6756_v48  ;;  %v1909_v7 = vld [vmem:[%s9571_s11 + $0x738] sm:$0xff] }
 0x793   :  { %3616 = vmatpush1.bf16.msra.mxu0 %v5954_v49  ;;  %v1917_v54 = vld [vmem:[%s9571_s11 + $0x778] sm:$0xff]  ;;  %v6789_v49 = vld [vmem:[%s9574_s13 + $0x2c4] ss:$8 sps:$4 sm:$0xff]  }
 0x794   :  { %3617 = vmatprep.subr.bf16.mxu0 %v5971_v13  ;;  %v6051_v9 = vcombine.high %v1909_v7, %v1917_v54  ;;  %v1925_v59 = vld [vmem:[%s9571_s11 + $0x7b8] sm:$0xff]  ;;  %v6050_v62 = vcombine.low %v1909_v7, %v1917_v54  ;;  %v6787_v13 = vld [vmem:[%s9574_s13 + $0x2c0] ss:$8 sps:$4 sm:$0xff]  }
 0x795   :  { %5327 = vmatpush1.bf16.msra.mxu1 %v6754_v16  ;;  %v1933_v60 = vld [vmem:[%s9571_s11 + $0x7f8] sm:$0xff]  ;;  %v6805_v7 = vld [vmem:[%s9574_s13 + $0x320] ss:$8 sps:$4 sm:$0xff]  }
 0x796   :  { %5328 = vmatprep.subr.bf16.mxu1 %v6759_v20  ;;  %v6774_v61 = vld [vmem:[%s9574_s13 + $0x274] ss:$8 sps:$4 sm:$0xff]   ;;  %v6067_v39 = vcombine.high %v1925_v59, %v1933_v60  ;;  %v6772_v41 = vld [vmem:[%s9574_s13 + $0x270] ss:$8 sps:$4 sm:$0xff]   ;;  %v6066_v45 = vcombine.low %v1925_v59, %v1933_v60  ;;  %v6795_v20 = vld [vmem:[%s9574_s13 + $0x2e4] ss:$8 sps:$4 sm:$0xff]  }
 0x797   :  { %3618 = vmatpush1.bf16.msra.mxu0 %v5970_v27  ;;  %v6780_v25 = vld [vmem:[%s9574_s13 + $0x294] ss:$8 sps:$4 sm:$0xff]   ;;  %v6778_v6 = vld [vmem:[%s9574_s13 + $0x290] ss:$8 sps:$4 sm:$0xff]   ;;  %v1961_v27 = vrot.slane %v8618_v44, %v1960_v4  ;;  %v6819_v60 = vld [vmem:[%s9574_s13 + $0x364] ss:$8 sps:$4 sm:$0xff]  }
 0x798   :  { %3619 = vmatprep.subr.bf16.mxu0 %v5987_v28  ;;  %v6786_v48 = vld [vmem:[%s9574_s13 + $0x2b4] ss:$8 sps:$4 sm:$0xff]   ;;  %v6790_v17 = vld [vmem:[%s9574_s13 + $0x2d0] ss:$8 sps:$4 sm:$0xff]  }
 0x799   :  { %5329 = vmatpush1.bf16.msra.mxu1 %v6757_v31  ;;  %v6792_v16 = vld [vmem:[%s9574_s13 + $0x2d4] ss:$8 sps:$4 sm:$0xff]   ;;  %v6793_v31 = vld [vmem:[%s9574_s13 + $0x2e0] ss:$8 sps:$4 sm:$0xff]   ;;  %v6796_v4 = vld [vmem:[%s9574_s13 + $0x2f0] ss:$8 sps:$4 sm:$0xff]  }
 0x79a   :  { %5330 = vmatprep.subr.bf16.mxu1 %v6762_v46  ;;  %v6798_v1 = vld [vmem:[%s9574_s13 + $0x2f4] ss:$8 sps:$4 sm:$0xff]   ;;  %v6814_v59 = vld [vmem:[%s9574_s13 + $0x350] ss:$8 sps:$4 sm:$0xff]  }
 0x79b   :  { %3620 = vmatpush1.bf16.msra.mxu0 %v5986_v36  ;;  %v6810_v54 = vld [vmem:[%s9574_s13 + $0x334] ss:$8 sps:$4 sm:$0xff]  }
 0x79c   :  { %3621 = vmatprep.subr.bf16.mxu0 %v6003_v47 }
 0x79d   :  { %5331 = vmatpush1.bf16.msra.mxu1 %v6760_v38 }
 0x79e   :  { %5332 = vmatprep.subr.bf16.mxu1 %v6765_v21 }
 0x79f   :  { %3622 = vmatpush1.bf16.msra.mxu0 %v6002_v22  ;;  %v6801_v22 = vld [vmem:[%s9574_s13 + $0x304] ss:$8 sps:$4 sm:$0xff]  }
 0x7a0   :  { %3623 = vmatprep.subr.bf16.mxu0 %v6019_v23 }
 0x7a1   :  { %5333 = vmatpush1.bf16.msra.mxu1 %v6763_v24 }
 0x7a2   :  { %5334 = vmatprep.subr.bf16.mxu1 %v6768_v40  ;;  %v6799_v40 = vld [vmem:[%s9574_s13 + $0x300] ss:$8 sps:$4 sm:$0xff]  }
 0x7a3   :  { %3624 = vmatpush1.bf16.msra.mxu0 %v6018_v42  ;;  %v6804_v42 = vld [vmem:[%s9574_s13 + $0x314] ss:$8 sps:$4 sm:$0xff]  }
 0x7a4   :  { %3625 = vmatprep.subr.bf16.mxu0 %v6035_v50  ;;  %v6802_v50 = vld [vmem:[%s9574_s13 + $0x310] ss:$8 sps:$4 sm:$0xff]  }
 0x7a5   :  { %5335 = vmatpush1.bf16.msra.mxu1 %v6766_v33  ;;  %v6807_v33 = vld [vmem:[%s9574_s13 + $0x324] ss:$8 sps:$4 sm:$0xff]  }
 0x7a6   :  { %5336 = vmatprep.subr.bf16.mxu1 %v6771_v15  ;;  %v6808_v15 = vld [vmem:[%s9574_s13 + $0x330] ss:$8 sps:$4 sm:$0xff]  }
 0x7a7   :  { %3626 = vmatpush1.bf16.msra.mxu0 %v6034_v57  ;;  %v6813_v57 = vld [vmem:[%s9574_s13 + $0x344] ss:$8 sps:$4 sm:$0xff]  }
 0x7a8   :  { %3627 = vmatprep.subr.bf16.mxu0 %v6051_v9  ;;  %v6811_v9 = vld [vmem:[%s9574_s13 + $0x340] ss:$8 sps:$4 sm:$0xff]  }
 0x7a9   :  { %5337 = vmatpush1.bf16.msra.mxu1 %v6769_v11  ;;  %v6816_v11 = vld [vmem:[%s9574_s13 + $0x354] ss:$8 sps:$4 sm:$0xff]  }
 0x7aa   :  { %5338 = vmatprep.subr.bf16.mxu1 %v6774_v61  ;;  %v6817_v61 = vld [vmem:[%s9574_s13 + $0x360] ss:$8 sps:$4 sm:$0xff]  }
 0x7ab   :  { %3628 = vmatpush1.bf16.msra.mxu0 %v6050_v62  ;;  %v6822_v62 = vld [vmem:[%s9574_s13 + $0x374] ss:$8 sps:$4 sm:$0xff]  }
 0x7ac   :  { %3629 = vmatprep.subr.bf16.mxu0 %v6067_v39  ;;  %v6820_v39 = vld [vmem:[%s9574_s13 + $0x370] ss:$8 sps:$4 sm:$0xff]  }
 0x7ad   :  { %5339 = vmatpush1.bf16.msra.mxu1 %v6772_v41  ;;  %v6825_v41 = vld [vmem:[%s9574_s13 + $0x384] ss:$8 sps:$4 sm:$0xff]  }
 0x7ae   :  { %5340 = vmatprep.subr.bf16.mxu1 %v6777_v43  ;;  %v6823_v43 = vld [vmem:[%s9574_s13 + $0x380] ss:$8 sps:$4 sm:$0xff]  }
 0x7af   :  { %3630 = vmatpush1.bf16.msra.mxu0 %v6066_v45  ;;  %v6828_v45 = vld [vmem:[%s9574_s13 + $0x394] ss:$8 sps:$4 sm:$0xff]  }
 0x7b1   :  { %5341 = vmatpush1.bf16.msra.mxu1 %v6775_v2  ;;  %v6826_v2 = vld [vmem:[%s9574_s13 + $0x390] ss:$8 sps:$4 sm:$0xff]  }
 0x7b2   :  { %3632 = vmatmul.mubr.bf16.vlgmr.msra.gmra.mrb[52].mxu0 %v8101_v14  ;;  %5342 = vmatprep.subr.bf16.mxu1 %v6780_v25  ;;  %v6784_v14 = vld [vmem:[%s9574_s13 + $0x2b0] ss:$8 sps:$4 sm:$0xff]   ;;  %v6831_v25 = vld [vmem:[%s9574_s13 + $0x3a4] ss:$8 sps:$4 sm:$0xff]  }
 0x7b5   :  { %5343 = vmatpush1.bf16.msra.mxu1 %v6778_v6  ;;  %v6829_v6 = vld [vmem:[%s9574_s13 + $0x3a0] ss:$8 sps:$4 sm:$0xff]  }
 0x7b6   :  { %5344 = vmatprep.subr.bf16.mxu1 %v6783_v8  ;;  %v6834_v8 = vld [vmem:[%s9574_s13 + $0x3b4] ss:$8 sps:$4 sm:$0xff]  }
 0x7b9   :  { %5345 = vmatpush1.bf16.msra.mxu1 %v6781_v26  ;;  %v6832_v26 = vld [vmem:[%s9574_s13 + $0x3b0] ss:$8 sps:$4 sm:$0xff]  }
 0x7ba   :  { %5346 = vmatprep.subr.bf16.mxu1 %v6786_v48  ;;  %v6837_v48 = vld [vmem:[%s9574_s13 + $0x3c4] ss:$8 sps:$4 sm:$0xff]  }
 0x7bd   :  { %5347 = vmatpush1.bf16.msra.mxu1 %v6784_v14  ;;  %v6835_v14 = vld [vmem:[%s9574_s13 + $0x3c0] ss:$8 sps:$4 sm:$0xff]  }
 0x7be   :  { %5348 = vmatprep.subr.bf16.mxu1 %v6789_v49  ;;  %v6840_v49 = vld [vmem:[%s9574_s13 + $0x3d4] ss:$8 sps:$4 sm:$0xff]  }
 0x7c1   :  { %5349 = vmatpush1.bf16.msra.mxu1 %v6787_v13  ;;  %v1964_v13 = vsub.s32 6, %v7587_v55 }
 0x7c2   :  { %5350 = vmatprep.subr.bf16.mxu1 %v6792_v16  ;;  %v1968_v16 = vsub.s32 7, %v7587_v55 }
 0x7c5   :  { %v3418_v28 = vpop.f32.mrb[40].mxu0  ;;  %5351 = vmatpush1.bf16.msra.mxu1 %v6790_v17  ;;  %v6838_v17 = vld [vmem:[%s9574_s13 + $0x3d0] ss:$8 sps:$4 sm:$0xff]  }
 0x7c6   :  { %v3419_v32 = vadd.f32 %v3418_v28, %v1957_v19  ;;  %v3420_v35 = vpop.f32.mrb[41].mxu0  ;;  %5352 = vmatprep.subr.bf16.mxu1 %v6795_v20  ;;  %v6843_v20 = vld [vmem:[%s9574_s13 + $0x3e4] ss:$8 sps:$4 sm:$0xff]  }
 0x7c7   :  { %v3421_v46 = vadd.f32 %v3420_v35, %v1961_v27  ;;  %v3422_v36 = vpop.f32.mrb[42].mxu0 }
 0x7c8   :  { %v3423_v47 = vadd.f32 %v3422_v36, %v1957_v19  ;;  %v3424_v38 = vpop.f32.mrb[43].mxu0  ;;  %v3646_v53 = vmax.f32 %v3419_v32, 0.0  ;;  %v1965_v19 = vrot.slane %v8618_v44, %v1964_v13 }
 0x7c9   :  { %v3425_v52 = vadd.f32 %v3424_v38, %v1961_v27  ;;  %5353 = vmatpush1.bf16.msra.mxu1 %v6793_v31  ;;  %v3647_v23 = vmax.f32 %v3421_v46, 0.0  ;;  %v1969_v27 = vrot.slane %v8618_v44, %v1968_v16  ;;  %v6841_v31 = vld [vmem:[%s9574_s13 + $0x3e0] ss:$8 sps:$4 sm:$0xff]   ;;  %v6844_v44 = vld [vmem:[%s9574_s13 + $0x3f0] ss:$8 sps:$4 sm:$0xff]  }
 0x7ca   :  { %v3662_v21 = vmax.f32 %v3423_v47, 0.0  ;;  %5354 = vmatprep.subr.bf16.mxu1 %v6798_v1  ;;  %v6846_v1 = vld [vmem:[%s9574_s13 + $0x3f4] ss:$8 sps:$4 sm:$0xff]  }
 0x7cb   :  { %v3663_v24 = vmax.f32 %v3425_v52, 0.0 }
 0x7cc   :  { %v3678_v29 = vpack.c.bf16 %v3662_v21, %v3646_v53  ;;  %v6849_v21 = vld [vmem:[%s9574_s13 + $0x404] ss:$8 sps:$4 sm:$0xff]  }
 0x7cd   :  { %v3679_v30 = vpack.c.bf16 %v3663_v24, %v3647_v23  ;;  %5355 = vmatpush1.bf16.msra.mxu1 %v6796_v4 }
 0x7ce   :  { %5367 = vmatprep.subr.bf16.mxu1 %v6801_v22 }
 0x7cf   :  { %5356 = vmatprep.mubr.bf16.mxu1 %v3679_v30  ;;  %v6847_v30 = vld [vmem:[%s9574_s13 + $0x400] ss:$8 sps:$4 sm:$0xff]  }
 0x7d0   :  { %5357 = vmatmul.mubr.bf16.vlgmr.msra.gmra.mrb[24].mxu1 %v3678_v29 }
 0x7d1   :  { %5368 = vmatpush1.bf16.msra.mxu1 %v6799_v40  ;;  %v6852_v40 = vld [vmem:[%s9574_s13 + $0x414] ss:$8 sps:$4 sm:$0xff]  }
 0x7d2   :  { %5369 = vmatprep.subr.bf16.mxu1 %v6804_v42  ;;  %v6850_v42 = vld [vmem:[%s9574_s13 + $0x410] ss:$8 sps:$4 sm:$0xff]  }
 0x7d5   :  { %5370 = vmatpush1.bf16.msra.mxu1 %v6802_v50  ;;  %v6855_v50 = vld [vmem:[%s9574_s13 + $0x424] ss:$8 sps:$4 sm:$0xff]  }
 0x7d6   :  { %5371 = vmatprep.subr.bf16.mxu1 %v6807_v33  ;;  %v6853_v33 = vld [vmem:[%s9574_s13 + $0x420] ss:$8 sps:$4 sm:$0xff]  }
 0x7d9   :  { %5372 = vmatpush1.bf16.msra.mxu1 %v6805_v7  ;;  %v6858_v7 = vld [vmem:[%s9574_s13 + $0x434] ss:$8 sps:$4 sm:$0xff]  }
 0x7da   :  { %5373 = vmatprep.subr.bf16.mxu1 %v6810_v54  ;;  %v6861_v54 = vld [vmem:[%s9574_s13 + $0x444] ss:$8 sps:$4 sm:$0xff]  }
 0x7dd   :  { %5374 = vmatpush1.bf16.msra.mxu1 %v6808_v15  ;;  %v6859_v15 = vld [vmem:[%s9574_s13 + $0x440] ss:$8 sps:$4 sm:$0xff]  }
 0x7de   :  { %5375 = vmatprep.subr.bf16.mxu1 %v6813_v57  ;;  %v6864_v57 = vld [vmem:[%s9574_s13 + $0x454] ss:$8 sps:$4 sm:$0xff]  }
 0x7e1   :  { %5376 = vmatpush1.bf16.msra.mxu1 %v6811_v9  ;;  %v6862_v9 = vld [vmem:[%s9574_s13 + $0x450] ss:$8 sps:$4 sm:$0xff]  }
 0x7e2   :  { %5377 = vmatprep.subr.bf16.mxu1 %v6816_v11  ;;  %v6867_v11 = vld [vmem:[%s9574_s13 + $0x464] ss:$8 sps:$4 sm:$0xff]  }
 0x7e5   :  { %5378 = vmatpush1.bf16.msra.mxu1 %v6814_v59  ;;  %v6865_v59 = vld [vmem:[%s9574_s13 + $0x460] ss:$8 sps:$4 sm:$0xff]  }
 0x7e6   :  { %5379 = vmatprep.subr.bf16.mxu1 %v6819_v60  ;;  %v6870_v60 = vld [vmem:[%s9574_s13 + $0x474] ss:$8 sps:$4 sm:$0xff]  }
 0x7e9   :  { %5380 = vmatpush1.bf16.msra.mxu1 %v6817_v61  ;;  %v6868_v61 = vld [vmem:[%s9574_s13 + $0x470] ss:$8 sps:$4 sm:$0xff]  }
 0x7ea   :  { %5381 = vmatprep.subr.bf16.mxu1 %v6822_v62  ;;  %v6873_v62 = vld [vmem:[%s9574_s13 + $0x484] ss:$8 sps:$4 sm:$0xff]  }
 0x7ed   :  { %5382 = vmatpush1.bf16.msra.mxu1 %v6820_v39  ;;  %v6871_v39 = vld [vmem:[%s9574_s13 + $0x480] ss:$8 sps:$4 sm:$0xff]  }
 0x7ee   :  { %5383 = vmatprep.subr.bf16.mxu1 %v6825_v41  ;;  %v6876_v41 = vld [vmem:[%s9574_s13 + $0x494] ss:$8 sps:$4 sm:$0xff]  }
 0x7f1   :  { %5384 = vmatpush1.bf16.msra.mxu1 %v6823_v43  ;;  %v6874_v43 = vld [vmem:[%s9574_s13 + $0x490] ss:$8 sps:$4 sm:$0xff]  }
 0x7f2   :  { %5385 = vmatprep.subr.bf16.mxu1 %v6828_v45  ;;  %v6879_v45 = vld [vmem:[%s9574_s13 + $0x4a4] ss:$8 sps:$4 sm:$0xff]  }
 0x7f5   :  { %5386 = vmatpush1.bf16.msra.mxu1 %v6826_v2  ;;  %v6877_v2 = vld [vmem:[%s9574_s13 + $0x4a0] ss:$8 sps:$4 sm:$0xff]  }
 0x7f6   :  { %5387 = vmatprep.subr.bf16.mxu1 %v6831_v25  ;;  %v6882_v25 = vld [vmem:[%s9574_s13 + $0x4b4] ss:$8 sps:$4 sm:$0xff]  }
 0x7f9   :  { %5388 = vmatpush1.bf16.msra.mxu1 %v6829_v6  ;;  %v6880_v6 = vld [vmem:[%s9574_s13 + $0x4b0] ss:$8 sps:$4 sm:$0xff]  }
 0x7fa   :  { %5389 = vmatprep.subr.bf16.mxu1 %v6834_v8  ;;  %v6885_v8 = vld [vmem:[%s9574_s13 + $0x4c4] ss:$8 sps:$4 sm:$0xff]  }
 0x7fd   :  { %5390 = vmatpush1.bf16.msra.mxu1 %v6832_v26  ;;  %v6883_v26 = vld [vmem:[%s9574_s13 + $0x4c0] ss:$8 sps:$4 sm:$0xff]  }
 0x7fe   :  { %5391 = vmatprep.subr.bf16.mxu1 %v6837_v48  ;;  %v6888_v48 = vld [vmem:[%s9574_s13 + $0x4d4] ss:$8 sps:$4 sm:$0xff]  }
 0x801   :  { %5392 = vmatpush1.bf16.msra.mxu1 %v6835_v14  ;;  %v6886_v14 = vld [vmem:[%s9574_s13 + $0x4d0] ss:$8 sps:$4 sm:$0xff]  }
 0x802   :  { %5393 = vmatprep.subr.bf16.mxu1 %v6840_v49  ;;  %v9203_v49 = vld [vmem:[%s9575_s12 + $0x8] sm:$0xff] }
 0x805   :  { %v3461_v28 = vpop.f32.mrb[44].mxu0  ;;  %5394 = vmatpush1.bf16.msra.mxu1 %v6838_v17  ;;  %v1981_v17 = vrot.slane %v9203_v49, %v1948_v0  ;;  %v6894_v0 = vld [vmem:[%s9574_s13 + $0x4f4] ss:$8 sps:$4 sm:$0xff]  }
 0x806   :  { %v3462_v32 = vadd.f32 %v3461_v28, %v1965_v19  ;;  %v3463_v35 = vpop.f32.mrb[45].mxu0  ;;  %5395 = vmatprep.subr.bf16.mxu1 %v6843_v20  ;;  %v1985_v20 = vrot.slane %v9203_v49, %v1952_v3  ;;  %v6889_v28 = vld [vmem:[%s9574_s13 + $0x4e0] ss:$8 sps:$4 sm:$0xff]   ;;  %v6892_v3 = vld [vmem:[%s9574_s13 + $0x4f0] ss:$8 sps:$4 sm:$0xff]  }
 0x807   :  { %v3464_v46 = vadd.f32 %v3463_v35, %v1969_v27  ;;  %v3465_v36 = vpop.f32.mrb[46].mxu0 }
 0x808   :  { %v3466_v47 = vadd.f32 %v3465_v36, %v1965_v19  ;;  %v3467_v38 = vpop.f32.mrb[47].mxu0  ;;  %v3648_v4 = vmax.f32 %v3462_v32, 0.0  ;;  %v6891_v19 = vld [vmem:[%s9574_s13 + $0x4e4] ss:$8 sps:$4 sm:$0xff]  }
 0x809   :  { %v3468_v52 = vadd.f32 %v3467_v38, %v1969_v27  ;;  %5396 = vmatpush1.bf16.msra.mxu1 %v6841_v31  ;;  %v3649_v22 = vmax.f32 %v3464_v46, 0.0 }
 0x80a   :  { %v3664_v53 = vmax.f32 %v3466_v47, 0.0  ;;  %5397 = vmatprep.subr.bf16.mxu1 %v6846_v1 }
 0x80b   :  { %v3665_v23 = vmax.f32 %v3468_v52, 0.0 }
 0x80c   :  { %v3680_v24 = vpack.c.bf16 %v3664_v53, %v3648_v4 }
 0x80d   :  { %v3681_v29 = vpack.c.bf16 %v3665_v23, %v3649_v22  ;;  %5398 = vmatpush1.bf16.msra.mxu1 %v6844_v44  ;;  %v6897_v44 = vld [vmem:[%s9574_s13 + $0x504] ss:$8 sps:$4 sm:$0xff]   ;;  %v6895_v23 = vld [vmem:[%s9574_s13 + $0x500] ss:$8 sps:$4 sm:$0xff]  }
 0x80e   :  { %5410 = vmatprep.subr.bf16.mxu1 %v6849_v21 }
 0x80f   :  { %5399 = vmatprep.mubr.bf16.mxu1 %v3681_v29  ;;  %v6898_v29 = vld [vmem:[%s9574_s13 + $0x510] ss:$8 sps:$4 sm:$0xff]  }
 0x810   :  { %5400 = vmatmul.mubr.bf16.vlgmr.msra.gmra.mrb[24].mxu1 %v3680_v24  ;;  %v6900_v24 = vld [vmem:[%s9574_s13 + $0x514] ss:$8 sps:$4 sm:$0xff]  }
 0x811   :  { %5411 = vmatpush1.bf16.msra.mxu1 %v6847_v30  ;;  %5442 = vmatprep.mubr.bf16.mxu1 %v8653_v18  ;;  %v6856_v18 = vld [vmem:[%s9574_s13 + $0x430] ss:$8 sps:$4 sm:$0xff]   ;;  %v6903_v30 = vld [vmem:[%s9574_s13 + $0x524] ss:$8 sps:$4 sm:$0xff]  }
 0x812   :  { %5412 = vmatprep.subr.bf16.mxu1 %v6852_v40  ;;  %v6901_v40 = vld [vmem:[%s9574_s13 + $0x520] ss:$8 sps:$4 sm:$0xff]  }
 0x815   :  { %5413 = vmatpush1.bf16.msra.mxu1 %v6850_v42  ;;  %v6904_v42 = vld [vmem:[%s9574_s13 + $0x530] ss:$8 sps:$4 sm:$0xff]  }
 0x816   :  { %5414 = vmatprep.subr.bf16.mxu1 %v6855_v50  ;;  %v6909_v50 = vld [vmem:[%s9574_s13 + $0x544] ss:$8 sps:$4 sm:$0xff]  }
 0x819   :  { %5415 = vmatpush1.bf16.msra.mxu1 %v6853_v33  ;;  %v6907_v33 = vld [vmem:[%s9574_s13 + $0x540] ss:$8 sps:$4 sm:$0xff]  }
 0x81a   :  { %5416 = vmatprep.subr.bf16.mxu1 %v6858_v7  ;;  %v6912_v7 = vld [vmem:[%s9574_s13 + $0x554] ss:$8 sps:$4 sm:$0xff]  }
 0x81d   :  { %5417 = vmatpush1.bf16.msra.mxu1 %v6856_v18  ;;  %v6910_v18 = vld [vmem:[%s9574_s13 + $0x550] ss:$8 sps:$4 sm:$0xff]  }
 0x81e   :  { %5418 = vmatprep.subr.bf16.mxu1 %v6861_v54  ;;  %v6915_v54 = vld [vmem:[%s9574_s13 + $0x564] ss:$8 sps:$4 sm:$0xff]  }
 0x821   :  { %5419 = vmatpush1.bf16.msra.mxu1 %v6859_v15  ;;  %v6913_v15 = vld [vmem:[%s9574_s13 + $0x560] ss:$8 sps:$4 sm:$0xff]  }
 0x822   :  { %5420 = vmatprep.subr.bf16.mxu1 %v6864_v57  ;;  %v6918_v57 = vld [vmem:[%s9574_s13 + $0x574] ss:$8 sps:$4 sm:$0xff]  }
 0x825   :  { %5421 = vmatpush1.bf16.msra.mxu1 %v6862_v9  ;;  %v6916_v9 = vld [vmem:[%s9574_s13 + $0x570] ss:$8 sps:$4 sm:$0xff]  }
 0x826   :  { %5422 = vmatprep.subr.bf16.mxu1 %v6867_v11  ;;  %v6921_v11 = vld [vmem:[%s9574_s13 + $0x584] ss:$8 sps:$4 sm:$0xff]  }
 0x829   :  { %5423 = vmatpush1.bf16.msra.mxu1 %v6865_v59  ;;  %v6919_v59 = vld [vmem:[%s9574_s13 + $0x580] ss:$8 sps:$4 sm:$0xff]  }
 0x82a   :  { %5424 = vmatprep.subr.bf16.mxu1 %v6870_v60  ;;  %v6924_v60 = vld [vmem:[%s9574_s13 + $0x594] ss:$8 sps:$4 sm:$0xff]  }
 0x82d   :  { %5425 = vmatpush1.bf16.msra.mxu1 %v6868_v61  ;;  %v6922_v61 = vld [vmem:[%s9574_s13 + $0x590] ss:$8 sps:$4 sm:$0xff]  }
 0x82e   :  { %5426 = vmatprep.subr.bf16.mxu1 %v6873_v62  ;;  %v6927_v62 = vld [vmem:[%s9574_s13 + $0x5a4] ss:$8 sps:$4 sm:$0xff]  }
 0x831   :  { %5427 = vmatpush1.bf16.msra.mxu1 %v6871_v39  ;;  %v6925_v39 = vld [vmem:[%s9574_s13 + $0x5a0] ss:$8 sps:$4 sm:$0xff]  }
 0x832   :  { %5428 = vmatprep.subr.bf16.mxu1 %v6876_v41  ;;  %v6930_v41 = vld [vmem:[%s9574_s13 + $0x5b4] ss:$8 sps:$4 sm:$0xff]  }
 0x835   :  { %5429 = vmatpush1.bf16.msra.mxu1 %v6874_v43  ;;  %v6928_v43 = vld [vmem:[%s9574_s13 + $0x5b0] ss:$8 sps:$4 sm:$0xff]  }
 0x836   :  { %5430 = vmatprep.subr.bf16.mxu1 %v6879_v45  ;;  %v6933_v45 = vld [vmem:[%s9574_s13 + $0x5c4] ss:$8 sps:$4 sm:$0xff]  }
 0x839   :  { %5431 = vmatpush1.bf16.msra.mxu1 %v6877_v2  ;;  %v6931_v2 = vld [vmem:[%s9574_s13 + $0x5c0] ss:$8 sps:$4 sm:$0xff]  }
 0x83a   :  { %5432 = vmatprep.subr.bf16.mxu1 %v6882_v25  ;;  %v6936_v25 = vld [vmem:[%s9574_s13 + $0x5d4] ss:$8 sps:$4 sm:$0xff]  }
 0x83d   :  { %5433 = vmatpush1.bf16.msra.mxu1 %v6880_v6  ;;  %v6934_v6 = vld [vmem:[%s9574_s13 + $0x5d0] ss:$8 sps:$4 sm:$0xff]  }
 0x83e   :  { %5434 = vmatprep.subr.bf16.mxu1 %v6885_v8  ;;  %v1997_v8 = vrot.slane %v9203_v49, %v1964_v13  ;;  %v6942_v13 = vld [vmem:[%s9574_s13 + $0x5f4] ss:$8 sps:$4 sm:$0xff]  }
 0x841   :  { %5435 = vmatpush1.bf16.msra.mxu1 %v6883_v26  ;;  %v6939_v26 = vld [vmem:[%s9574_s13 + $0x5e4] ss:$8 sps:$4 sm:$0xff]  }
 0x842   :  { %5436 = vmatprep.subr.bf16.mxu1 %v6888_v48  ;;  %v2001_v48 = vrot.slane %v9203_v49, %v1968_v16  ;;  %v6940_v16 = vld [vmem:[%s9574_s13 + $0x5f0] ss:$8 sps:$4 sm:$0xff]  }
 0x845   :  { %v3547_v27 = vpop.f32.mrb[48].mxu0  ;;  %5437 = vmatpush1.bf16.msra.mxu1 %v6886_v14 }
 0x846   :  { %v3548_v31 = vadd.f32 %v3547_v27, %v1981_v17  ;;  %v3549_v32 = vpop.f32.mrb[49].mxu0  ;;  %5438 = vmatprep.subr.bf16.mxu1 %v6891_v19 }
 0x847   :  { %v3550_v35 = vadd.f32 %v3549_v32, %v1985_v20  ;;  %v3551_v1 = vpop.f32.mrb[50].mxu0 }
 0x848   :  { %v3552_v46 = vadd.f32 %v3551_v1, %v1981_v17  ;;  %v3553_v36 = vpop.f32.mrb[51].mxu0  ;;  %v3652_v38 = vmax.f32 %v3548_v31, 0.0  ;;  %v6937_v17 = vld [vmem:[%s9574_s13 + $0x5e0] ss:$8 sps:$4 sm:$0xff]  }
 0x849   :  { %v3554_v47 = vadd.f32 %v3553_v36, %v1985_v20  ;;  %5439 = vmatpush1.bf16.msra.mxu1 %v6889_v28  ;;  %v3653_v4 = vmax.f32 %v3550_v35, 0.0  ;;  %v6945_v35 = vld [vmem:[%s9574_s13 + $0x604] ss:$8 sps:$4 sm:$0xff]  }
 0x84a   :  { %v3668_v52 = vmax.f32 %v3552_v46, 0.0  ;;  %5440 = vmatprep.subr.bf16.mxu1 %v6894_v0 }
 0x84b   :  { %v3669_v53 = vmax.f32 %v3554_v47, 0.0 }
 0x84c   :  { %v9226_v21 = vpack.c.bf16 %v3668_v52, %v3652_v38  ;;  %v6948_v38 = vld [vmem:[%s9574_s13 + $0x614] ss:$8 sps:$4 sm:$0xff]   ;;  %v6946_v52 = vld [vmem:[%s9574_s13 + $0x610] ss:$8 sps:$4 sm:$0xff]  }
 0x84d   :  { %v3685_v22 = vpack.c.bf16 %v3669_v53, %v3653_v4  ;;  %5441 = vmatpush1.bf16.msra.mxu1 %v6892_v3  ;;  %v6943_v3 = vld [vmem:[%s9574_s13 + $0x600] ss:$8 sps:$4 sm:$0xff]   ;;  %v6954_v53 = vld [vmem:[%s9574_s13 + $0x634] ss:$8 sps:$4 sm:$0xff]  }
 0x84e   :  { %5453 = vmatprep.subr.bf16.mxu1 %v6897_v44  ;;  %v6951_v44 = vld [vmem:[%s9574_s13 + $0x624] ss:$8 sps:$4 sm:$0xff]   ;;  %v6949_v4 = vld [vmem:[%s9574_s13 + $0x620] ss:$8 sps:$4 sm:$0xff]  }
 0x850   :  { %5443 = vmatmul.mubr.bf16.vlgmr.msra.gmra.mrb[24].mxu1 %v8651_v51  ;;  %v6906_v51 = vld [vmem:[%s9574_s13 + $0x534] ss:$8 sps:$4 sm:$0xff]  }
 0x851   :  { %5454 = vmatpush1.bf16.msra.mxu1 %v6895_v23  ;;  %5485 = vmatprep.mubr.bf16.mxu1 %v3685_v22  ;;  %v6955_v22 = vld [vmem:[%s9574_s13 + $0x640] ss:$8 sps:$4 sm:$0xff]   ;;  %v6960_v23 = vld [vmem:[%s9574_s13 + $0x654] ss:$8 sps:$4 sm:$0xff]  }
 0x852   :  { %5455 = vmatprep.subr.bf16.mxu1 %v6900_v24  ;;  %v6958_v24 = vld [vmem:[%s9574_s13 + $0x650] ss:$8 sps:$4 sm:$0xff]  }
 0x855   :  { %5456 = vmatpush1.bf16.msra.mxu1 %v6898_v29  ;;  %v6963_v29 = vld [vmem:[%s9574_s13 + $0x664] ss:$8 sps:$4 sm:$0xff]  }
 0x856   :  { %5457 = vmatprep.subr.bf16.mxu1 %v6903_v30  ;;  %v6961_v30 = vld [vmem:[%s9574_s13 + $0x660] ss:$8 sps:$4 sm:$0xff]  }
 0x859   :  { %5458 = vmatpush1.bf16.msra.mxu1 %v6901_v40  ;;  %v6966_v40 = vld [vmem:[%s9574_s13 + $0x674] ss:$8 sps:$4 sm:$0xff]  }
 0x85a   :  { %5459 = vmatprep.subr.bf16.mxu1 %v6906_v51  ;;  %v6964_v51 = vld [vmem:[%s9574_s13 + $0x670] ss:$8 sps:$4 sm:$0xff]  }
 0x85d   :  { %5460 = vmatpush1.bf16.msra.mxu1 %v6904_v42  ;;  %v6969_v42 = vld [vmem:[%s9574_s13 + $0x684] ss:$8 sps:$4 sm:$0xff]  }
 0x85e   :  { %5461 = vmatprep.subr.bf16.mxu1 %v6909_v50  ;;  %v6967_v50 = vld [vmem:[%s9574_s13 + $0x680] ss:$8 sps:$4 sm:$0xff]  }
 0x861   :  { %5462 = vmatpush1.bf16.msra.mxu1 %v6907_v33  ;;  %v6972_v33 = vld [vmem:[%s9574_s13 + $0x694] ss:$8 sps:$4 sm:$0xff]  }
 0x862   :  { %5463 = vmatprep.subr.bf16.mxu1 %v6912_v7  ;;  %v6970_v7 = vld [vmem:[%s9574_s13 + $0x690] ss:$8 sps:$4 sm:$0xff]  }
 0x865   :  { %5464 = vmatpush1.bf16.msra.mxu1 %v6910_v18  ;;  %v6975_v18 = vld [vmem:[%s9574_s13 + $0x6a4] ss:$8 sps:$4 sm:$0xff]  }
 0x866   :  { %5465 = vmatprep.subr.bf16.mxu1 %v6915_v54  ;;  %v6973_v54 = vld [vmem:[%s9574_s13 + $0x6a0] ss:$8 sps:$4 sm:$0xff]  }
 0x869   :  { %5466 = vmatpush1.bf16.msra.mxu1 %v6913_v15  ;;  %v6978_v15 = vld [vmem:[%s9574_s13 + $0x6b4] ss:$8 sps:$4 sm:$0xff]  }
 0x86a   :  { %5467 = vmatprep.subr.bf16.mxu1 %v6918_v57  ;;  %v6976_v57 = vld [vmem:[%s9574_s13 + $0x6b0] ss:$8 sps:$4 sm:$0xff]  }
 0x86d   :  { %5468 = vmatpush1.bf16.msra.mxu1 %v6916_v9  ;;  %v6981_v9 = vld [vmem:[%s9574_s13 + $0x6c4] ss:$8 sps:$4 sm:$0xff]  }
 0x86e   :  { %5469 = vmatprep.subr.bf16.mxu1 %v6921_v11  ;;  %v6979_v11 = vld [vmem:[%s9574_s13 + $0x6c0] ss:$8 sps:$4 sm:$0xff]  }
 0x871   :  { %5470 = vmatpush1.bf16.msra.mxu1 %v6919_v59  ;;  %v6984_v59 = vld [vmem:[%s9574_s13 + $0x6d4] ss:$8 sps:$4 sm:$0xff]  }
 0x872   :  { %5471 = vmatprep.subr.bf16.mxu1 %v6924_v60  ;;  %v6982_v60 = vld [vmem:[%s9574_s13 + $0x6d0] ss:$8 sps:$4 sm:$0xff]  }
 0x875   :  { %5472 = vmatpush1.bf16.msra.mxu1 %v6922_v61  ;;  %v6987_v61 = vld [vmem:[%s9574_s13 + $0x6e4] ss:$8 sps:$4 sm:$0xff]  }
 0x876   :  { %5473 = vmatprep.subr.bf16.mxu1 %v6927_v62  ;;  %v6985_v62 = vld [vmem:[%s9574_s13 + $0x6e0] ss:$8 sps:$4 sm:$0xff]  }
 0x879   :  { %5474 = vmatpush1.bf16.msra.mxu1 %v6925_v39  ;;  %v6990_v39 = vld [vmem:[%s9574_s13 + $0x6f4] ss:$8 sps:$4 sm:$0xff]  }
 0x87a   :  { %5475 = vmatprep.subr.bf16.mxu1 %v6930_v41  ;;  %v6988_v41 = vld [vmem:[%s9574_s13 + $0x6f0] ss:$8 sps:$4 sm:$0xff]  }
 0x87d   :  { %5476 = vmatpush1.bf16.msra.mxu1 %v6928_v43  ;;  %v6993_v43 = vld [vmem:[%s9574_s13 + $0x704] ss:$8 sps:$4 sm:$0xff]  }
 0x87e   :  { %5477 = vmatprep.subr.bf16.mxu1 %v6933_v45  ;;  %v6991_v45 = vld [vmem:[%s9574_s13 + $0x700] ss:$8 sps:$4 sm:$0xff]  }
 0x881   :  { %5478 = vmatpush1.bf16.msra.mxu1 %v6931_v2  ;;  %v6996_v2 = vld [vmem:[%s9574_s13 + $0x714] ss:$8 sps:$4 sm:$0xff]  }
 0x882   :  { %5479 = vmatprep.subr.bf16.mxu1 %v6936_v25  ;;  %v6994_v25 = vld [vmem:[%s9574_s13 + $0x710] ss:$8 sps:$4 sm:$0xff]  }
 0x885   :  { %v3633_v14 = vpop.f32.mrb[52].mxu0  ;;  %5480 = vmatpush1.bf16.msra.mxu1 %v6934_v6  ;;  %v6999_v6 = vld [vmem:[%s9574_s13 + $0x724] ss:$8 sps:$4 sm:$0xff]  }
 0x886   :  { %v3634_v19 = vadd.f32 %v3633_v14, %v1997_v8  ;;  %v3635_v20 = vpop.f32.mrb[53].mxu0  ;;  %5481 = vmatprep.subr.bf16.mxu1 %v6939_v26  ;;  %v7000_v26 = vld [vmem:[%s9574_s13 + $0x730] ss:$8 sps:$4 sm:$0xff]   ;;  %v7003_v14 = vld [vmem:[%s9574_s13 + $0x740] ss:$8 sps:$4 sm:$0xff]  }
 0x887   :  { %v3636_v27 = vadd.f32 %v3635_v20, %v2001_v48  ;;  %v3637_v28 = vpop.f32.mrb[54].mxu0  ;;  %v7011_v20 = vld [vmem:[%s9574_s13 + $0x764] ss:$8 sps:$4 sm:$0xff]  }
 0x888   :  { %v3638_v31 = vadd.f32 %v3637_v28, %v1997_v8  ;;  %v3639_v32 = vpop.f32.mrb[55].mxu0  ;;  %v3656_v49 = vmax.f32 %v3634_v19, 0.0  ;;  %v6997_v8 = vld [vmem:[%s9574_s13 + $0x720] ss:$8 sps:$4 sm:$0xff]   ;;  %v7006_v19 = vld [vmem:[%s9574_s13 + $0x750] ss:$8 sps:$4 sm:$0xff]  }
 0x889   :  { %v3640_v55 = vadd.f32 %v3639_v32, %v2001_v48  ;;  %5482 = vmatpush1.bf16.msra.mxu1 %v6937_v17  ;;  %v3657_v1 = vmax.f32 %v3636_v27, 0.0  ;;  %v7005_v48 = vld [vmem:[%s9574_s13 + $0x744] ss:$8 sps:$4 sm:$0xff]   ;;  %v7008_v17 = vld [vmem:[%s9574_s13 + $0x754] ss:$8 sps:$4 sm:$0xff]  }
 0x88a   :  { %v3672_v0 = vmax.f32 %v3638_v31, 0.0  ;;  %5483 = vmatprep.subr.bf16.mxu1 %v6942_v13  ;;  %v7009_v13 = vld [vmem:[%s9574_s13 + $0x760] ss:$8 sps:$4 sm:$0xff]   ;;  %v7014_v27 = vld [vmem:[%s9574_s13 + $0x774] ss:$8 sps:$4 sm:$0xff]  }
 0x88b   :  { %v3673_v46 = vmax.f32 %v3640_v55, 0.0  ;;  %v7012_v28 = vld [vmem:[%s9574_s13 + $0x770] ss:$8 sps:$4 sm:$0xff]   ;;  %v7017_v31 = vld [vmem:[%s9574_s13 + $0x784] ss:$8 sps:$4 sm:$0xff]  }
 0x88c   :  { %v9331_v36 = vpack.c.bf16 %v3672_v0, %v3656_v49  ;;  %v7015_v32 = vld [vmem:[%s9574_s13 + $0x780] ss:$8 sps:$4 sm:$0xff]   ;;  %v7020_v55 = vld [vmem:[%s9574_s13 + $0x794] ss:$8 sps:$4 sm:$0xff]   ;;  %v7023_v49 = vld [vmem:[%s9574_s13 + $0x7a4] ss:$8 sps:$4 sm:$0xff]  }
 0x88d   :  { %v9333_v47 = vpack.c.bf16 %v3673_v46, %v3657_v1  ;;  %5484 = vmatpush1.bf16.msra.mxu1 %v6940_v16  ;;  %v7018_v16 = vld [vmem:[%s9574_s13 + $0x790] ss:$8 sps:$4 sm:$0xff]   ;;  %v7021_v0 = vld [vmem:[%s9574_s13 + $0x7a0] ss:$8 sps:$4 sm:$0xff]   ;;  %v7029_v46 = vld [vmem:[%s9574_s13 + $0x7c4] ss:$8 sps:$4 sm:$0xff]  }
 0x88e   :  { %5496 = vmatprep.subr.bf16.mxu1 %v6945_v35  ;;  %v7026_v35 = vld [vmem:[%s9574_s13 + $0x7b4] ss:$8 sps:$4 sm:$0xff]   ;;  %v7024_v1 = vld [vmem:[%s9574_s13 + $0x7b0] ss:$8 sps:$4 sm:$0xff]  }
 0x890   :  { %5486 = vmatmul.mubr.bf16.vlgmr.msra.gmra.mrb[24].mxu1 %v9226_v21  ;;  %v6957_v21 = vld [vmem:[%s9574_s13 + $0x644] ss:$8 sps:$4 sm:$0xff]  }
 0x891   :  { %5497 = vmatpush1.bf16.msra.mxu1 %v6943_v3  ;;  %5528 = vmatprep.mubr.bf16.mxu1 %v8867_v5  ;;  %v6952_v5 = vld [vmem:[%s9574_s13 + $0x630] ss:$8 sps:$4 sm:$0xff]   ;;  %v7032_v3 = vld [vmem:[%s9574_s13 + $0x7d4] ss:$8 sps:$4 sm:$0xff]  }
 0x892   :  { %5498 = vmatprep.subr.bf16.mxu1 %v6948_v38  ;;  %v7030_v38 = vld [vmem:[%s9574_s13 + $0x7d0] ss:$8 sps:$4 sm:$0xff]  }
 0x895   :  { %5499 = vmatpush1.bf16.msra.mxu1 %v6946_v52  ;;  %v7035_v52 = vld [vmem:[%s9574_s13 + $0x7e4] ss:$8 sps:$4 sm:$0xff]  }
 0x896   :  { %5500 = vmatprep.subr.bf16.mxu1 %v6951_v44  ;;  %v7033_v44 = vld [vmem:[%s9574_s13 + $0x7e0] ss:$8 sps:$4 sm:$0xff]  }
 0x899   :  { %5501 = vmatpush1.bf16.msra.mxu1 %v6949_v4  ;;  %v7038_v4 = vld [vmem:[%s9574_s13 + $0x7f4] ss:$8 sps:$4 sm:$0xff]  }
 0x89a   :  { %5502 = vmatprep.subr.bf16.mxu1 %v6954_v53  ;;  %v7036_v53 = vld [vmem:[%s9574_s13 + $0x7f0] ss:$8 sps:$4 sm:$0xff]  }
 0x89d   :  { %5503 = vmatpush1.bf16.msra.mxu1 %v6952_v5  ;;  %v3946_v5 = vld [vmem:[%s9576_s14] sm:$0x3] }
 0x89e   :  { %5504 = vmatprep.subr.bf16.mxu1 %v6957_v21  ;;  %v3951_v21 = vrot.slane %v3946_v5, %v7590_v56 }
 0x8a1   :  { %5505 = vmatpush1.bf16.msra.mxu1 %v6955_v22  ;;  %v3955_v22 = vrot.slane %v3946_v5, %v7596_v58 }
 0x8a2   :  { %5506 = vmatprep.subr.bf16.mxu1 %v6960_v23 }
 0x8a5   :  { %5507 = vmatpush1.bf16.msra.mxu1 %v6958_v24 }
 0x8a6   :  { %5508 = vmatprep.subr.bf16.mxu1 %v6963_v29 }
 0x8a9   :  { %5509 = vmatpush1.bf16.msra.mxu1 %v6961_v30 }
 0x8aa   :  { %5510 = vmatprep.subr.bf16.mxu1 %v6966_v40 }
 0x8ad   :  { %5511 = vmatpush1.bf16.msra.mxu1 %v6964_v51 }
 0x8ae   :  { %5512 = vmatprep.subr.bf16.mxu1 %v6969_v42 }
 0x8b1   :  { %5513 = vmatpush1.bf16.msra.mxu1 %v6967_v50 }
 0x8b2   :  { %5514 = vmatprep.subr.bf16.mxu1 %v6972_v33 }
 0x8b5   :  { %5515 = vmatpush1.bf16.msra.mxu1 %v6970_v7 }
 0x8b6   :  { %5516 = vmatprep.subr.bf16.mxu1 %v6975_v18 }
 0x8b9   :  { %5517 = vmatpush1.bf16.msra.mxu1 %v6973_v54 }
 0x8ba   :  { %5518 = vmatprep.subr.bf16.mxu1 %v6978_v15 }
 0x8bd   :  { %5519 = vmatpush1.bf16.msra.mxu1 %v6976_v57 }
 0x8be   :  { %5520 = vmatprep.subr.bf16.mxu1 %v6981_v9 }
 0x8c1   :  { %5521 = vmatpush1.bf16.msra.mxu1 %v6979_v11 }
 0x8c2   :  { %5522 = vmatprep.subr.bf16.mxu1 %v6984_v59 }
 0x8c5   :  { %5523 = vmatpush1.bf16.msra.mxu1 %v6982_v60 }
 0x8c6   :  { %5524 = vmatprep.subr.bf16.mxu1 %v6987_v61 }
 0x8c9   :  { %5525 = vmatpush1.bf16.msra.mxu1 %v6985_v62 }
 0x8ca   :  { %5526 = vmatprep.subr.bf16.mxu1 %v6990_v39 }
 0x8cd   :  { %5527 = vmatpush1.bf16.msra.mxu1 %v6988_v41 }
 0x8ce   :  { %5539 = vmatprep.subr.bf16.mxu1 %v6993_v43 }
 0x8d0   :  { %5529 = vmatmul.mubr.bf16.vlgmr.msra.gmra.mrb[24].mxu1 %v8865_v63  ;;  %v7002_v63 = vld [vmem:[%s9574_s13 + $0x734] ss:$8 sps:$4 sm:$0xff]  }
 0x8d1   :  { %5540 = vmatpush1.bf16.msra.mxu1 %v6991_v45  ;;  %5571 = vmatprep.mubr.bf16.mxu1 %v9333_v47  ;;  %v7027_v47 = vld [vmem:[%s9574_s13 + $0x7c0] ss:$8 sps:$4 sm:$0xff]  }
 0x8d2   :  { %5541 = vmatprep.subr.bf16.mxu1 %v6996_v2 }
 0x8d5   :  { %5542 = vmatpush1.bf16.msra.mxu1 %v6994_v25 }
 0x8d6   :  { %5543 = vmatprep.subr.bf16.mxu1 %v6999_v6 }
 0x8d9   :  { %5544 = vmatpush1.bf16.msra.mxu1 %v6997_v8 }
 0x8da   :  { %5545 = vmatprep.subr.bf16.mxu1 %v7002_v63 }
 0x8dd   :  { %5546 = vmatpush1.bf16.msra.mxu1 %v7000_v26  ;;  %v5586_v26 = vld [vmem:[%s9577_s15] sm:$0x3] }
 0x8de   :  { %5547 = vmatprep.subr.bf16.mxu1 %v7005_v48  ;;  %v5587_v48 = vld [vmem:[%s9578_s16] sm:$0x3] }
 0x8e1   :  { %5548 = vmatpush1.bf16.msra.mxu1 %v7003_v14  ;;  %v5624_v14 = vrot.slane %v5586_v26, %v7590_v56 }
 0x8e2   :  { %5549 = vmatprep.subr.bf16.mxu1 %v7008_v17  ;;  %v5628_v17 = vrot.slane %v5586_v26, %v7596_v58 }
 0x8e5   :  { %5550 = vmatpush1.bf16.msra.mxu1 %v7006_v19 }
 0x8e6   :  { %5551 = vmatprep.subr.bf16.mxu1 %v7011_v20  ;;  %v5639_v20 = vrot.slane %v5587_v48, %v7590_v56 }
 0x8e9   :  { %5552 = vmatpush1.bf16.msra.mxu1 %v7009_v13  ;;  %v5643_v13 = vrot.slane %v5587_v48, %v7596_v58 }
 0x8ea   :  { %5553 = vmatprep.subr.bf16.mxu1 %v7014_v27 }
 0x8ed   :  { %5554 = vmatpush1.bf16.msra.mxu1 %v7012_v28 }
 0x8ee   :  { %5555 = vmatprep.subr.bf16.mxu1 %v7017_v31 }
 0x8f1   :  { %5556 = vmatpush1.bf16.msra.mxu1 %v7015_v32 }
 0x8f2   :  { %5557 = vmatprep.subr.bf16.mxu1 %v7020_v55 }
 0x8f5   :  { %5558 = vmatpush1.bf16.msra.mxu1 %v7018_v16 }
 0x8f6   :  { %5559 = vmatprep.subr.bf16.mxu1 %v7023_v49 }
 0x8f9   :  { %5560 = vmatpush1.bf16.msra.mxu1 %v7021_v0 }
 0x8fa   :  { %5561 = vmatprep.subr.bf16.mxu1 %v7026_v35 }
 0x8fd   :  { %5562 = vmatpush1.bf16.msra.mxu1 %v7024_v1 }
 0x8fe   :  { %5563 = vmatprep.subr.bf16.mxu1 %v7029_v46 }
 0x901   :  { %5564 = vmatpush1.bf16.msra.mxu1 %v7027_v47 }
 0x902   :  { %5565 = vmatprep.subr.bf16.mxu1 %v7032_v3 }
 0x905   :  { %5566 = vmatpush1.bf16.msra.mxu1 %v7030_v38 }
 0x906   :  { %5567 = vmatprep.subr.bf16.mxu1 %v7035_v52 }
 0x909   :  { %5568 = vmatpush1.bf16.msra.mxu1 %v7033_v44 }
 0x90a   :  { %5569 = vmatprep.subr.bf16.mxu1 %v7038_v4 }
 0x90d   :  { %5570 = vmatpush1.bf16.msra.mxu1 %v7036_v53 }
 0x910   :  { %5572 = vmatmul.mubr.bf16.vlgmr.msra.gmra.mrb[24].mxu1 %v9331_v36 }
 0x9e3   :  { %v5573_v23 = vpop.f32.mrb[24].mxu1 }
 0x9e4   :  { %v6412_v24 = vadd.f32 %v5573_v23, %v3951_v21  ;;  %v5575_v29 = vpop.f32.mrb[25].mxu1 }
 0x9e5   :  { %v6413_v30 = vadd.f32 %v5575_v29, %v3955_v22  ;;  %v5577_v40 = vpop.f32.mrb[26].mxu1 }
 0x9e6   :  { %v5582_v51 = vadd.f32 %v6412_v24, %v8079_v10  ;;  %v6414_v42 = vadd.f32 %v5577_v40, %v3951_v21  ;;  %v5579_v50 = vpop.f32.mrb[27].mxu1 }
 0x9e7   :  { %v5583_v33 = vadd.f32 %v6413_v30, %v8081_v12  ;;  %v6415_v36 = vadd.f32 %v5579_v50, %v3955_v22 }
 0x9e8   :  { %v5584_v7 = vadd.f32 %v6414_v42, %v8083_v34 }
 0x9e9   :  { %v5585_v18 = vadd.f32 %v6415_v36, %v8085_v37  ;;  %v5588_v54 = vadd.f32 %v5583_v33, %v5582_v51 }
 0x9eb   :  { %5589 = vadd.xlane.f32.xlu0 %v5588_v54  ;;  %v5591_v15 = vadd.f32 %v5585_v18, %v5584_v7 }
 0x9ed   :  { %5592 = vadd.xlane.f32.xlu1 %v5591_v15 }
 0xa78   :  { %v5590_v57 = vpop.xlane.xlu0 %5589 }
 0xa79   :  { %v5594_v9 = vmul.f32 0.00390625, %v5590_v57 }
 0xa7a   :  { %v5593_v11 = vpop.xlane.xlu1 %5592 }
 0xa7b   :  { %v5596_v59 = vsub.f32 %v5582_v51, %v5594_v9  ;;  %v5597_v60 = vsub.f32 %v5583_v33, %v5594_v9  ;;  %v5595_v61 = vmul.f32 0.00390625, %v5593_v11 }
 0xa7d   :  { %v5598_v10 = vsub.f32 %v5584_v7, %v5595_v61  ;;  %v5599_v62 = vsub.f32 %v5585_v18, %v5595_v61  ;;  %v5600_v39 = vmul.f32 %v5596_v59, %v5596_v59  ;;  %v5601_v41 = vmul.f32 %v5597_v60, %v5597_v60 }
 0xa7f   :  { %v5604_v12 = vadd.f32 %v5601_v41, %v5600_v39  ;;  %v5602_v43 = vmul.f32 %v5598_v10, %v5598_v10  ;;  %v5603_v45 = vmul.f32 %v5599_v62, %v5599_v62 }
 0xa81   :  { %5605 = vadd.xlane.f32.xlu0 %v5604_v12  ;;  %v5607_v34 = vadd.f32 %v5603_v45, %v5602_v43 }
 0xa83   :  { %5608 = vadd.xlane.f32.xlu1 %v5607_v34 }
 0xb0e   :  { %v5606_v37 = vpop.xlane.xlu0 %5605 }
 0xb0f   :  { %v5610_v2 = vmul.f32 0.00390625, %v5606_v37 }
 0xb10   :  { %v5609_v25 = vpop.xlane.xlu1 %5608 }
 0xb11   :  { %v5612_v6 = vadd.f32 1e-05, %v5610_v2  ;;  %v5611_v8 = vmul.f32 0.00390625, %v5609_v25 }
 0xb13   :  { %7055 = vrsqrt.f32 %v5612_v6  ;;  %v5613_v63 = vadd.f32 1e-05, %v5611_v8 }
 0xb15   :  { %7057 = vrsqrt.f32 %v5613_v63 }
 0xb1d   :  { %v7056_v19 = vpop.eup %7055 }
 0xb1e   :  { %v5616_v27 = vmul.f32 %v7056_v19, %v5596_v59  ;;  %v5617_v28 = vmul.f32 %v7056_v19, %v5597_v60 }
 0xb1f   :  { %v7058_v31 = vpop.eup %7057 }
 0xb20   :  { %v5631_v32 = vmul.f32 %v5624_v14, %v5616_v27  ;;  %v5632_v55 = vmul.f32 %v5628_v17, %v5617_v28  ;;  %v5618_v16 = vmul.f32 %v7058_v31, %v5598_v10  ;;  %v5619_v49 = vmul.f32 %v7058_v31, %v5599_v62 }
 0xb22   :  { %v5646_v0 = vadd.f32 %v5639_v20, %v5631_v32  ;;  %v5647_v35 = vadd.f32 %v5643_v13, %v5632_v55  ;;  %v5633_v1 = vmul.f32 %v5624_v14, %v5618_v16  ;;  %v5634_v46 = vmul.f32 %v5628_v17, %v5619_v49 }
 0xb24   :  { %5650 = vst [vmem:[%s9579_s19] sm:$0xff] %v5646_v0  ;;  %5651 = vst [vmem:[%s9579_s19 + $0x8] sm:$0xff] %v5647_v35  ;;  %v5648_v56 = vadd.f32 %v5639_v20, %v5633_v1  ;;  %v5649_v58 = vadd.f32 %v5643_v13, %v5634_v46 }
 0xb26   :  { %5652 = vst [vmem:[%s9579_s19 + $0x10] sm:$0xff] %v5648_v56  ;;  %5653 = vst [vmem:[%s9579_s19 + $0x18] sm:$0xff] %v5649_v58 }

</bundles_post_ra>
